<compile_context>
chip_gen: v6e
topology: v6e:2x2x1
jax: 0.10.0
libtpu: 0.0.40
codegen_flags: <defaults>
</compile_context>

<pallas_src>
from functools import partial

import numpy as np
import jax
import jax.numpy as jnp
from jax.experimental import pallas as pl
from jax.experimental.pallas import tpu as pltpu

EPS = 1e-5   # nn.BatchNorm2d default eps
PAD = 8      # sublane-tile-aligned interior offset of the H-halo scratch


# ------------------------------------------------------------------- kernel
def fused_block_kernel(x_ref, wa_hbm, ws_hbm, chred2_ref, chbc2_ref,
                       g_ref, b_ref, o_ref,
                       wa_vmem, ws_vmem, xp_ref, sem, *, N, H, W, C):
    """out = relu(bn1(conv1(relu(bn1(conv1(x))))) + shortcut(x))."""
    WC = W * C
    NH = N * H

    # Manual weight DMAs (HBM -> VMEM).  The scratch prep below overlaps the
    # conv-weight copy; the 1x1 shortcut weights are only needed at the very
    # end, so their copy is fully hidden behind both conv+BN stages.
    cp_a = pltpu.make_async_copy(wa_hbm, wa_vmem, sem.at[0])
    cp_s = pltpu.make_async_copy(ws_hbm, ws_vmem, sem.at[1])
    cp_a.start()
    cp_s.start()

    # Zero only the 4 halo rows the conv taps actually read (not the buffer).
    zrow = jnp.zeros((N, 1, WC), jnp.float32)
    xp_ref[:, PAD - 1:PAD, :] = zrow
    xp_ref[:, PAD + H:PAD + H + 1, :] = zrow

    def conv3x3(rows):                                   # (N*H, WC) -> (N*H, WC)
        # H-halo pad via scratch; interior store is sublane-tile aligned.
        xp_ref[:, PAD:PAD + H, :] = rows.reshape(N, H, WC)
        # Lane-stack the 3 ky-shifted views -> one deep (K=3*WC) MXU matmul,
        # accumulation stays inside the MXU (no zeros-init, no VPU adds).
        lhs = jnp.concatenate(
            [xp_ref[:, PAD - 1 + ky:PAD - 1 + ky + H, :].reshape(NH, WC)
             for ky in range(3)], axis=1)                # (N*H, 3*WC)
        return jnp.dot(lhs, wa_vmem[...], preferred_element_type=jnp.float32)

    def batchnorm(h):                                    # training-mode BN
        # One reduce matmul over lane-stacked [h | h*h] (1/count folded into
        # chred2) and one broadcast matmul producing [mean_l | E[h^2]_l].
        hs = jnp.concatenate([h, h * h], axis=1)         # (N*H, 2*WC)
        s = jnp.sum(hs, axis=0, keepdims=True)           # (1, 2*WC)
        stats = jnp.dot(s, chred2_ref[...],              # (1, 2*C) = [mean|msq]
                        preferred_element_type=jnp.float32)
        bc = jnp.dot(stats, chbc2_ref[...],              # (1, 2*WC) per-lane
                     preferred_element_type=jnp.float32)
        mean_l = bc[:, :WC]
        var_l = jnp.maximum(bc[:, WC:] - mean_l * mean_l, 0.0)   # clamp >= 0
        scale_l = g_ref[...] * jax.lax.rsqrt(var_l + EPS)        # EUP rsqrt
        return (h - mean_l) * scale_l + b_ref[...]

    cp_a.wait()                                          # conv weights landed

    # stage 1: y = relu(bn1(conv1(x)))  -- never leaves VMEM / vregs
    y = jnp.maximum(batchnorm(conv3x3(x_ref[...])), 0.0)

    # stage 2: out = relu(bn1(conv1(y)) + shortcut(x))
    h = batchnorm(conv3x3(y))
    cp_s.wait()                                          # shortcut weights (hidden)
    sc = jnp.dot(x_ref[...], ws_vmem[...],               # re-read x at point of use
                 preferred_element_type=jnp.float32)
    o_ref[...] = jnp.maximum(h + sc, 0.0)                # lane-dense store


# ------------------------------------------------- hoisted weight preprocess
def prepare_params(w1_oihw, ws_oihw, gamma, beta, N, H, W):
    """Build lane-dense weight / BN helper matrices once (hoisted)."""
    C = int(gamma.shape[0])
    WC = W * C
    inv_count = 1.0 / float(N * H * W)
    f32 = jnp.float32

    # conv1 weight (O,I,3,3) -> w[ky, kx, ci, co]
    w = jnp.transpose(w1_oihw, (2, 3, 1, 0)).astype(f32)
    # per-kx shift matrices over the W axis (implicit zero padding in W)
    s_np = np.zeros((3, W, W), np.float32)
    for kx in range(3):
        for xo in range(W):
            xi = xo + kx - 1
            if 0 <= xi < W:
                s_np[kx, xi, xo] = 1.0
    shift = jnp.asarray(s_np)
    # block-banded lane-dense conv matrices per ky, stacked along K: (3*WC, WC)
    a_all = jnp.concatenate(
        [sum(jnp.kron(shift[kx], w[ky, kx]) for kx in range(3))
         for ky in range(3)], axis=0)
    # 1x1 shortcut conv as a block-diagonal lane-dense matrix: (WC, WC)
    ws_mat = jnp.transpose(ws_oihw[:, :, 0, 0], (1, 0)).astype(f32)
    a_sc = jnp.kron(jnp.eye(W, dtype=f32), ws_mat)

    # BN helper matrices: batched channel reduce (with 1/count folded in) and
    # batched channel->lane broadcast, so each BN is 2 MXU ops total.
    eyeC = jnp.eye(C, dtype=f32)
    chred = jnp.tile(eyeC, (W, 1)) * inv_count           # (WC, C)
    chbc = jnp.tile(eyeC, (W, 1)).T                      # (C, WC)
    chred2 = jnp.zeros((2 * WC, 2 * C), f32)
    chred2 = chred2.at[:WC, :C].set(chred).at[WC:, C:].set(chred)
    chbc2 = jnp.zeros((2 * C, 2 * WC), f32)
    chbc2 = chbc2.at[:C, :WC].set(chbc).at[C:, WC:].set(chbc)

    # per-lane (tiled) BN affine parameters
    g_row = jnp.tile(gamma.astype(f32), W).reshape(1, WC)
    b_row = jnp.tile(beta.astype(f32), W).reshape(1, WC)
    return a_all, a_sc, chred2, chbc2, g_row, b_row


# ------------------------------------------------------------------ wrapper
@jax.jit
def basic_block_forward(x_nchw, a_all, a_sc, chred2, chbc2, g_row, b_row):
    N, C, H, W = x_nchw.shape
    WC = W * C
    # NCHW -> lane-dense rows (N*H, W*C)
    x_rows = jnp.transpose(x_nchw, (0, 2, 3, 1)).reshape(N * H, WC)
    x_rows = x_rows.astype(jnp.float32)

    vmem = pl.BlockSpec(memory_space=pltpu.MemorySpace.VMEM)
    hbm = pl.BlockSpec(memory_space=pl.ANY)              # weights: manual DMA
    out_rows = pl.pallas_call(
        partial(fused_block_kernel, N=N, H=H, W=W, C=C),
        out_shape=jax.ShapeDtypeStruct((N * H, WC), jnp.float32),
        in_specs=[vmem, hbm, hbm, vmem, vmem, vmem, vmem],
        out_specs=vmem,
        scratch_shapes=[
            pltpu.VMEM((3 * WC, WC), jnp.float32),       # conv weights landing
            pltpu.VMEM((WC, WC), jnp.float32),           # shortcut weights landing
            pltpu.VMEM((N, PAD + H + 1, WC), jnp.float32),  # H-halo scratch
            pltpu.SemaphoreType.DMA((2,)),
        ],
    )(x_rows, a_all, a_sc, chred2, chbc2, g_row, b_row)

    # lane-dense rows -> NCHW (keep lane-dense between blocks in real nets)
    return jnp.transpose(out_rows.reshape(N, H, W, C), (0, 3, 1, 2))


# ---------------------------------------------------------------- reference
def reference_forward(x, w1, ws, gamma, beta):
    dn = ('NCHW', 'OIHW', 'NCHW')
    prec = jax.lax.Precision.HIGHEST

    def conv3(h):
        return jax.lax.conv_general_dilated(h, w1, (1, 1), ((1, 1), (1, 1)),
                                            dimension_numbers=dn, precision=prec)

    def conv1(h):
        return jax.lax.conv_general_dilated(h, ws, (1, 1), ((0, 0), (0, 0)),
                                            dimension_numbers=dn, precision=prec)

    def bn(h):
        mean = jnp.mean(h, axis=(0, 2, 3), keepdims=True)
        var = jnp.mean((h - mean) ** 2, axis=(0, 2, 3), keepdims=True)
        return ((h - mean) * jax.lax.rsqrt(var + EPS)
                * gamma.reshape(1, -1, 1, 1) + beta.reshape(1, -1, 1, 1))

    out = jax.nn.relu(bn(conv3(x)))
    out = bn(conv3(out))
    return jax.nn.relu(out + conv1(x))


# --------------------------------------------------------------------- main
if __name__ == "__main__":
    key = jax.random.PRNGKey(0)
    k1, k2, k3, k4, k5 = jax.random.split(key, 5)

    N, C, H, W = 2, 16, 16, 16  # batch=2, channel_size=16, spatial=16
    x = jax.random.normal(k1, (N, C, H, W), jnp.float32)
    # Deterministic synthetic parameters (shapes per nn.Module __init__).
    w1 = jax.random.normal(k2, (C, C, 3, 3), jnp.float32) / np.sqrt(9 * C)
    ws = jax.random.normal(k3, (C, C, 1, 1), jnp.float32) / np.sqrt(C)
    gamma = jax.random.uniform(k4, (C,), jnp.float32, 0.5, 1.5)
    beta = jax.random.normal(k5, (C,), jnp.float32) * 0.1

    params = prepare_params(w1, ws, gamma, beta, N, H, W)   # hoisted, once
    out = jax.block_until_ready(basic_block_forward(x, *params))
    ref = reference_forward(x, w1, ws, gamma, beta)

    assert out.shape == (N, C, H, W)
    np.testing.assert_allclose(np.asarray(out), np.asarray(ref),
                               rtol=2e-3, atol=2e-3)
    print("KERNEL_OK")
</pallas_src>

<mosaic_0001>
module attributes {stable_mosaic.version = 11 : i64} {
  func.func @fused_block_kernel(%arg0: memref<32x256xf32, #tpu.memory_space<vmem>>, %arg1: memref<768x256xf32, #tpu.memory_space<any>>, %arg2: memref<256x256xf32, #tpu.memory_space<any>>, %arg3: memref<512x32xf32, #tpu.memory_space<vmem>>, %arg4: memref<32x512xf32, #tpu.memory_space<vmem>>, %arg5: memref<1x256xf32, #tpu.memory_space<vmem>>, %arg6: memref<1x256xf32, #tpu.memory_space<vmem>>, %arg7: memref<32x256xf32, #tpu.memory_space<vmem>>, %arg8: memref<768x256xf32, #tpu.memory_space<vmem>>, %arg9: memref<256x256xf32, #tpu.memory_space<vmem>>, %arg10: memref<2x25x256xf32, #tpu.memory_space<vmem>>, %arg11: memref<2x!tpu.dma_semaphore, #tpu.memory_space<semaphore_mem>>) attributes {dimension_semantics = [], scalar_prefetch = 0 : i64, scratch_operands = 4 : i64, tpu.core_type = #tpu.core_type<tc>} {
    %c0_i32 = arith.constant 0 : i32
    %0 = tpu.memref_slice %arg11[%c0_i32] : memref<2x!tpu.dma_semaphore, #tpu.memory_space<semaphore_mem>> -> memref<1x!tpu.dma_semaphore, #tpu.memory_space<semaphore_mem>>
    %1 = tpu.memref_squeeze %0 : memref<1x!tpu.dma_semaphore, #tpu.memory_space<semaphore_mem>> -> memref<!tpu.dma_semaphore, #tpu.memory_space<semaphore_mem>>
    tpu.enqueue_dma source(%arg1 : memref<768x256xf32, #tpu.memory_space<any>>) target(%arg8 : memref<768x256xf32, #tpu.memory_space<vmem>>) target_semaphore(%1 : memref<!tpu.dma_semaphore, #tpu.memory_space<semaphore_mem>>)
    %c1_i32 = arith.constant 1 : i32
    %2 = tpu.memref_slice %arg11[%c1_i32] : memref<2x!tpu.dma_semaphore, #tpu.memory_space<semaphore_mem>> -> memref<1x!tpu.dma_semaphore, #tpu.memory_space<semaphore_mem>>
    %3 = tpu.memref_squeeze %2 : memref<1x!tpu.dma_semaphore, #tpu.memory_space<semaphore_mem>> -> memref<!tpu.dma_semaphore, #tpu.memory_space<semaphore_mem>>
    tpu.enqueue_dma source(%arg2 : memref<256x256xf32, #tpu.memory_space<any>>) target(%arg9 : memref<256x256xf32, #tpu.memory_space<vmem>>) target_semaphore(%3 : memref<!tpu.dma_semaphore, #tpu.memory_space<semaphore_mem>>)
    %cst = arith.constant 0.000000e+00 : f32
    %4 = vector.broadcast %cst : f32 to vector<2x1x256xf32>
    %c0 = arith.constant 0 : index
    %c7 = arith.constant 7 : index
    %c0_0 = arith.constant 0 : index
    %5 = vector.load %arg10[%c0, %c7, %c0_0] : memref<2x25x256xf32, #tpu.memory_space<vmem>>, vector<2x1x256xf32>
    tpu.vector_store %arg10[%c0, %c7, %c0_0], %4 {strides = array<i32>} : memref<2x25x256xf32, #tpu.memory_space<vmem>>, vector<2x1x256xf32>,
    %c0_1 = arith.constant 0 : index
    %c24 = arith.constant 24 : index
    %c0_2 = arith.constant 0 : index
    %6 = vector.load %arg10[%c0_1, %c24, %c0_2] : memref<2x25x256xf32, #tpu.memory_space<vmem>>, vector<2x1x256xf32>
    tpu.vector_store %arg10[%c0_1, %c24, %c0_2], %4 {strides = array<i32>} : memref<2x25x256xf32, #tpu.memory_space<vmem>>, vector<2x1x256xf32>,
    %c0_i32_3 = arith.constant 0 : i32
    %7 = tpu.memref_slice %arg11[%c0_i32_3] : memref<2x!tpu.dma_semaphore, #tpu.memory_space<semaphore_mem>> -> memref<1x!tpu.dma_semaphore, #tpu.memory_space<semaphore_mem>>
    %8 = tpu.memref_squeeze %7 : memref<1x!tpu.dma_semaphore, #tpu.memory_space<semaphore_mem>> -> memref<!tpu.dma_semaphore, #tpu.memory_space<semaphore_mem>>
    tpu.wait_dma2 semaphore(%8 : memref<!tpu.dma_semaphore, #tpu.memory_space<semaphore_mem>>) src(%arg1 : memref<768x256xf32, #tpu.memory_space<any>>) dst(%arg8 : memref<768x256xf32, #tpu.memory_space<vmem>>)
    %c0_4 = arith.constant 0 : index
    %c0_5 = arith.constant 0 : index
    %9 = vector.load %arg0[%c0_4, %c0_5] : memref<32x256xf32, #tpu.memory_space<vmem>>, vector<32x256xf32>
    %10 = vector.shape_cast %9 : vector<32x256xf32> to vector<2x16x256xf32>
    %c0_6 = arith.constant 0 : index
    %c8 = arith.constant 8 : index
    %c0_7 = arith.constant 0 : index
    %11 = vector.load %arg10[%c0_6, %c8, %c0_7] : memref<2x25x256xf32, #tpu.memory_space<vmem>>, vector<2x16x256xf32>
    tpu.vector_store %arg10[%c0_6, %c8, %c0_7], %10 {strides = array<i32>} : memref<2x25x256xf32, #tpu.memory_space<vmem>>, vector<2x16x256xf32>,
    %c0_8 = arith.constant 0 : index
    %c7_9 = arith.constant 7 : index
    %c0_10 = arith.constant 0 : index
    %12 = vector.load %arg10[%c0_8, %c7_9, %c0_10] : memref<2x25x256xf32, #tpu.memory_space<vmem>>, vector<2x16x256xf32>
    %13 = vector.shape_cast %12 : vector<2x16x256xf32> to vector<32x256xf32>
    %c0_11 = arith.constant 0 : index
    %c8_12 = arith.constant 8 : index
    %c0_13 = arith.constant 0 : index
    %14 = vector.load %arg10[%c0_11, %c8_12, %c0_13] : memref<2x25x256xf32, #tpu.memory_space<vmem>>, vector<2x16x256xf32>
    %15 = vector.shape_cast %14 : vector<2x16x256xf32> to vector<32x256xf32>
    %c0_14 = arith.constant 0 : index
    %c9 = arith.constant 9 : index
    %c0_15 = arith.constant 0 : index
    %16 = vector.load %arg10[%c0_14, %c9, %c0_15] : memref<2x25x256xf32, #tpu.memory_space<vmem>>, vector<2x16x256xf32>
    %17 = vector.shape_cast %16 : vector<2x16x256xf32> to vector<32x256xf32>
    %18 = tpu.concatenate %13, %15, %17 in 1 : vector<32x256xf32>, vector<32x256xf32>, vector<32x256xf32> -> vector<32x768xf32>
    %c0_16 = arith.constant 0 : index
    %c0_17 = arith.constant 0 : index
    %19 = vector.load %arg8[%c0_16, %c0_17] : memref<768x256xf32, #tpu.memory_space<vmem>>, vector<768x256xf32>
    %cst_18 = arith.constant dense<0.000000e+00> : vector<32x256xf32>
    %20 = tpu.matmul %18, %19, %cst_18 {dimension_numbers = #tpu.dot_dimension_numbers<[1], [0], [0], [1], [0, 0, 1, 1], [], []>} : vector<32x768xf32>, vector<768x256xf32>, vector<32x256xf32> -> vector<32x256xf32>
    %21 = arith.mulf %20, %20 : vector<32x256xf32>
    %22 = tpu.concatenate %20, %21 in 1 : vector<32x256xf32>, vector<32x256xf32> -> vector<32x512xf32>
    %cst_19 = arith.constant dense<0.000000e+00> : vector<512xf32>
    %23 = vector.multi_reduction <add>, %22, %cst_19 [0] : vector<32x512xf32> to vector<512xf32>
    %24 = vector.shape_cast %23 : vector<512xf32> to vector<1x512xf32>
    %c0_20 = arith.constant 0 : index
    %c0_21 = arith.constant 0 : index
    %25 = vector.load %arg3[%c0_20, %c0_21] : memref<512x32xf32, #tpu.memory_space<vmem>>, vector<512x32xf32>
    %cst_22 = arith.constant dense<0.000000e+00> : vector<1x32xf32>
    %26 = tpu.matmul %24, %25, %cst_22 {dimension_numbers = #tpu.dot_dimension_numbers<[1], [0], [0], [1], [0, 0, 1, 1], [], []>} : vector<1x512xf32>, vector<512x32xf32>, vector<1x32xf32> -> vector<1x32xf32>
    %c0_23 = arith.constant 0 : index
    %c0_24 = arith.constant 0 : index
    %27 = vector.load %arg4[%c0_23, %c0_24] : memref<32x512xf32, #tpu.memory_space<vmem>>, vector<32x512xf32>
    %cst_25 = arith.constant dense<0.000000e+00> : vector<1x512xf32>
    %28 = tpu.matmul %26, %27, %cst_25 {dimension_numbers = #tpu.dot_dimension_numbers<[1], [0], [0], [1], [0, 0, 1, 1], [], []>} : vector<1x32xf32>, vector<32x512xf32>, vector<1x512xf32> -> vector<1x512xf32>
    %29 = vector.extract_strided_slice %28 {offsets = [0, 0], sizes = [1, 256], strides = [1, 1]} : vector<1x512xf32> to vector<1x256xf32>
    %30 = vector.extract_strided_slice %28 {offsets = [0, 256], sizes = [1, 256], strides = [1, 1]} : vector<1x512xf32> to vector<1x256xf32>
    %31 = arith.mulf %29, %29 : vector<1x256xf32>
    %32 = arith.subf %30, %31 : vector<1x256xf32>
    %cst_26 = arith.constant 0.000000e+00 : f32
    %33 = vector.broadcast %cst_26 : f32 to vector<1x256xf32>
    %34 = arith.maximumf %32, %33 : vector<1x256xf32>
    %c0_27 = arith.constant 0 : index
    %c0_28 = arith.constant 0 : index
    %35 = vector.load %arg5[%c0_27, %c0_28] : memref<1x256xf32, #tpu.memory_space<vmem>>, vector<1x256xf32>
    %cst_29 = arith.constant 9.99999974E-6 : f32
    %36 = vector.broadcast %cst_29 : f32 to vector<1x256xf32>
    %37 = arith.addf %34, %36 : vector<1x256xf32>
    %38 = math.rsqrt %37 : vector<1x256xf32>
    %39 = arith.mulf %35, %38 : vector<1x256xf32>
    %40 = vector.broadcast %29 : vector<1x256xf32> to vector<32x256xf32>
    %41 = arith.subf %20, %40 : vector<32x256xf32>
    %42 = vector.broadcast %39 : vector<1x256xf32> to vector<32x256xf32>
    %43 = arith.mulf %41, %42 : vector<32x256xf32>
    %c0_30 = arith.constant 0 : index
    %c0_31 = arith.constant 0 : index
    %44 = vector.load %arg6[%c0_30, %c0_31] : memref<1x256xf32, #tpu.memory_space<vmem>>, vector<1x256xf32>
    %45 = vector.broadcast %44 : vector<1x256xf32> to vector<32x256xf32>
    %46 = arith.addf %43, %45 : vector<32x256xf32>
    %cst_32 = arith.constant 0.000000e+00 : f32
    %47 = vector.broadcast %cst_32 : f32 to vector<32x256xf32>
    %48 = arith.maximumf %46, %47 : vector<32x256xf32>
    %49 = vector.shape_cast %48 : vector<32x256xf32> to vector<2x16x256xf32>
    %c0_33 = arith.constant 0 : index
    %c8_34 = arith.constant 8 : index
    %c0_35 = arith.constant 0 : index
    %50 = vector.load %arg10[%c0_33, %c8_34, %c0_35] : memref<2x25x256xf32, #tpu.memory_space<vmem>>, vector<2x16x256xf32>
    tpu.vector_store %arg10[%c0_33, %c8_34, %c0_35], %49 {strides = array<i32>} : memref<2x25x256xf32, #tpu.memory_space<vmem>>, vector<2x16x256xf32>,
    %c0_36 = arith.constant 0 : index
    %c7_37 = arith.constant 7 : index
    %c0_38 = arith.constant 0 : index
    %51 = vector.load %arg10[%c0_36, %c7_37, %c0_38] : memref<2x25x256xf32, #tpu.memory_space<vmem>>, vector<2x16x256xf32>
    %52 = vector.shape_cast %51 : vector<2x16x256xf32> to vector<32x256xf32>
    %c0_39 = arith.constant 0 : index
    %c8_40 = arith.constant 8 : index
    %c0_41 = arith.constant 0 : index
    %53 = vector.load %arg10[%c0_39, %c8_40, %c0_41] : memref<2x25x256xf32, #tpu.memory_space<vmem>>, vector<2x16x256xf32>
    %54 = vector.shape_cast %53 : vector<2x16x256xf32> to vector<32x256xf32>
    %c0_42 = arith.constant 0 : index
    %c9_43 = arith.constant 9 : index
    %c0_44 = arith.constant 0 : index
    %55 = vector.load %arg10[%c0_42, %c9_43, %c0_44] : memref<2x25x256xf32, #tpu.memory_space<vmem>>, vector<2x16x256xf32>
    %56 = vector.shape_cast %55 : vector<2x16x256xf32> to vector<32x256xf32>
    %57 = tpu.concatenate %52, %54, %56 in 1 : vector<32x256xf32>, vector<32x256xf32>, vector<32x256xf32> -> vector<32x768xf32>
    %c0_45 = arith.constant 0 : index
    %c0_46 = arith.constant 0 : index
    %58 = vector.load %arg8[%c0_45, %c0_46] : memref<768x256xf32, #tpu.memory_space<vmem>>, vector<768x256xf32>
    %cst_47 = arith.constant dense<0.000000e+00> : vector<32x256xf32>
    %59 = tpu.matmul %57, %58, %cst_47 {dimension_numbers = #tpu.dot_dimension_numbers<[1], [0], [0], [1], [0, 0, 1, 1], [], []>} : vector<32x768xf32>, vector<768x256xf32>, vector<32x256xf32> -> vector<32x256xf32>
    %60 = arith.mulf %59, %59 : vector<32x256xf32>
    %61 = tpu.concatenate %59, %60 in 1 : vector<32x256xf32>, vector<32x256xf32> -> vector<32x512xf32>
    %cst_48 = arith.constant dense<0.000000e+00> : vector<512xf32>
    %62 = vector.multi_reduction <add>, %61, %cst_48 [0] : vector<32x512xf32> to vector<512xf32>
    %63 = vector.shape_cast %62 : vector<512xf32> to vector<1x512xf32>
    %c0_49 = arith.constant 0 : index
    %c0_50 = arith.constant 0 : index
    %64 = vector.load %arg3[%c0_49, %c0_50] : memref<512x32xf32, #tpu.memory_space<vmem>>, vector<512x32xf32>
    %cst_51 = arith.constant dense<0.000000e+00> : vector<1x32xf32>
    %65 = tpu.matmul %63, %64, %cst_51 {dimension_numbers = #tpu.dot_dimension_numbers<[1], [0], [0], [1], [0, 0, 1, 1], [], []>} : vector<1x512xf32>, vector<512x32xf32>, vector<1x32xf32> -> vector<1x32xf32>
    %c0_52 = arith.constant 0 : index
    %c0_53 = arith.constant 0 : index
    %66 = vector.load %arg4[%c0_52, %c0_53] : memref<32x512xf32, #tpu.memory_space<vmem>>, vector<32x512xf32>
    %cst_54 = arith.constant dense<0.000000e+00> : vector<1x512xf32>
    %67 = tpu.matmul %65, %66, %cst_54 {dimension_numbers = #tpu.dot_dimension_numbers<[1], [0], [0], [1], [0, 0, 1, 1], [], []>} : vector<1x32xf32>, vector<32x512xf32>, vector<1x512xf32> -> vector<1x512xf32>
    %68 = vector.extract_strided_slice %67 {offsets = [0, 0], sizes = [1, 256], strides = [1, 1]} : vector<1x512xf32> to vector<1x256xf32>
    %69 = vector.extract_strided_slice %67 {offsets = [0, 256], sizes = [1, 256], strides = [1, 1]} : vector<1x512xf32> to vector<1x256xf32>
    %70 = arith.mulf %68, %68 : vector<1x256xf32>
    %71 = arith.subf %69, %70 : vector<1x256xf32>
    %cst_55 = arith.constant 0.000000e+00 : f32
    %72 = vector.broadcast %cst_55 : f32 to vector<1x256xf32>
    %73 = arith.maximumf %71, %72 : vector<1x256xf32>
    %c0_56 = arith.constant 0 : index
    %c0_57 = arith.constant 0 : index
    %74 = vector.load %arg5[%c0_56, %c0_57] : memref<1x256xf32, #tpu.memory_space<vmem>>, vector<1x256xf32>
    %cst_58 = arith.constant 9.99999974E-6 : f32
    %75 = vector.broadcast %cst_58 : f32 to vector<1x256xf32>
    %76 = arith.addf %73, %75 : vector<1x256xf32>
    %77 = math.rsqrt %76 : vector<1x256xf32>
    %78 = arith.mulf %74, %77 : vector<1x256xf32>
    %79 = vector.broadcast %68 : vector<1x256xf32> to vector<32x256xf32>
    %80 = arith.subf %59, %79 : vector<32x256xf32>
    %81 = vector.broadcast %78 : vector<1x256xf32> to vector<32x256xf32>
    %82 = arith.mulf %80, %81 : vector<32x256xf32>
    %c0_59 = arith.constant 0 : index
    %c0_60 = arith.constant 0 : index
    %83 = vector.load %arg6[%c0_59, %c0_60] : memref<1x256xf32, #tpu.memory_space<vmem>>, vector<1x256xf32>
    %84 = vector.broadcast %83 : vector<1x256xf32> to vector<32x256xf32>
    %85 = arith.addf %82, %84 : vector<32x256xf32>
    %c1_i32_61 = arith.constant 1 : i32
    %86 = tpu.memref_slice %arg11[%c1_i32_61] : memref<2x!tpu.dma_semaphore, #tpu.memory_space<semaphore_mem>> -> memref<1x!tpu.dma_semaphore, #tpu.memory_space<semaphore_mem>>
    %87 = tpu.memref_squeeze %86 : memref<1x!tpu.dma_semaphore, #tpu.memory_space<semaphore_mem>> -> memref<!tpu.dma_semaphore, #tpu.memory_space<semaphore_mem>>
    tpu.wait_dma2 semaphore(%87 : memref<!tpu.dma_semaphore, #tpu.memory_space<semaphore_mem>>) src(%arg2 : memref<256x256xf32, #tpu.memory_space<any>>) dst(%arg9 : memref<256x256xf32, #tpu.memory_space<vmem>>)
    %c0_62 = arith.constant 0 : index
    %c0_63 = arith.constant 0 : index
    %88 = vector.load %arg0[%c0_62, %c0_63] : memref<32x256xf32, #tpu.memory_space<vmem>>, vector<32x256xf32>
    %c0_64 = arith.constant 0 : index
    %c0_65 = arith.constant 0 : index
    %89 = vector.load %arg9[%c0_64, %c0_65] : memref<256x256xf32, #tpu.memory_space<vmem>>, vector<256x256xf32>
    %cst_66 = arith.constant dense<0.000000e+00> : vector<32x256xf32>
    %90 = tpu.matmul %88, %89, %cst_66 {dimension_numbers = #tpu.dot_dimension_numbers<[1], [0], [0], [1], [0, 0, 1, 1], [], []>} : vector<32x256xf32>, vector<256x256xf32>, vector<32x256xf32> -> vector<32x256xf32>
    %91 = arith.addf %85, %90 : vector<32x256xf32>
    %cst_67 = arith.constant 0.000000e+00 : f32
    %92 = vector.broadcast %cst_67 : f32 to vector<32x256xf32>
    %93 = arith.maximumf %91, %92 : vector<32x256xf32>
    %c0_68 = arith.constant 0 : index
    %c0_69 = arith.constant 0 : index
    %94 = vector.load %arg7[%c0_68, %c0_69] : memref<32x256xf32, #tpu.memory_space<vmem>>, vector<32x256xf32>
    tpu.vector_store %arg7[%c0_68, %c0_69], %93 {strides = array<i32>} : memref<32x256xf32, #tpu.memory_space<vmem>>, vector<32x256xf32>,
    return
  }
}

</mosaic_0001>

<bundles_post_ra>
// kernel: basic_block_forward.1
= control target key start
LH: loop header
LB: loop body
LE: loop exit
PB: predicated region body
PF: predicated region fallthrough
CT: control target
= control target key end

     0   :  { %s5761_s0 = inlined_call_operand.vmem [shape: f32[32,256], index: 0, kind: input, shape index: {}]   ;;  %s5762_s1 = inlined_call_operand.vmem [shape: f32[768,256], index: 1, kind: input, shape index: {}]   ;;  %s5763_s2 = inlined_call_operand.vmem [shape: f32[256,256], index: 2, kind: input, shape index: {}]   ;;  %s5764_s3 = inlined_call_operand.vmem [shape: f32[512,32], index: 3, kind: input, shape index: {}]   ;;  %s5765_s4 = inlined_call_operand.vmem [shape: f32[32,512], index: 4, kind: input, shape index: {}]   ;;  %s5766_s5 = inlined_call_operand.vmem [shape: f32[1,256], index: 5, kind: input, shape index: {}]   ;;  %s5767_s6 = inlined_call_operand.vmem [shape: f32[1,256], index: 6, kind: input, shape index: {}]   ;;  %s5768_s7 = inlined_call_operand.vmem [shape: f32[32,256], index: 7, kind: output, shape index: {}]  }
   0x1   :  { %v3213_v0 = vld [vmem:[%s5762_s1] sm:$0xff]  ;;  %v3218_v1 = vld [vmem:[%s5762_s1 + $0x8] sm:$0xff]  ;;  %v3223_v2 = vld [vmem:[%s5762_s1 + $0x10] sm:$0xff] }
   0x2   :  { %5936 = vst [vmem:[#allocation10_spill] sm:$0xff] %v3213_v0  ;;  %5937 = vst [vmem:[#allocation11_spill] sm:$0xff] %v3218_v1  ;;  %v3228_v3 = vld [vmem:[%s5762_s1 + $0x18] sm:$0xff]  ;;  %v3233_v4 = vld [vmem:[%s5762_s1 + $0x20] sm:$0xff] }
   0x3   :  { %5938 = vst [vmem:[#allocation12_spill] sm:$0xff] %v3223_v2  ;;  %5939 = vst [vmem:[#allocation13_spill] sm:$0xff] %v3228_v3  ;;  %v3238_v5 = vld [vmem:[%s5762_s1 + $0x28] sm:$0xff]  ;;  %v3243_v6 = vld [vmem:[%s5762_s1 + $0x30] sm:$0xff] }
   0x4   :  { %5940 = vst [vmem:[#allocation14_spill] sm:$0xff] %v3233_v4  ;;  %5941 = vst [vmem:[#allocation15_spill] sm:$0xff] %v3238_v5  ;;  %v3248_v7 = vld [vmem:[%s5762_s1 + $0x38] sm:$0xff]  ;;  %v3253_v8 = vld [vmem:[%s5762_s1 + $0x40] sm:$0xff] }
   0x5   :  { %5942 = vst [vmem:[#allocation16_spill] sm:$0xff] %v3243_v6  ;;  %5943 = vst [vmem:[#allocation17_spill] sm:$0xff] %v3248_v7  ;;  %v3258_v9 = vld [vmem:[%s5762_s1 + $0x48] sm:$0xff]  ;;  %v3263_v10 = vld [vmem:[%s5762_s1 + $0x50] sm:$0xff] }
   0x6   :  { %5944 = vst [vmem:[#allocation18_spill] sm:$0xff] %v3253_v8  ;;  %5945 = vst [vmem:[#allocation19_spill] sm:$0xff] %v3258_v9  ;;  %v3268_v11 = vld [vmem:[%s5762_s1 + $0x58] sm:$0xff]  ;;  %v3273_v12 = vld [vmem:[%s5762_s1 + $0x60] sm:$0xff] }
   0x7   :  { %5946 = vst [vmem:[#allocation20_spill] sm:$0xff] %v3263_v10  ;;  %5947 = vst [vmem:[#allocation21_spill] sm:$0xff] %v3268_v11  ;;  %v3278_v13 = vld [vmem:[%s5762_s1 + $0x68] sm:$0xff]  ;;  %v3283_v14 = vld [vmem:[%s5762_s1 + $0x70] sm:$0xff] }
   0x8   :  { %5948 = vst [vmem:[#allocation22_spill] sm:$0xff] %v3273_v12  ;;  %5949 = vst [vmem:[#allocation23_spill] sm:$0xff] %v3278_v13  ;;  %v3288_v15 = vld [vmem:[%s5762_s1 + $0x78] sm:$0xff]  ;;  %v3293_v16 = vld [vmem:[%s5762_s1 + $0x80] sm:$0xff] }
   0x9   :  { %5950 = vst [vmem:[#allocation24_spill] sm:$0xff] %v3283_v14  ;;  %5951 = vst [vmem:[#allocation25_spill] sm:$0xff] %v3288_v15  ;;  %v3298_v17 = vld [vmem:[%s5762_s1 + $0x88] sm:$0xff]  ;;  %v3303_v18 = vld [vmem:[%s5762_s1 + $0x90] sm:$0xff] }
   0xa   :  { %5952 = vst [vmem:[#allocation26_spill] sm:$0xff] %v3293_v16  ;;  %5953 = vst [vmem:[#allocation27_spill] sm:$0xff] %v3298_v17  ;;  %v3308_v19 = vld [vmem:[%s5762_s1 + $0x98] sm:$0xff]  ;;  %v3313_v20 = vld [vmem:[%s5762_s1 + $0xa0] sm:$0xff] }
   0xb   :  { %5954 = vst [vmem:[#allocation28_spill] sm:$0xff] %v3303_v18  ;;  %5955 = vst [vmem:[#allocation29_spill] sm:$0xff] %v3308_v19  ;;  %v3318_v21 = vld [vmem:[%s5762_s1 + $0xa8] sm:$0xff]  ;;  %v3323_v22 = vld [vmem:[%s5762_s1 + $0xb0] sm:$0xff] }
   0xc   :  { %5956 = vst [vmem:[#allocation30_spill] sm:$0xff] %v3313_v20  ;;  %5957 = vst [vmem:[#allocation31_spill] sm:$0xff] %v3318_v21  ;;  %v3328_v23 = vld [vmem:[%s5762_s1 + $0xb8] sm:$0xff]  ;;  %v3333_v24 = vld [vmem:[%s5762_s1 + $0xc0] sm:$0xff] }
   0xd   :  { %5958 = vst [vmem:[#allocation32_spill] sm:$0xff] %v3323_v22  ;;  %5959 = vst [vmem:[#allocation33_spill] sm:$0xff] %v3328_v23  ;;  %v3338_v25 = vld [vmem:[%s5762_s1 + $0xc8] sm:$0xff]  ;;  %v3343_v26 = vld [vmem:[%s5762_s1 + $0xd0] sm:$0xff] }
   0xe   :  { %5960 = vst [vmem:[#allocation34_spill] sm:$0xff] %v3333_v24  ;;  %5961 = vst [vmem:[#allocation35_spill] sm:$0xff] %v3338_v25  ;;  %v3348_v27 = vld [vmem:[%s5762_s1 + $0xd8] sm:$0xff]  ;;  %v3353_v28 = vld [vmem:[%s5762_s1 + $0xe0] sm:$0xff] }
   0xf   :  { %5962 = vst [vmem:[#allocation36_spill] sm:$0xff] %v3343_v26  ;;  %5963 = vst [vmem:[#allocation37_spill] sm:$0xff] %v3348_v27  ;;  %v3358_v29 = vld [vmem:[%s5762_s1 + $0xe8] sm:$0xff]  ;;  %v3363_v30 = vld [vmem:[%s5762_s1 + $0xf0] sm:$0xff] }
  0x10   :  { %5964 = vst [vmem:[#allocation38_spill] sm:$0xff] %v3353_v28  ;;  %5965 = vst [vmem:[#allocation39_spill] sm:$0xff] %v3358_v29  ;;  %v3368_v31 = vld [vmem:[%s5762_s1 + $0xf8] sm:$0xff]  ;;  %v3373_v32 = vld [vmem:[%s5762_s1 + $0x100] sm:$0xff] }
  0x11   :  { %5966 = vst [vmem:[#allocation40_spill] sm:$0xff] %v3363_v30  ;;  %5967 = vst [vmem:[#allocation41_spill] sm:$0xff] %v3368_v31  ;;  %v3378_v33 = vld [vmem:[%s5762_s1 + $0x108] sm:$0xff]  ;;  %v3383_v34 = vld [vmem:[%s5762_s1 + $0x110] sm:$0xff] }
  0x12   :  { %5968 = vst [vmem:[#allocation42_spill] sm:$0xff] %v3373_v32  ;;  %5969 = vst [vmem:[#allocation43_spill] sm:$0xff] %v3378_v33  ;;  %v3388_v35 = vld [vmem:[%s5762_s1 + $0x118] sm:$0xff]  ;;  %v3393_v36 = vld [vmem:[%s5762_s1 + $0x120] sm:$0xff] }
  0x13   :  { %5970 = vst [vmem:[#allocation44_spill] sm:$0xff] %v3383_v34  ;;  %5971 = vst [vmem:[#allocation45_spill] sm:$0xff] %v3388_v35  ;;  %v3398_v37 = vld [vmem:[%s5762_s1 + $0x128] sm:$0xff]  ;;  %v3403_v38 = vld [vmem:[%s5762_s1 + $0x130] sm:$0xff] }
  0x14   :  { %5972 = vst [vmem:[#allocation46_spill] sm:$0xff] %v3393_v36  ;;  %5973 = vst [vmem:[#allocation47_spill] sm:$0xff] %v3398_v37  ;;  %v3408_v39 = vld [vmem:[%s5762_s1 + $0x138] sm:$0xff]  ;;  %v3413_v40 = vld [vmem:[%s5762_s1 + $0x140] sm:$0xff] }
  0x15   :  { %5974 = vst [vmem:[#allocation48_spill] sm:$0xff] %v3403_v38  ;;  %5975 = vst [vmem:[#allocation49_spill] sm:$0xff] %v3408_v39  ;;  %v3418_v41 = vld [vmem:[%s5762_s1 + $0x148] sm:$0xff]  ;;  %v3423_v42 = vld [vmem:[%s5762_s1 + $0x150] sm:$0xff] }
  0x16   :  { %5976 = vst [vmem:[#allocation50_spill] sm:$0xff] %v3413_v40  ;;  %5977 = vst [vmem:[#allocation51_spill] sm:$0xff] %v3418_v41  ;;  %v3428_v43 = vld [vmem:[%s5762_s1 + $0x158] sm:$0xff]  ;;  %v3433_v44 = vld [vmem:[%s5762_s1 + $0x160] sm:$0xff] }
  0x17   :  { %5978 = vst [vmem:[#allocation52_spill] sm:$0xff] %v3423_v42  ;;  %5979 = vst [vmem:[#allocation53_spill] sm:$0xff] %v3428_v43  ;;  %v3438_v45 = vld [vmem:[%s5762_s1 + $0x168] sm:$0xff]  ;;  %v3443_v46 = vld [vmem:[%s5762_s1 + $0x170] sm:$0xff] }
  0x18   :  { %5980 = vst [vmem:[#allocation54_spill] sm:$0xff] %v3433_v44  ;;  %5981 = vst [vmem:[#allocation55_spill] sm:$0xff] %v3438_v45  ;;  %v3448_v47 = vld [vmem:[%s5762_s1 + $0x178] sm:$0xff]  ;;  %v3453_v48 = vld [vmem:[%s5762_s1 + $0x180] sm:$0xff] }
  0x19   :  { %5982 = vst [vmem:[#allocation56_spill] sm:$0xff] %v3443_v46  ;;  %5983 = vst [vmem:[#allocation57_spill] sm:$0xff] %v3448_v47  ;;  %v3458_v49 = vld [vmem:[%s5762_s1 + $0x188] sm:$0xff]  ;;  %v3463_v50 = vld [vmem:[%s5762_s1 + $0x190] sm:$0xff] }
  0x1a   :  { %5984 = vst [vmem:[#allocation58_spill] sm:$0xff] %v3453_v48  ;;  %5985 = vst [vmem:[#allocation59_spill] sm:$0xff] %v3458_v49  ;;  %v3468_v51 = vld [vmem:[%s5762_s1 + $0x198] sm:$0xff]  ;;  %v3473_v52 = vld [vmem:[%s5762_s1 + $0x1a0] sm:$0xff] }
  0x1b   :  { %5986 = vst [vmem:[#allocation60_spill] sm:$0xff] %v3463_v50  ;;  %5987 = vst [vmem:[#allocation61_spill] sm:$0xff] %v3468_v51  ;;  %v3478_v53 = vld [vmem:[%s5762_s1 + $0x1a8] sm:$0xff]  ;;  %v3483_v54 = vld [vmem:[%s5762_s1 + $0x1b0] sm:$0xff] }
  0x1c   :  { %5988 = vst [vmem:[#allocation62_spill] sm:$0xff] %v3473_v52  ;;  %5989 = vst [vmem:[#allocation63_spill] sm:$0xff] %v3478_v53  ;;  %v3488_v55 = vld [vmem:[%s5762_s1 + $0x1b8] sm:$0xff]  ;;  %v3493_v56 = vld [vmem:[%s5762_s1 + $0x1c0] sm:$0xff] }
  0x1d   :  { %5990 = vst [vmem:[#allocation64_spill] sm:$0xff] %v3483_v54  ;;  %5991 = vst [vmem:[#allocation65_spill] sm:$0xff] %v3488_v55  ;;  %v3498_v57 = vld [vmem:[%s5762_s1 + $0x1c8] sm:$0xff]  ;;  %v3503_v58 = vld [vmem:[%s5762_s1 + $0x1d0] sm:$0xff] }
  0x1e   :  { %5992 = vst [vmem:[#allocation66_spill] sm:$0xff] %v3493_v56  ;;  %5993 = vst [vmem:[#allocation67_spill] sm:$0xff] %v3498_v57  ;;  %v3508_v59 = vld [vmem:[%s5762_s1 + $0x1d8] sm:$0xff]  ;;  %v3513_v60 = vld [vmem:[%s5762_s1 + $0x1e0] sm:$0xff] }
  0x1f   :  { %5994 = vst [vmem:[#allocation68_spill] sm:$0xff] %v3503_v58  ;;  %5995 = vst [vmem:[#allocation69_spill] sm:$0xff] %v3508_v59  ;;  %v3518_v61 = vld [vmem:[%s5762_s1 + $0x1e8] sm:$0xff]  ;;  %v3523_v62 = vld [vmem:[%s5762_s1 + $0x1f0] sm:$0xff] }
  0x20   :  { %5996 = vst [vmem:[#allocation70_spill] sm:$0xff] %v3513_v60  ;;  %5997 = vst [vmem:[#allocation71_spill] sm:$0xff] %v3518_v61  ;;  %v3528_v63 = vld [vmem:[%s5762_s1 + $0x1f8] sm:$0xff]  ;;  %v3533_v32 = vld [vmem:[%s5762_s1 + $0x200] sm:$0xff] }
  0x21   :  { %5998 = vst [vmem:[#allocation72_spill] sm:$0xff] %v3523_v62  ;;  %5999 = vst [vmem:[#allocation73_spill] sm:$0xff] %v3528_v63  ;;  %v3538_v33 = vld [vmem:[%s5762_s1 + $0x208] sm:$0xff]  ;;  %v3543_v34 = vld [vmem:[%s5762_s1 + $0x210] sm:$0xff] }
  0x22   :  { %6000 = vst [vmem:[#allocation74_spill] sm:$0xff] %v3533_v32  ;;  %6001 = vst [vmem:[#allocation75_spill] sm:$0xff] %v3538_v33  ;;  %v3548_v35 = vld [vmem:[%s5762_s1 + $0x218] sm:$0xff]  ;;  %v3553_v36 = vld [vmem:[%s5762_s1 + $0x220] sm:$0xff] }
  0x23   :  { %6002 = vst [vmem:[#allocation76_spill] sm:$0xff] %v3543_v34  ;;  %v3558_v37 = vld [vmem:[%s5762_s1 + $0x228] sm:$0xff]  ;;  %v3563_v38 = vld [vmem:[%s5762_s1 + $0x230] sm:$0xff]  ;;  %v3568_v39 = vld [vmem:[%s5762_s1 + $0x238] sm:$0xff] }
  0x24   :  { %v3573_v40 = vld [vmem:[%s5762_s1 + $0x240] sm:$0xff]  ;;  %v3578_v41 = vld [vmem:[%s5762_s1 + $0x248] sm:$0xff]  ;;  %v3583_v42 = vld [vmem:[%s5762_s1 + $0x250] sm:$0xff] }
  0x25   :  { %v3588_v43 = vld [vmem:[%s5762_s1 + $0x258] sm:$0xff]  ;;  %v3593_v44 = vld [vmem:[%s5762_s1 + $0x260] sm:$0xff]  ;;  %v3598_v45 = vld [vmem:[%s5762_s1 + $0x268] sm:$0xff] }
  0x26   :  { %v3603_v46 = vld [vmem:[%s5762_s1 + $0x270] sm:$0xff]  ;;  %v3608_v47 = vld [vmem:[%s5762_s1 + $0x278] sm:$0xff]  ;;  %v3613_v48 = vld [vmem:[%s5762_s1 + $0x280] sm:$0xff] }
  0x27   :  { %v3618_v49 = vld [vmem:[%s5762_s1 + $0x288] sm:$0xff]  ;;  %v3623_v50 = vld [vmem:[%s5762_s1 + $0x290] sm:$0xff]  ;;  %v3628_v51 = vld [vmem:[%s5762_s1 + $0x298] sm:$0xff] }
  0x28   :  { %v3633_v52 = vld [vmem:[%s5762_s1 + $0x2a0] sm:$0xff]  ;;  %v3638_v53 = vld [vmem:[%s5762_s1 + $0x2a8] sm:$0xff]  ;;  %v3643_v54 = vld [vmem:[%s5762_s1 + $0x2b0] sm:$0xff] }
  0x29   :  { %v3648_v55 = vld [vmem:[%s5762_s1 + $0x2b8] sm:$0xff]  ;;  %v3653_v56 = vld [vmem:[%s5762_s1 + $0x2c0] sm:$0xff]  ;;  %v3658_v57 = vld [vmem:[%s5762_s1 + $0x2c8] sm:$0xff] }
  0x2a   :  { %v3663_v58 = vld [vmem:[%s5762_s1 + $0x2d0] sm:$0xff]  ;;  %v3668_v59 = vld [vmem:[%s5762_s1 + $0x2d8] sm:$0xff]  ;;  %v3673_v60 = vld [vmem:[%s5762_s1 + $0x2e0] sm:$0xff] }
  0x2b   :  { %v3678_v61 = vld [vmem:[%s5762_s1 + $0x2e8] sm:$0xff]  ;;  %v3683_v62 = vld [vmem:[%s5762_s1 + $0x2f0] sm:$0xff]  ;;  %v3688_v63 = vld [vmem:[%s5762_s1 + $0x2f8] sm:$0xff] }
  0x2c   :  { %v3693_v32 = vld [vmem:[%s5762_s1 + $0x300] sm:$0xff]  ;;  %v3698_v0 = vld [vmem:[%s5762_s1 + $0x308] sm:$0xff]  ;;  %v3703_v33 = vld [vmem:[%s5762_s1 + $0x310] sm:$0xff] }
  0x2d   :  { %6003 = vst [vmem:[#allocation77_spill] sm:$0xff] %v3693_v32  ;;  %6004 = vst [vmem:[#allocation78_spill] sm:$0xff] %v3698_v0  ;;  %v3708_v1 = vld [vmem:[%s5762_s1 + $0x318] sm:$0xff]  ;;  %v3713_v34 = vld [vmem:[%s5762_s1 + $0x320] sm:$0xff] }
  0x2e   :  { %6005 = vst [vmem:[#allocation79_spill] sm:$0xff] %v3703_v33  ;;  %6006 = vst [vmem:[#allocation80_spill] sm:$0xff] %v3708_v1  ;;  %v3718_v32 = vld [vmem:[%s5762_s1 + $0x328] sm:$0xff]  ;;  %v3723_v0 = vld [vmem:[%s5762_s1 + $0x330] sm:$0xff] }
  0x2f   :  { %6007 = vst [vmem:[#allocation81_spill] sm:$0xff] %v3713_v34  ;;  %6008 = vst [vmem:[#allocation82_spill] sm:$0xff] %v3718_v32  ;;  %v3728_v33 = vld [vmem:[%s5762_s1 + $0x338] sm:$0xff]  ;;  %v3733_v1 = vld [vmem:[%s5762_s1 + $0x340] sm:$0xff] }
  0x30   :  { %6009 = vst [vmem:[#allocation83_spill] sm:$0xff] %v3723_v0  ;;  %6010 = vst [vmem:[#allocation84_spill] sm:$0xff] %v3728_v33  ;;  %v3738_v34 = vld [vmem:[%s5762_s1 + $0x348] sm:$0xff]  ;;  %v3743_v32 = vld [vmem:[%s5762_s1 + $0x350] sm:$0xff] }
  0x31   :  { %6011 = vst [vmem:[#allocation85_spill] sm:$0xff] %v3733_v1  ;;  %6012 = vst [vmem:[#allocation86_spill] sm:$0xff] %v3738_v34  ;;  %v3748_v0 = vld [vmem:[%s5762_s1 + $0x358] sm:$0xff]  ;;  %v3753_v33 = vld [vmem:[%s5762_s1 + $0x360] sm:$0xff] }
  0x32   :  { %6013 = vst [vmem:[#allocation87_spill] sm:$0xff] %v3743_v32  ;;  %6014 = vst [vmem:[#allocation88_spill] sm:$0xff] %v3748_v0  ;;  %v3758_v1 = vld [vmem:[%s5762_s1 + $0x368] sm:$0xff]  ;;  %v3763_v34 = vld [vmem:[%s5762_s1 + $0x370] sm:$0xff] }
  0x33   :  { %6015 = vst [vmem:[#allocation89_spill] sm:$0xff] %v3753_v33  ;;  %6016 = vst [vmem:[#allocation90_spill] sm:$0xff] %v3758_v1  ;;  %v3768_v32 = vld [vmem:[%s5762_s1 + $0x378] sm:$0xff]  ;;  %v3773_v0 = vld [vmem:[%s5762_s1 + $0x380] sm:$0xff] }
  0x34   :  { %6017 = vst [vmem:[#allocation91_spill] sm:$0xff] %v3763_v34  ;;  %6018 = vst [vmem:[#allocation92_spill] sm:$0xff] %v3768_v32  ;;  %v3778_v33 = vld [vmem:[%s5762_s1 + $0x388] sm:$0xff]  ;;  %v3783_v1 = vld [vmem:[%s5762_s1 + $0x390] sm:$0xff] }
  0x35   :  { %6019 = vst [vmem:[#allocation93_spill] sm:$0xff] %v3773_v0  ;;  %6020 = vst [vmem:[#allocation94_spill] sm:$0xff] %v3778_v33  ;;  %v3788_v34 = vld [vmem:[%s5762_s1 + $0x398] sm:$0xff]  ;;  %v3793_v32 = vld [vmem:[%s5762_s1 + $0x3a0] sm:$0xff] }
  0x36   :  { %6021 = vst [vmem:[#allocation95_spill] sm:$0xff] %v3783_v1  ;;  %6022 = vst [vmem:[#allocation96_spill] sm:$0xff] %v3788_v34  ;;  %v3798_v0 = vld [vmem:[%s5762_s1 + $0x3a8] sm:$0xff]  ;;  %v3803_v33 = vld [vmem:[%s5762_s1 + $0x3b0] sm:$0xff] }
  0x37   :  { %6023 = vst [vmem:[#allocation97_spill] sm:$0xff] %v3793_v32  ;;  %6024 = vst [vmem:[#allocation98_spill] sm:$0xff] %v3798_v0  ;;  %v3808_v1 = vld [vmem:[%s5762_s1 + $0x3b8] sm:$0xff]  ;;  %v3813_v34 = vld [vmem:[%s5762_s1 + $0x3c0] sm:$0xff] }
  0x38   :  { %6025 = vst [vmem:[#allocation99_spill] sm:$0xff] %v3803_v33  ;;  %6026 = vst [vmem:[#allocation100_spill] sm:$0xff] %v3808_v1  ;;  %v3818_v32 = vld [vmem:[%s5762_s1 + $0x3c8] sm:$0xff]  ;;  %v3823_v0 = vld [vmem:[%s5762_s1 + $0x3d0] sm:$0xff] }
  0x39   :  { %6027 = vst [vmem:[#allocation101_spill] sm:$0xff] %v3813_v34  ;;  %6028 = vst [vmem:[#allocation102_spill] sm:$0xff] %v3818_v32  ;;  %v3828_v33 = vld [vmem:[%s5762_s1 + $0x3d8] sm:$0xff]  ;;  %v3833_v1 = vld [vmem:[%s5762_s1 + $0x3e0] sm:$0xff] }
  0x3a   :  { %6029 = vst [vmem:[#allocation103_spill] sm:$0xff] %v3823_v0  ;;  %6030 = vst [vmem:[#allocation104_spill] sm:$0xff] %v3828_v33  ;;  %v3838_v34 = vld [vmem:[%s5762_s1 + $0x3e8] sm:$0xff]  ;;  %v3843_v32 = vld [vmem:[%s5762_s1 + $0x3f0] sm:$0xff] }
  0x3b   :  { %6031 = vst [vmem:[#allocation105_spill] sm:$0xff] %v3833_v1  ;;  %6032 = vst [vmem:[#allocation106_spill] sm:$0xff] %v3838_v34  ;;  %v3848_v0 = vld [vmem:[%s5762_s1 + $0x3f8] sm:$0xff]  ;;  %v3853_v33 = vld [vmem:[%s5762_s1 + $0x400] sm:$0xff] }
  0x3c   :  { %6033 = vst [vmem:[#allocation107_spill] sm:$0xff] %v3843_v32  ;;  %6034 = vst [vmem:[#allocation108_spill] sm:$0xff] %v3848_v0  ;;  %v3858_v1 = vld [vmem:[%s5762_s1 + $0x408] sm:$0xff]  ;;  %v3863_v34 = vld [vmem:[%s5762_s1 + $0x410] sm:$0xff] }
  0x3d   :  { %6035 = vst [vmem:[#allocation109_spill] sm:$0xff] %v3853_v33  ;;  %6036 = vst [vmem:[#allocation110_spill] sm:$0xff] %v3858_v1  ;;  %v3868_v32 = vld [vmem:[%s5762_s1 + $0x418] sm:$0xff]  ;;  %v3873_v0 = vld [vmem:[%s5762_s1 + $0x420] sm:$0xff] }
  0x3e   :  { %6037 = vst [vmem:[#allocation111_spill] sm:$0xff] %v3863_v34  ;;  %6038 = vst [vmem:[#allocation112_spill] sm:$0xff] %v3868_v32  ;;  %v3878_v33 = vld [vmem:[%s5762_s1 + $0x428] sm:$0xff]  ;;  %v3883_v1 = vld [vmem:[%s5762_s1 + $0x430] sm:$0xff] }
  0x3f   :  { %6039 = vst [vmem:[#allocation113_spill] sm:$0xff] %v3873_v0  ;;  %6040 = vst [vmem:[#allocation114_spill] sm:$0xff] %v3878_v33  ;;  %v3888_v34 = vld [vmem:[%s5762_s1 + $0x438] sm:$0xff]  ;;  %v3893_v32 = vld [vmem:[%s5762_s1 + $0x440] sm:$0xff] }
  0x40   :  { %6041 = vst [vmem:[#allocation115_spill] sm:$0xff] %v3883_v1  ;;  %6042 = vst [vmem:[#allocation116_spill] sm:$0xff] %v3888_v34  ;;  %v3898_v0 = vld [vmem:[%s5762_s1 + $0x448] sm:$0xff]  ;;  %v3903_v33 = vld [vmem:[%s5762_s1 + $0x450] sm:$0xff] }
  0x41   :  { %6043 = vst [vmem:[#allocation117_spill] sm:$0xff] %v3893_v32  ;;  %6044 = vst [vmem:[#allocation118_spill] sm:$0xff] %v3898_v0  ;;  %v3908_v1 = vld [vmem:[%s5762_s1 + $0x458] sm:$0xff]  ;;  %v3913_v34 = vld [vmem:[%s5762_s1 + $0x460] sm:$0xff] }
  0x42   :  { %6045 = vst [vmem:[#allocation119_spill] sm:$0xff] %v3903_v33  ;;  %6046 = vst [vmem:[#allocation120_spill] sm:$0xff] %v3908_v1  ;;  %v3918_v32 = vld [vmem:[%s5762_s1 + $0x468] sm:$0xff]  ;;  %v3923_v0 = vld [vmem:[%s5762_s1 + $0x470] sm:$0xff] }
  0x43   :  { %6047 = vst [vmem:[#allocation121_spill] sm:$0xff] %v3913_v34  ;;  %6048 = vst [vmem:[#allocation122_spill] sm:$0xff] %v3918_v32  ;;  %v3928_v33 = vld [vmem:[%s5762_s1 + $0x478] sm:$0xff]  ;;  %v3933_v1 = vld [vmem:[%s5762_s1 + $0x480] sm:$0xff] }
  0x44   :  { %6049 = vst [vmem:[#allocation123_spill] sm:$0xff] %v3923_v0  ;;  %6050 = vst [vmem:[#allocation124_spill] sm:$0xff] %v3928_v33  ;;  %v3938_v34 = vld [vmem:[%s5762_s1 + $0x488] sm:$0xff]  ;;  %v3943_v32 = vld [vmem:[%s5762_s1 + $0x490] sm:$0xff] }
  0x45   :  { %6051 = vst [vmem:[#allocation125_spill] sm:$0xff] %v3933_v1  ;;  %6052 = vst [vmem:[#allocation126_spill] sm:$0xff] %v3938_v34  ;;  %v3948_v0 = vld [vmem:[%s5762_s1 + $0x498] sm:$0xff]  ;;  %v3953_v33 = vld [vmem:[%s5762_s1 + $0x4a0] sm:$0xff] }
  0x46   :  { %6053 = vst [vmem:[#allocation127_spill] sm:$0xff] %v3943_v32  ;;  %6054 = vst [vmem:[#allocation128_spill] sm:$0xff] %v3948_v0  ;;  %v3958_v1 = vld [vmem:[%s5762_s1 + $0x4a8] sm:$0xff]  ;;  %v3963_v34 = vld [vmem:[%s5762_s1 + $0x4b0] sm:$0xff] }
  0x47   :  { %6055 = vst [vmem:[#allocation129_spill] sm:$0xff] %v3953_v33  ;;  %6056 = vst [vmem:[#allocation130_spill] sm:$0xff] %v3958_v1  ;;  %v3968_v32 = vld [vmem:[%s5762_s1 + $0x4b8] sm:$0xff]  ;;  %v3973_v0 = vld [vmem:[%s5762_s1 + $0x4c0] sm:$0xff] }
  0x48   :  { %6057 = vst [vmem:[#allocation131_spill] sm:$0xff] %v3963_v34  ;;  %6058 = vst [vmem:[#allocation132_spill] sm:$0xff] %v3968_v32  ;;  %v3978_v33 = vld [vmem:[%s5762_s1 + $0x4c8] sm:$0xff]  ;;  %v3983_v1 = vld [vmem:[%s5762_s1 + $0x4d0] sm:$0xff] }
  0x49   :  { %6059 = vst [vmem:[#allocation133_spill] sm:$0xff] %v3973_v0  ;;  %6060 = vst [vmem:[#allocation134_spill] sm:$0xff] %v3978_v33  ;;  %v3988_v34 = vld [vmem:[%s5762_s1 + $0x4d8] sm:$0xff]  ;;  %v3993_v32 = vld [vmem:[%s5762_s1 + $0x4e0] sm:$0xff] }
  0x4a   :  { %6061 = vst [vmem:[#allocation135_spill] sm:$0xff] %v3983_v1  ;;  %6062 = vst [vmem:[#allocation136_spill] sm:$0xff] %v3988_v34  ;;  %v3998_v0 = vld [vmem:[%s5762_s1 + $0x4e8] sm:$0xff]  ;;  %v4003_v33 = vld [vmem:[%s5762_s1 + $0x4f0] sm:$0xff] }
  0x4b   :  { %6063 = vst [vmem:[#allocation137_spill] sm:$0xff] %v3993_v32  ;;  %6064 = vst [vmem:[#allocation138_spill] sm:$0xff] %v3998_v0  ;;  %v4008_v1 = vld [vmem:[%s5762_s1 + $0x4f8] sm:$0xff]  ;;  %v4013_v34 = vld [vmem:[%s5762_s1 + $0x500] sm:$0xff] }
  0x4c   :  { %6065 = vst [vmem:[#allocation139_spill] sm:$0xff] %v4003_v33  ;;  %6066 = vst [vmem:[#allocation140_spill] sm:$0xff] %v4008_v1  ;;  %v4018_v32 = vld [vmem:[%s5762_s1 + $0x508] sm:$0xff]  ;;  %v4023_v0 = vld [vmem:[%s5762_s1 + $0x510] sm:$0xff] }
  0x4d   :  { %6067 = vst [vmem:[#allocation141_spill] sm:$0xff] %v4013_v34  ;;  %6068 = vst [vmem:[#allocation142_spill] sm:$0xff] %v4018_v32  ;;  %v4028_v33 = vld [vmem:[%s5762_s1 + $0x518] sm:$0xff]  ;;  %v4033_v1 = vld [vmem:[%s5762_s1 + $0x520] sm:$0xff] }
  0x4e   :  { %6069 = vst [vmem:[#allocation143_spill] sm:$0xff] %v4023_v0  ;;  %6070 = vst [vmem:[#allocation144_spill] sm:$0xff] %v4028_v33  ;;  %v4038_v34 = vld [vmem:[%s5762_s1 + $0x528] sm:$0xff]  ;;  %v4043_v32 = vld [vmem:[%s5762_s1 + $0x530] sm:$0xff] }
  0x4f   :  { %6071 = vst [vmem:[#allocation145_spill] sm:$0xff] %v4033_v1  ;;  %6072 = vst [vmem:[#allocation146_spill] sm:$0xff] %v4038_v34  ;;  %v4048_v0 = vld [vmem:[%s5762_s1 + $0x538] sm:$0xff]  ;;  %v4053_v33 = vld [vmem:[%s5762_s1 + $0x540] sm:$0xff] }
  0x50   :  { %6073 = vst [vmem:[#allocation147_spill] sm:$0xff] %v4043_v32  ;;  %6074 = vst [vmem:[#allocation148_spill] sm:$0xff] %v4048_v0  ;;  %v4058_v1 = vld [vmem:[%s5762_s1 + $0x548] sm:$0xff]  ;;  %v4063_v34 = vld [vmem:[%s5762_s1 + $0x550] sm:$0xff] }
  0x51   :  { %6075 = vst [vmem:[#allocation149_spill] sm:$0xff] %v4053_v33  ;;  %6076 = vst [vmem:[#allocation150_spill] sm:$0xff] %v4058_v1  ;;  %v4068_v32 = vld [vmem:[%s5762_s1 + $0x558] sm:$0xff]  ;;  %v4073_v0 = vld [vmem:[%s5762_s1 + $0x560] sm:$0xff] }
  0x52   :  { %6077 = vst [vmem:[#allocation151_spill] sm:$0xff] %v4063_v34  ;;  %6078 = vst [vmem:[#allocation152_spill] sm:$0xff] %v4068_v32  ;;  %v4078_v33 = vld [vmem:[%s5762_s1 + $0x568] sm:$0xff]  ;;  %v4083_v1 = vld [vmem:[%s5762_s1 + $0x570] sm:$0xff] }
  0x53   :  { %6079 = vst [vmem:[#allocation153_spill] sm:$0xff] %v4073_v0  ;;  %6080 = vst [vmem:[#allocation154_spill] sm:$0xff] %v4078_v33  ;;  %v4088_v34 = vld [vmem:[%s5762_s1 + $0x578] sm:$0xff]  ;;  %v4093_v32 = vld [vmem:[%s5762_s1 + $0x580] sm:$0xff] }
  0x54   :  { %6081 = vst [vmem:[#allocation155_spill] sm:$0xff] %v4083_v1  ;;  %6082 = vst [vmem:[#allocation156_spill] sm:$0xff] %v4088_v34  ;;  %v4098_v0 = vld [vmem:[%s5762_s1 + $0x588] sm:$0xff]  ;;  %v4103_v33 = vld [vmem:[%s5762_s1 + $0x590] sm:$0xff] }
  0x55   :  { %6083 = vst [vmem:[#allocation157_spill] sm:$0xff] %v4093_v32  ;;  %6084 = vst [vmem:[#allocation158_spill] sm:$0xff] %v4098_v0  ;;  %v4108_v1 = vld [vmem:[%s5762_s1 + $0x598] sm:$0xff]  ;;  %v4113_v34 = vld [vmem:[%s5762_s1 + $0x5a0] sm:$0xff] }
  0x56   :  { %6085 = vst [vmem:[#allocation159_spill] sm:$0xff] %v4103_v33  ;;  %6086 = vst [vmem:[#allocation160_spill] sm:$0xff] %v4108_v1  ;;  %v4118_v32 = vld [vmem:[%s5762_s1 + $0x5a8] sm:$0xff]  ;;  %v4123_v0 = vld [vmem:[%s5762_s1 + $0x5b0] sm:$0xff] }
  0x57   :  { %6087 = vst [vmem:[#allocation161_spill] sm:$0xff] %v4113_v34  ;;  %6088 = vst [vmem:[#allocation162_spill] sm:$0xff] %v4118_v32  ;;  %v4128_v33 = vld [vmem:[%s5762_s1 + $0x5b8] sm:$0xff]  ;;  %v4133_v1 = vld [vmem:[%s5762_s1 + $0x5c0] sm:$0xff] }
  0x58   :  { %6089 = vst [vmem:[#allocation163_spill] sm:$0xff] %v4123_v0  ;;  %6090 = vst [vmem:[#allocation164_spill] sm:$0xff] %v4128_v33  ;;  %v4138_v34 = vld [vmem:[%s5762_s1 + $0x5c8] sm:$0xff]  ;;  %v4143_v32 = vld [vmem:[%s5762_s1 + $0x5d0] sm:$0xff] }
  0x59   :  { %6091 = vst [vmem:[#allocation165_spill] sm:$0xff] %v4133_v1  ;;  %6092 = vst [vmem:[#allocation166_spill] sm:$0xff] %v4138_v34  ;;  %v4148_v0 = vld [vmem:[%s5762_s1 + $0x5d8] sm:$0xff]  ;;  %v4153_v33 = vld [vmem:[%s5762_s1 + $0x5e0] sm:$0xff] }
  0x5a   :  { %6093 = vst [vmem:[#allocation167_spill] sm:$0xff] %v4143_v32  ;;  %6094 = vst [vmem:[#allocation168_spill] sm:$0xff] %v4148_v0  ;;  %v4158_v1 = vld [vmem:[%s5762_s1 + $0x5e8] sm:$0xff]  ;;  %v4163_v34 = vld [vmem:[%s5762_s1 + $0x5f0] sm:$0xff] }
  0x5b   :  { %6095 = vst [vmem:[#allocation169_spill] sm:$0xff] %v4153_v33  ;;  %6096 = vst [vmem:[#allocation170_spill] sm:$0xff] %v4158_v1  ;;  %v4168_v32 = vld [vmem:[%s5762_s1 + $0x5f8] sm:$0xff] }
  0x5c   :  { %6097 = vst [vmem:[#allocation171_spill] sm:$0xff] %v4163_v34  ;;  %6098 = vst [vmem:[#allocation172_spill] sm:$0xff] %v4168_v32 }
  0x5d   :  { %446 = vsyncadd [#allocation5], 24576  ;;  %v4173_v0 = vld [vmem:[%s5763_s2] sm:$0xff]  ;;  %v4178_v33 = vld [vmem:[%s5763_s2 + $0x8] sm:$0xff] }
  0x5e   :  { %6099 = vst [vmem:[#allocation173_spill] sm:$0xff] %v4173_v0  ;;  %6100 = vst [vmem:[#allocation174_spill] sm:$0xff] %v4178_v33  ;;  %v4183_v1 = vld [vmem:[%s5763_s2 + $0x10] sm:$0xff]  ;;  %v4188_v34 = vld [vmem:[%s5763_s2 + $0x18] sm:$0xff] }
  0x5f   :  { %6101 = vst [vmem:[#allocation175_spill] sm:$0xff] %v4183_v1  ;;  %6102 = vst [vmem:[#allocation176_spill] sm:$0xff] %v4188_v34  ;;  %v4193_v32 = vld [vmem:[%s5763_s2 + $0x20] sm:$0xff]  ;;  %v4198_v0 = vld [vmem:[%s5763_s2 + $0x28] sm:$0xff] }
  0x60   :  { %6103 = vst [vmem:[#allocation177_spill] sm:$0xff] %v4193_v32  ;;  %6104 = vst [vmem:[#allocation178_spill] sm:$0xff] %v4198_v0  ;;  %v4203_v33 = vld [vmem:[%s5763_s2 + $0x30] sm:$0xff]  ;;  %v4208_v1 = vld [vmem:[%s5763_s2 + $0x38] sm:$0xff] }
  0x61   :  { %6105 = vst [vmem:[#allocation179_spill] sm:$0xff] %v4203_v33  ;;  %6106 = vst [vmem:[#allocation180_spill] sm:$0xff] %v4208_v1  ;;  %v4213_v34 = vld [vmem:[%s5763_s2 + $0x40] sm:$0xff]  ;;  %v4218_v32 = vld [vmem:[%s5763_s2 + $0x48] sm:$0xff] }
  0x62   :  { %6107 = vst [vmem:[#allocation181_spill] sm:$0xff] %v4213_v34  ;;  %6108 = vst [vmem:[#allocation182_spill] sm:$0xff] %v4218_v32  ;;  %v4223_v0 = vld [vmem:[%s5763_s2 + $0x50] sm:$0xff]  ;;  %v4228_v33 = vld [vmem:[%s5763_s2 + $0x58] sm:$0xff] }
  0x63   :  { %6109 = vst [vmem:[#allocation183_spill] sm:$0xff] %v4223_v0  ;;  %6110 = vst [vmem:[#allocation184_spill] sm:$0xff] %v4228_v33  ;;  %v4233_v1 = vld [vmem:[%s5763_s2 + $0x60] sm:$0xff]  ;;  %v4238_v34 = vld [vmem:[%s5763_s2 + $0x68] sm:$0xff] }
  0x64   :  { %6111 = vst [vmem:[#allocation185_spill] sm:$0xff] %v4233_v1  ;;  %6112 = vst [vmem:[#allocation186_spill] sm:$0xff] %v4238_v34  ;;  %v4243_v32 = vld [vmem:[%s5763_s2 + $0x70] sm:$0xff]  ;;  %v4248_v0 = vld [vmem:[%s5763_s2 + $0x78] sm:$0xff] }
  0x65   :  { %6113 = vst [vmem:[#allocation187_spill] sm:$0xff] %v4243_v32  ;;  %6114 = vst [vmem:[#allocation188_spill] sm:$0xff] %v4248_v0  ;;  %v4253_v33 = vld [vmem:[%s5763_s2 + $0x80] sm:$0xff]  ;;  %v4258_v1 = vld [vmem:[%s5763_s2 + $0x88] sm:$0xff] }
  0x66   :  { %6115 = vst [vmem:[#allocation189_spill] sm:$0xff] %v4253_v33  ;;  %6116 = vst [vmem:[#allocation190_spill] sm:$0xff] %v4258_v1  ;;  %v4263_v34 = vld [vmem:[%s5763_s2 + $0x90] sm:$0xff]  ;;  %v4268_v32 = vld [vmem:[%s5763_s2 + $0x98] sm:$0xff] }
  0x67   :  { %6117 = vst [vmem:[#allocation191_spill] sm:$0xff] %v4263_v34  ;;  %6118 = vst [vmem:[#allocation192_spill] sm:$0xff] %v4268_v32  ;;  %v4273_v0 = vld [vmem:[%s5763_s2 + $0xa0] sm:$0xff]  ;;  %v4278_v33 = vld [vmem:[%s5763_s2 + $0xa8] sm:$0xff] }
  0x68   :  { %6119 = vst [vmem:[#allocation193_spill] sm:$0xff] %v4273_v0  ;;  %6120 = vst [vmem:[#allocation194_spill] sm:$0xff] %v4278_v33  ;;  %v4283_v1 = vld [vmem:[%s5763_s2 + $0xb0] sm:$0xff]  ;;  %v4288_v34 = vld [vmem:[%s5763_s2 + $0xb8] sm:$0xff] }
  0x69   :  { %6121 = vst [vmem:[#allocation195_spill] sm:$0xff] %v4283_v1  ;;  %6122 = vst [vmem:[#allocation196_spill] sm:$0xff] %v4288_v34  ;;  %v4293_v32 = vld [vmem:[%s5763_s2 + $0xc0] sm:$0xff]  ;;  %v4298_v0 = vld [vmem:[%s5763_s2 + $0xc8] sm:$0xff] }
  0x6a   :  { %6123 = vst [vmem:[#allocation197_spill] sm:$0xff] %v4293_v32  ;;  %6124 = vst [vmem:[#allocation198_spill] sm:$0xff] %v4298_v0  ;;  %v4303_v33 = vld [vmem:[%s5763_s2 + $0xd0] sm:$0xff]  ;;  %v4308_v1 = vld [vmem:[%s5763_s2 + $0xd8] sm:$0xff] }
  0x6b   :  { %6125 = vst [vmem:[#allocation199_spill] sm:$0xff] %v4303_v33  ;;  %6126 = vst [vmem:[#allocation200_spill] sm:$0xff] %v4308_v1  ;;  %v4313_v34 = vld [vmem:[%s5763_s2 + $0xe0] sm:$0xff]  ;;  %v4318_v32 = vld [vmem:[%s5763_s2 + $0xe8] sm:$0xff] }
  0x6c   :  { %6127 = vst [vmem:[#allocation201_spill] sm:$0xff] %v4313_v34  ;;  %6128 = vst [vmem:[#allocation202_spill] sm:$0xff] %v4318_v32  ;;  %v4323_v0 = vld [vmem:[%s5763_s2 + $0xf0] sm:$0xff]  ;;  %v4328_v33 = vld [vmem:[%s5763_s2 + $0xf8] sm:$0xff] }
  0x6d   :  { %6129 = vst [vmem:[#allocation203_spill] sm:$0xff] %v4323_v0  ;;  %6130 = vst [vmem:[#allocation204_spill] sm:$0xff] %v4328_v33  ;;  %v4333_v1 = vld [vmem:[%s5763_s2 + $0x100] sm:$0xff]  ;;  %v4338_v34 = vld [vmem:[%s5763_s2 + $0x108] sm:$0xff] }
  0x6e   :  { %6131 = vst [vmem:[#allocation205_spill] sm:$0xff] %v4333_v1  ;;  %6132 = vst [vmem:[#allocation206_spill] sm:$0xff] %v4338_v34  ;;  %v4343_v32 = vld [vmem:[%s5763_s2 + $0x110] sm:$0xff]  ;;  %v4348_v0 = vld [vmem:[%s5763_s2 + $0x118] sm:$0xff] }
  0x6f   :  { %6133 = vst [vmem:[#allocation207_spill] sm:$0xff] %v4343_v32  ;;  %6134 = vst [vmem:[#allocation208_spill] sm:$0xff] %v4348_v0  ;;  %v4353_v33 = vld [vmem:[%s5763_s2 + $0x120] sm:$0xff]  ;;  %v4358_v1 = vld [vmem:[%s5763_s2 + $0x128] sm:$0xff] }
  0x70   :  { %6135 = vst [vmem:[#allocation209_spill] sm:$0xff] %v4353_v33  ;;  %6136 = vst [vmem:[#allocation210_spill] sm:$0xff] %v4358_v1  ;;  %v4363_v34 = vld [vmem:[%s5763_s2 + $0x130] sm:$0xff]  ;;  %v4368_v32 = vld [vmem:[%s5763_s2 + $0x138] sm:$0xff] }
  0x71   :  { %6137 = vst [vmem:[#allocation211_spill] sm:$0xff] %v4363_v34  ;;  %6138 = vst [vmem:[#allocation212_spill] sm:$0xff] %v4368_v32  ;;  %v4373_v0 = vld [vmem:[%s5763_s2 + $0x140] sm:$0xff]  ;;  %v4378_v33 = vld [vmem:[%s5763_s2 + $0x148] sm:$0xff] }
  0x72   :  { %6139 = vst [vmem:[#allocation213_spill] sm:$0xff] %v4373_v0  ;;  %6140 = vst [vmem:[#allocation214_spill] sm:$0xff] %v4378_v33  ;;  %v4383_v1 = vld [vmem:[%s5763_s2 + $0x150] sm:$0xff]  ;;  %v4388_v34 = vld [vmem:[%s5763_s2 + $0x158] sm:$0xff] }
  0x73   :  { %6141 = vst [vmem:[#allocation215_spill] sm:$0xff] %v4383_v1  ;;  %6142 = vst [vmem:[#allocation216_spill] sm:$0xff] %v4388_v34  ;;  %v4393_v32 = vld [vmem:[%s5763_s2 + $0x160] sm:$0xff]  ;;  %v4398_v0 = vld [vmem:[%s5763_s2 + $0x168] sm:$0xff] }
  0x74   :  { %6143 = vst [vmem:[#allocation217_spill] sm:$0xff] %v4393_v32  ;;  %6144 = vst [vmem:[#allocation218_spill] sm:$0xff] %v4398_v0  ;;  %v4403_v33 = vld [vmem:[%s5763_s2 + $0x170] sm:$0xff]  ;;  %v4408_v1 = vld [vmem:[%s5763_s2 + $0x178] sm:$0xff] }
  0x75   :  { %6145 = vst [vmem:[#allocation219_spill] sm:$0xff] %v4403_v33  ;;  %6146 = vst [vmem:[#allocation220_spill] sm:$0xff] %v4408_v1  ;;  %v4413_v34 = vld [vmem:[%s5763_s2 + $0x180] sm:$0xff]  ;;  %v4418_v32 = vld [vmem:[%s5763_s2 + $0x188] sm:$0xff] }
  0x76   :  { %6147 = vst [vmem:[#allocation221_spill] sm:$0xff] %v4413_v34  ;;  %6148 = vst [vmem:[#allocation222_spill] sm:$0xff] %v4418_v32  ;;  %v4423_v0 = vld [vmem:[%s5763_s2 + $0x190] sm:$0xff]  ;;  %v4428_v33 = vld [vmem:[%s5763_s2 + $0x198] sm:$0xff] }
  0x77   :  { %6149 = vst [vmem:[#allocation223_spill] sm:$0xff] %v4423_v0  ;;  %6150 = vst [vmem:[#allocation224_spill] sm:$0xff] %v4428_v33  ;;  %v4433_v1 = vld [vmem:[%s5763_s2 + $0x1a0] sm:$0xff]  ;;  %v4438_v34 = vld [vmem:[%s5763_s2 + $0x1a8] sm:$0xff] }
  0x78   :  { %6151 = vst [vmem:[#allocation225_spill] sm:$0xff] %v4433_v1  ;;  %6152 = vst [vmem:[#allocation226_spill] sm:$0xff] %v4438_v34  ;;  %v4443_v32 = vld [vmem:[%s5763_s2 + $0x1b0] sm:$0xff]  ;;  %v4448_v0 = vld [vmem:[%s5763_s2 + $0x1b8] sm:$0xff] }
  0x79   :  { %6153 = vst [vmem:[#allocation227_spill] sm:$0xff] %v4443_v32  ;;  %6154 = vst [vmem:[#allocation228_spill] sm:$0xff] %v4448_v0  ;;  %v4453_v33 = vld [vmem:[%s5763_s2 + $0x1c0] sm:$0xff]  ;;  %v4458_v1 = vld [vmem:[%s5763_s2 + $0x1c8] sm:$0xff] }
  0x7a   :  { %6155 = vst [vmem:[#allocation229_spill] sm:$0xff] %v4453_v33  ;;  %6156 = vst [vmem:[#allocation230_spill] sm:$0xff] %v4458_v1  ;;  %v4463_v34 = vld [vmem:[%s5763_s2 + $0x1d0] sm:$0xff]  ;;  %v4468_v32 = vld [vmem:[%s5763_s2 + $0x1d8] sm:$0xff] }
  0x7b   :  { %6157 = vst [vmem:[#allocation231_spill] sm:$0xff] %v4463_v34  ;;  %6158 = vst [vmem:[#allocation232_spill] sm:$0xff] %v4468_v32  ;;  %v4473_v0 = vld [vmem:[%s5763_s2 + $0x1e0] sm:$0xff]  ;;  %v4478_v33 = vld [vmem:[%s5763_s2 + $0x1e8] sm:$0xff] }
  0x7c   :  { %6159 = vst [vmem:[#allocation233_spill] sm:$0xff] %v4473_v0  ;;  %6160 = vst [vmem:[#allocation234_spill] sm:$0xff] %v4478_v33  ;;  %v4483_v1 = vld [vmem:[%s5763_s2 + $0x1f0] sm:$0xff]  ;;  %v4488_v34 = vld [vmem:[%s5763_s2 + $0x1f8] sm:$0xff] }
  0x7d   :  { %6161 = vst [vmem:[#allocation235_spill] sm:$0xff] %v4483_v1  ;;  %6162 = vst [vmem:[#allocation236_spill] sm:$0xff] %v4488_v34 }
  0x7e   :  { %616 = vsyncadd [#allocation5 + $0x1], 8192  ;;  %v5902_v32 = vlaneseq  ;;  %v5903_v0 = vmov 0.0   ;;  %951 = vmatprep.subr.mxu0 %v3368_v31  ;;  %1040 = vmatprep.subr.mxu1 %v3688_v63 }
  0x80   :  { %vm619_vm0 = vcmp.lt.s32.totalorder %v5902_v32, 256 }
  0x81   :  { %622 = vst.msk [vmem:[#allocation4 + $0x7] ss:$8 sm:$0x3] %vm619_vm0, %v5903_v0  ;;  %625 = vst.msk [vmem:[#allocation4 + $0x47] ss:$8 sm:$0x3] %vm619_vm0, %v5903_v0 }
  0x82   :  { %628 = vst.msk [vmem:[#allocation4 + $0x30] ss:$8 sm:$0x3] %vm619_vm0, %v5903_v0  ;;  %631 = vst.msk [vmem:[#allocation4 + $0x70] ss:$8 sm:$0x3] %vm619_vm0, %v5903_v0 }
  0x83   :  { %3164 = dma.done.wait [#allocation5], 24576 }
  0x84   :  { %3165 = vsyncadd [#allocation5], 4294942720  ;;  %952 = vmatpush1.msra.mxu0 %v3363_v30  ;;  %1041 = vmatpush1.msra.mxu1 %v3683_v62  ;;  %v4514_v32 = vld [vmem:[%s5761_s0 + $0x8] sm:$0xff]  ;;  %v4519_v0 = vld [vmem:[%s5761_s0] sm:$0xff]  ;;  %vm677_vm1 = vcmask 1040384   ;;  %vm730_vm2 = vcmask 1046528  }
  0x85   :  { %953 = vmatprep.subr.mxu0 %v3358_v29  ;;  %1042 = vmatprep.subr.mxu1 %v3678_v61  ;;  %646 = vst [vmem:[#allocation4 + $0x18] sm:$0xff] %v4514_v32  ;;  %645 = vst [vmem:[#allocation4 + $0x10] sm:$0xff] %v4519_v0  ;;  %v4528_v33 = vld [vmem:[%s5761_s0 + $0x18] sm:$0xff]  ;;  %v4536_v1 = vld [vmem:[%s5761_s0 + $0x10] sm:$0xff]  ;;  %vm1482_vm3 = vcmask 261120  }
  0x86   :  { %954 = vmatpush1.msra.mxu0 %v3353_v28  ;;  %1043 = vmatpush1.msra.mxu1 %v3673_v60  ;;  %648 = vst [vmem:[#allocation4 + $0x28] sm:$0xff] %v4528_v33  ;;  %v4541_v34 = vld [vmem:[%s5761_s0 + $0x28] sm:$0xff]  ;;  %647 = vst [vmem:[#allocation4 + $0x20] sm:$0xff] %v4536_v1  ;;  %v6198_v28 = vld [vmem:[#allocation58_spill] sm:$0xff] }
  0x87   :  { %955 = vmatprep.subr.mxu0 %v3348_v27  ;;  %1044 = vmatprep.subr.mxu1 %v3668_v59  ;;  %650 = vst [vmem:[#allocation4 + $0x58] sm:$0xff] %v4541_v34  ;;  %v6196_v27 = vld [vmem:[#allocation59_spill] sm:$0xff]  ;;  %v6200_v29 = vld [vmem:[#allocation57_spill] sm:$0xff]  ;;  %v6202_v30 = vld [vmem:[#allocation56_spill] sm:$0xff] }
  0x88   :  { %956 = vmatpush1.msra.mxu0 %v3343_v26  ;;  %1045 = vmatpush1.msra.mxu1 %v3663_v58  ;;  %v6194_v26 = vld [vmem:[#allocation60_spill] sm:$0xff]  ;;  %v6204_v31 = vld [vmem:[#allocation55_spill] sm:$0xff] }
  0x89   :  { %957 = vmatprep.subr.mxu0 %v3338_v25  ;;  %1046 = vmatprep.subr.mxu1 %v3658_v57  ;;  %v6192_v25 = vld [vmem:[#allocation61_spill] sm:$0xff] }
  0x8a   :  { %958 = vmatpush1.msra.mxu0 %v3333_v24  ;;  %1047 = vmatpush1.msra.mxu1 %v3653_v56  ;;  %v6190_v24 = vld [vmem:[#allocation62_spill] sm:$0xff] }
  0x8b   :  { %959 = vmatprep.subr.mxu0 %v3328_v23  ;;  %1048 = vmatprep.subr.mxu1 %v3648_v55  ;;  %v4563_v23 = vld [vmem:[%s5761_s0 + $0x30] sm:$0xff] }
  0x8c   :  { %960 = vmatpush1.msra.mxu0 %v3323_v22  ;;  %1049 = vmatpush1.msra.mxu1 %v3643_v54  ;;  %v4550_v22 = vld [vmem:[%s5761_s0 + $0x20] sm:$0xff]  ;;  %651 = vst [vmem:[#allocation4 + $0x60] sm:$0xff] %v4563_v23 }
  0x8d   :  { %961 = vmatprep.subr.mxu0 %v3318_v21  ;;  %1050 = vmatprep.subr.mxu1 %v3638_v53  ;;  %649 = vst [vmem:[#allocation4 + $0x50] sm:$0xff] %v4550_v22  ;;  %v4558_v21 = vld [vmem:[%s5761_s0 + $0x38] sm:$0xff] }
  0x8e   :  { %962 = vmatpush1.msra.mxu0 %v3313_v20  ;;  %1051 = vmatpush1.msra.mxu1 %v3633_v52  ;;  %652 = vst [vmem:[#allocation4 + $0x68] sm:$0xff] %v4558_v21  ;;  %v6188_v20 = vld [vmem:[#allocation63_spill] sm:$0xff] }
  0x8f   :  { %963 = vmatprep.subr.mxu0 %v3308_v19  ;;  %1052 = vmatprep.subr.mxu1 %v3628_v51  ;;  %v6186_v19 = vld [vmem:[#allocation64_spill] sm:$0xff] }
  0x90   :  { %964 = vmatpush1.msra.mxu0 %v3303_v18  ;;  %1053 = vmatpush1.msra.mxu1 %v3623_v50  ;;  %v6184_v18 = vld [vmem:[#allocation65_spill] sm:$0xff] }
  0x91   :  { %965 = vmatprep.subr.mxu0 %v3298_v17  ;;  %1054 = vmatprep.subr.mxu1 %v3618_v49  ;;  %v6182_v17 = vld [vmem:[#allocation66_spill] sm:$0xff] }
  0x92   :  { %966 = vmatpush1.msra.mxu0 %v3293_v16  ;;  %1055 = vmatpush1.msra.mxu1 %v3613_v48  ;;  %v6180_v16 = vld [vmem:[#allocation67_spill] sm:$0xff] }
  0x93   :  { %967 = vmatprep.subr.mxu0 %v3288_v15  ;;  %1056 = vmatprep.subr.mxu1 %v3608_v47  ;;  %v6178_v15 = vld [vmem:[#allocation68_spill] sm:$0xff] }
  0x94   :  { %968 = vmatpush1.msra.mxu0 %v3283_v14  ;;  %1057 = vmatpush1.msra.mxu1 %v3603_v46  ;;  %v6176_v14 = vld [vmem:[#allocation69_spill] sm:$0xff] }
  0x95   :  { %969 = vmatprep.subr.mxu0 %v3278_v13  ;;  %1058 = vmatprep.subr.mxu1 %v3598_v45  ;;  %v6174_v13 = vld [vmem:[#allocation70_spill] sm:$0xff] }
  0x96   :  { %970 = vmatpush1.msra.mxu0 %v3273_v12  ;;  %1059 = vmatpush1.msra.mxu1 %v3593_v44  ;;  %v6172_v12 = vld [vmem:[#allocation71_spill] sm:$0xff] }
  0x97   :  { %971 = vmatprep.subr.mxu0 %v3268_v11  ;;  %1060 = vmatprep.subr.mxu1 %v3588_v43  ;;  %v6170_v11 = vld [vmem:[#allocation72_spill] sm:$0xff] }
  0x98   :  { %972 = vmatpush1.msra.mxu0 %v3263_v10  ;;  %1061 = vmatpush1.msra.mxu1 %v3583_v42  ;;  %v6168_v10 = vld [vmem:[#allocation73_spill] sm:$0xff] }
  0x99   :  { %973 = vmatprep.subr.mxu0 %v3258_v9  ;;  %1062 = vmatprep.subr.mxu1 %v3578_v41  ;;  %v6166_v9 = vld [vmem:[#allocation10_spill] sm:$0xff] }
  0x9a   :  { %974 = vmatpush1.msra.mxu0 %v3253_v8  ;;  %1063 = vmatpush1.msra.mxu1 %v3573_v40  ;;  %v6164_v8 = vld [vmem:[#allocation11_spill] sm:$0xff] }
  0x9b   :  { %975 = vmatprep.subr.mxu0 %v3248_v7  ;;  %1064 = vmatprep.subr.mxu1 %v3568_v39  ;;  %v6163_v7 = vld [vmem:[#allocation76_spill] sm:$0xff] }
  0x9c   :  { %976 = vmatpush1.msra.mxu0 %v3243_v6  ;;  %1065 = vmatpush1.msra.mxu1 %v3563_v38  ;;  %v6165_v6 = vld [vmem:[#allocation75_spill] sm:$0xff] }
  0x9d   :  { %977 = vmatprep.subr.mxu0 %v3238_v5  ;;  %1066 = vmatprep.subr.mxu1 %v3558_v37  ;;  %v6167_v5 = vld [vmem:[#allocation74_spill] sm:$0xff] }
  0x9e   :  { %978 = vmatpush1.msra.mxu0 %v3233_v4  ;;  %1067 = vmatpush1.msra.mxu1 %v3553_v36  ;;  %v6169_v4 = vld [vmem:[#allocation108_spill] sm:$0xff] }
  0x9f   :  { %979 = vmatprep.subr.mxu0 %v3228_v3  ;;  %1068 = vmatprep.subr.mxu1 %v3548_v35  ;;  %v6171_v3 = vld [vmem:[#allocation107_spill] sm:$0xff] }
  0xa0   :  { %980 = vmatpush1.msra.mxu0 %v3223_v2  ;;  %1069 = vmatpush1.msra.mxu1 %v6163_v7  ;;  %v6173_v2 = vld [vmem:[#allocation106_spill] sm:$0xff] }
  0xa1   :  { %981 = vmatprep.subr.mxu0 %v6164_v8  ;;  %1070 = vmatprep.subr.mxu1 %v6165_v6  ;;  %v6175_v8 = vld [vmem:[#allocation105_spill] sm:$0xff] }
  0xa2   :  { %982 = vmatpush1.msra.mxu0 %v6166_v9  ;;  %1071 = vmatpush1.msra.mxu1 %v6167_v5  ;;  %v6177_v9 = vld [vmem:[#allocation104_spill] sm:$0xff] }
  0xa3   :  { %983 = vmatprep.subr.mxu0 %v6168_v10  ;;  %1072 = vmatprep.subr.mxu1 %v6169_v4  ;;  %v6179_v10 = vld [vmem:[#allocation103_spill] sm:$0xff] }
  0xa4   :  { %984 = vmatpush2.msra.mxu0 %v6170_v11  ;;  %1073 = vmatpush2.msra.mxu1 %v6171_v3  ;;  %v6181_v11 = vld [vmem:[#allocation102_spill] sm:$0xff] }
  0xa5   :  { %985 = vmatprep.subr.mxu0 %v6172_v12  ;;  %1074 = vmatprep.subr.mxu1 %v6173_v2  ;;  %v6183_v12 = vld [vmem:[#allocation101_spill] sm:$0xff] }
  0xa6   :  { %986 = vmatpush2.msra.mxu0 %v6174_v13  ;;  %1075 = vmatpush2.msra.mxu1 %v6175_v8  ;;  %v6185_v13 = vld [vmem:[#allocation100_spill] sm:$0xff] }
  0xa7   :  { %987 = vmatprep.subr.mxu0 %v6176_v14  ;;  %1076 = vmatprep.subr.mxu1 %v6177_v9  ;;  %v6187_v14 = vld [vmem:[#allocation99_spill] sm:$0xff] }
  0xa8   :  { %988 = vmatpush2.msra.mxu0 %v6178_v15  ;;  %1077 = vmatpush2.msra.mxu1 %v6179_v10  ;;  %v6189_v15 = vld [vmem:[#allocation98_spill] sm:$0xff] }
  0xa9   :  { %989 = vmatprep.subr.mxu0 %v6180_v16  ;;  %1078 = vmatprep.subr.mxu1 %v6181_v11  ;;  %v6191_v16 = vld [vmem:[#allocation97_spill] sm:$0xff] }
  0xaa   :  { %990 = vmatpush2.msra.mxu0 %v6182_v17  ;;  %1079 = vmatpush2.msra.mxu1 %v6183_v12  ;;  %v6193_v17 = vld [vmem:[#allocation96_spill] sm:$0xff]  ;;  %v6229_v12 = vld [vmem:[#allocation78_spill] sm:$0xff] }
  0xab   :  { %991 = vmatprep.subr.mxu0 %v6184_v18  ;;  %1080 = vmatprep.subr.mxu1 %v6185_v13  ;;  %v6195_v18 = vld [vmem:[#allocation95_spill] sm:$0xff]  ;;  %v6226_v13 = vld [vmem:[#allocation44_spill] sm:$0xff] }
  0xac   :  { %992 = vmatpush2.msra.mxu0 %v6186_v19  ;;  %1081 = vmatpush2.msra.mxu1 %v6187_v14  ;;  %v6197_v19 = vld [vmem:[#allocation94_spill] sm:$0xff]  ;;  %v6225_v14 = vld [vmem:[#allocation80_spill] sm:$0xff] }
  0xad   :  { %993 = vmatprep.subr.mxu0 %v6188_v20  ;;  %1082 = vmatprep.subr.mxu1 %v6189_v15  ;;  %v6199_v20 = vld [vmem:[#allocation93_spill] sm:$0xff]  ;;  %v6222_v15 = vld [vmem:[#allocation46_spill] sm:$0xff] }
  0xae   :  { %994 = vmatpush2.msra.mxu0 %v6190_v24  ;;  %1083 = vmatpush2.msra.mxu1 %v6191_v16  ;;  %v6201_v24 = vld [vmem:[#allocation92_spill] sm:$0xff] }
  0xaf   :  { %995 = vmatprep.subr.mxu0 %v6192_v25  ;;  %1084 = vmatprep.subr.mxu1 %v6193_v17  ;;  %v6203_v25 = vld [vmem:[#allocation91_spill] sm:$0xff]  ;;  %v6216_v17 = vld [vmem:[#allocation49_spill] sm:$0xff]  ;;  %v6218_v16 = vld [vmem:[#allocation48_spill] sm:$0xff] }
  0xb0   :  { %996 = vmatpush2.msra.mxu0 %v6194_v26  ;;  %1085 = vmatpush2.msra.mxu1 %v6195_v18  ;;  %v6205_v26 = vld [vmem:[#allocation90_spill] sm:$0xff] }
  0xb1   :  { %997 = vmatprep.subr.mxu0 %v6196_v27  ;;  %1086 = vmatprep.subr.mxu1 %v6197_v19  ;;  %v6206_v18 = vld [vmem:[#allocation54_spill] sm:$0xff]  ;;  %v6207_v27 = vld [vmem:[#allocation89_spill] sm:$0xff] }
  0xb2   :  { %998 = vmatpush2.msra.mxu0 %v6198_v28  ;;  %1087 = vmatpush2.msra.mxu1 %v6199_v20  ;;  %v6208_v19 = vld [vmem:[#allocation53_spill] sm:$0xff]  ;;  %v6209_v28 = vld [vmem:[#allocation88_spill] sm:$0xff] }
  0xb3   :  { %999 = vmatprep.subr.mxu0 %v6200_v29  ;;  %1088 = vmatprep.subr.mxu1 %v6201_v24  ;;  %v6210_v20 = vld [vmem:[#allocation52_spill] sm:$0xff]  ;;  %v6211_v29 = vld [vmem:[#allocation87_spill] sm:$0xff] }
  0xb4   :  { %1000 = vmatpush2.msra.mxu0 %v6202_v30  ;;  %1089 = vmatpush2.msra.mxu1 %v6203_v25  ;;  %v654_v24 = vld [vmem:[#allocation4 + $0x8] sm:$0x80]  ;;  %v6213_v25 = vld [vmem:[#allocation86_spill] sm:$0xff] }
  0xb5   :  { %1001 = vmatprep.subr.mxu0 %v6204_v31  ;;  %1090 = vmatprep.subr.mxu1 %v6205_v26  ;;  %v6212_v30 = vld [vmem:[#allocation51_spill] sm:$0xff]  ;;  %v6214_v31 = vld [vmem:[#allocation50_spill] sm:$0xff]  ;;  %v6215_v26 = vld [vmem:[#allocation85_spill] sm:$0xff] }
  0xb6   :  { %1002 = vmatpush2.msra.mxu0 %v6206_v18  ;;  %1091 = vmatpush2.msra.mxu1 %v6207_v27  ;;  %v653_v18 = vld [vmem:[#allocation4] sm:$0x80]  ;;  %v6217_v27 = vld [vmem:[#allocation84_spill] sm:$0xff] }
  0xb7   :  { %1003 = vmatprep.subr.mxu0 %v6208_v19  ;;  %1092 = vmatprep.subr.mxu1 %v6209_v28  ;;  %v681_v19 = vrot.slane %v654_v24, 7  ;;  %v682_v28 = vrot.slane %v4514_v32, 7 }
  0xb8   :  { %1004 = vmatpush2.msra.mxu0 %v6210_v20  ;;  %1093 = vmatpush2.msra.mxu1 %v6211_v29  ;;  %v658_v20 = vld [vmem:[#allocation4 + $0x28] sm:$0x7f] }
  0xb9   :  { %1005 = vmatprep.subr.mxu0 %v6212_v30  ;;  %1094 = vmatprep.subr.mxu1 %v6213_v25  ;;  %v6219_v29 = vld [vmem:[#allocation83_spill] sm:$0xff]  ;;  %v6221_v25 = vld [vmem:[#allocation82_spill] sm:$0xff]  ;;  %v686_v24 = vrot.slane %v658_v20, 7 }
  0xba   :  { %1006 = vmatpush2.msra.mxu0 %v6214_v31  ;;  %1095 = vmatpush2.msra.mxu1 %v6215_v26  ;;  %v6220_v30 = vld [vmem:[#allocation47_spill] sm:$0xff]  ;;  %v678_v31 = vrot.slane %v653_v18, 7  ;;  %v679_v26 = vrot.slane %v4519_v0, 7 }
  0xbb   :  { %1007 = vmatprep.subr.mxu0 %v6216_v17  ;;  %1096 = vmatprep.subr.mxu1 %v6217_v27  ;;  %v6223_v17 = vld [vmem:[#allocation81_spill] sm:$0xff]  ;;  %v6228_v18 = vld [vmem:[#allocation43_spill] sm:$0xff]  ;;  %v687_v20 = vsel %vm677_vm1, %v682_v28, %v686_v24  ;;  %v663_v24 = vld [vmem:[#allocation4 + $0x60] sm:$0x7f] }
  0xbc   :  { %1008 = vmatpush2.msra.mxu0 %v6218_v16  ;;  %1097 = vmatpush2.msra.mxu1 %v6219_v29  ;;  %v6224_v27 = vld [vmem:[#allocation45_spill] sm:$0xff]  ;;  %v683_v16 = vsel %vm677_vm1, %v681_v19, %v682_v28  ;;  %v657_v29 = vld [vmem:[#allocation4 + $0x20] sm:$0x7f] }
  0xbd   :  { %1009 = vmatprep.subr.mxu0 %v6220_v30  ;;  %1098 = vmatprep.subr.mxu1 %v6221_v25  ;;  %v6227_v30 = vld [vmem:[#allocation79_spill] sm:$0xff] }
  0xbe   :  { %1010 = vmatpush2.msra.mxu0 %v6222_v15  ;;  %1099 = vmatpush2.msra.mxu1 %v6223_v17  ;;  %v660_v25 = vld [vmem:[#allocation4 + $0x48] sm:$0x80]  ;;  %v680_v15 = vsel %vm677_vm1, %v678_v31, %v679_v26  ;;  %v6230_v17 = vld [vmem:[#allocation42_spill] sm:$0xff] }
  0xbf   :  { %1011 = vmatprep.subr.mxu0 %v6224_v27  ;;  %1100 = vmatprep.subr.mxu1 %v6225_v14  ;;  %v684_v27 = vrot.slane %v657_v29, 7  ;;  %v6231_v14 = vld [vmem:[#allocation77_spill] sm:$0xff]  ;;  %v691_v19 = vrot.slane %v660_v25, 7  ;;  %v6233_v31 = vld [vmem:[#allocation139_spill] sm:$0xff]  ;;  %v689_v29 = vrot.slane %v4550_v22, 7  ;;  %v6234_v25 = vld [vmem:[#allocation138_spill] sm:$0xff] }
  0xc0   :  { %1012 = vmatpush2.msra.mxu0 %v6226_v13  ;;  %1101 = vmatpush2.msra.mxu1 %v6227_v30  ;;  %v692_v13 = vrot.slane %v4541_v34, 7  ;;  %v659_v30 = vld [vmem:[#allocation4 + $0x40] sm:$0x80] }
  0xc1   :  { %1013 = vmatprep.subr.mxu0 %v6228_v18  ;;  %1102 = vmatprep.subr.mxu1 %v6229_v12  ;;  %v664_v18 = vld [vmem:[#allocation4 + $0x68] sm:$0x7f]  ;;  %v6232_v12 = vld [vmem:[#allocation140_spill] sm:$0xff]  ;;  %v688_v28 = vrot.slane %v659_v30, 7  ;;  %v6238_v30 = vld [vmem:[#allocation134_spill] sm:$0xff] }
  0xc2   :  { %1014 = vmatpush2.msra.mxu0 %v6230_v17  ;;  %1015 = vmatprep.mubr.f32.mxu0 %v683_v16  ;;  %v685_v16 = vsel %vm677_vm1, %v679_v26, %v684_v27  ;;  %v694_v27 = vrot.slane %v663_v24, 7  ;;  %v6242_v24 = vld [vmem:[#allocation130_spill] sm:$0xff] }
  0xc3   :  { %1103 = vmatpush2.msra.mxu1 %v6231_v14  ;;  %1104 = vmatprep.mubr.f32.mxu1 %v4514_v32  ;;  %v693_v32 = vsel %vm677_vm1, %v691_v19, %v692_v13  ;;  %v690_v26 = vsel %vm677_vm1, %v688_v28, %v689_v29  ;;  %v5935_v19 = vrot.slane %v4528_v33, 1 }
  0xc4   :  { %1016 = vmatmul.mubr.f32.vlgmr.msra.gmra.mxu0 %v680_v15  ;;  %1105 = vmatmul.mubr.f32.vlgmr.msra.gmra.mxu1 %v4519_v0  ;;  %v696_v15 = vrot.slane %v664_v18, 7  ;;  %v6235_v0 = vld [vmem:[#allocation137_spill] sm:$0xff]  ;;  %v695_v28 = vsel %vm677_vm1, %v689_v29, %v694_v27  ;;  %v6249_v27 = vld [vmem:[#allocation123_spill] sm:$0xff] }
  0xc5   :  { %1129 = vmatprep.subr.mxu0 %v6232_v12  ;;  %1021 = vmatprep.mubr.f32.mxu0 %v687_v20  ;;  %v711_v20 = vld [vmem:[#allocation4 + $0x18] sm:$0xfe]  ;;  %v6236_v12 = vld [vmem:[#allocation136_spill] sm:$0xff] }
  0xc6   :  { %1130 = vmatpush1.msra.mxu0 %v6233_v31  ;;  %1110 = vmatprep.mubr.f32.mxu1 %v4528_v33  ;;  %v6237_v31 = vld [vmem:[#allocation135_spill] sm:$0xff]  ;;  %v697_v18 = vsel %vm677_vm1, %v692_v13, %v696_v15  ;;  %v6247_v29 = vld [vmem:[#allocation125_spill] sm:$0xff] }
  0xc7   :  { %1131 = vmatprep.subr.mxu0 %v6234_v25  ;;  %v6239_v25 = vld [vmem:[#allocation133_spill] sm:$0xff]  ;;  %v6245_v15 = vld [vmem:[#allocation127_spill] sm:$0xff] }
  0xc8   :  { %1132 = vmatpush1.msra.mxu0 %v6235_v0  ;;  %1111 = vmatmul.mubr.f32.gmra.mxu1 %v4536_v1  ;;  %v734_v0 = vrot.slane %v711_v20, 1  ;;  %v6246_v20 = vld [vmem:[#allocation126_spill] sm:$0xff] }
  0xc9   :  { %1133 = vmatprep.subr.mxu0 %v6236_v12  ;;  %1022 = vmatmul.mubr.f32.gmra.mxu0 %v685_v16  ;;  %v6240_v16 = vld [vmem:[#allocation132_spill] sm:$0xff] }
  0xca   :  { %1134 = vmatpush1.msra.mxu0 %v6237_v31  ;;  %1027 = vmatprep.mubr.f32.mxu0 %v693_v32  ;;  %v6241_v32 = vld [vmem:[#allocation131_spill] sm:$0xff]  ;;  %v736_v13 = vsel %vm730_vm2, %v734_v0, %v5935_v19  ;;  %v6251_v0 = vld [vmem:[#allocation121_spill] sm:$0xff]  ;;  %v6252_v19 = vld [vmem:[#allocation120_spill] sm:$0xff] }
  0xcb   :  { %1135 = vmatprep.subr.mxu0 %v6238_v30  ;;  %1116 = vmatprep.mubr.f32.mxu1 %v4541_v34  ;;  %v6243_v34 = vld [vmem:[#allocation129_spill] sm:$0xff] }
  0xcc   :  { %1136 = vmatpush1.msra.mxu0 %v6239_v25  ;;  %1117 = vmatmul.mubr.f32.gmra.mxu1 %v4550_v22  ;;  %v6244_v22 = vld [vmem:[#allocation128_spill] sm:$0xff]  ;;  %v6296_v25 = vld [vmem:[#allocation141_spill] sm:$0xff] }
  0xcd   :  { %1137 = vmatprep.subr.mxu0 %v6240_v16  ;;  %1028 = vmatmul.mubr.f32.gmra.mxu0 %v690_v26  ;;  %v6248_v26 = vld [vmem:[#allocation124_spill] sm:$0xff] }
  0xce   :  { %1138 = vmatpush1.msra.mxu0 %v6241_v32  ;;  %1033 = vmatprep.mubr.f32.mxu0 %v697_v18  ;;  %v6250_v18 = vld [vmem:[#allocation122_spill] sm:$0xff]  ;;  %v6292_v32 = vld [vmem:[#allocation144_spill] sm:$0xff] }
  0xcf   :  { %1139 = vmatprep.subr.mxu0 %v6242_v24  ;;  %1122 = vmatprep.mubr.f32.mxu1 %v4558_v21  ;;  %v712_v24 = vld [vmem:[#allocation4 + $0x30] sm:$0x1] }
  0xd0   :  { %1140 = vmatpush1.msra.mxu0 %v6243_v34  ;;  %1123 = vmatmul.mubr.f32.gmra.mxu1 %v4563_v23  ;;  %v6253_v34 = vld [vmem:[#allocation119_spill] sm:$0xff]  ;;  %v737_v16 = vrot.slane %v712_v24, 1 }
  0xd1   :  { %1141 = vmatprep.subr.mxu0 %v6244_v22  ;;  %1034 = vmatmul.mubr.f32.gmra.mxu0 %v695_v28  ;;  %v6254_v28 = vld [vmem:[#allocation118_spill] sm:$0xff]  ;;  %v6288_v22 = vld [vmem:[#allocation148_spill] sm:$0xff] }
  0xd2   :  { %1142 = vmatpush1.msra.mxu0 %v6245_v15  ;;  %1193 = vmatprep.mubr.f32.mxu0 %v736_v13  ;;  %v6255_v15 = vld [vmem:[#allocation117_spill] sm:$0xff]  ;;  %v6256_v13 = vld [vmem:[#allocation116_spill] sm:$0xff] }
  0xd3   :  { %1143 = vmatprep.subr.mxu0 %v6246_v20  ;;  %v6257_v20 = vld [vmem:[#allocation115_spill] sm:$0xff] }
  0xd4   :  { %1144 = vmatpush1.msra.mxu0 %v6247_v29  ;;  %v6258_v29 = vld [vmem:[#allocation114_spill] sm:$0xff] }
  0xd5   :  { %1145 = vmatprep.subr.mxu0 %v6248_v26  ;;  %v6259_v26 = vld [vmem:[#allocation113_spill] sm:$0xff] }
  0xd6   :  { %1146 = vmatpush1.msra.mxu0 %v6249_v27  ;;  %v6260_v27 = vld [vmem:[#allocation112_spill] sm:$0xff] }
  0xd7   :  { %1147 = vmatprep.subr.mxu0 %v6250_v18  ;;  %v6261_v18 = vld [vmem:[#allocation111_spill] sm:$0xff] }
  0xd8   :  { %1148 = vmatpush1.msra.mxu0 %v6251_v0  ;;  %v6262_v0 = vld [vmem:[#allocation110_spill] sm:$0xff] }
  0xd9   :  { %1149 = vmatprep.subr.mxu0 %v6252_v19  ;;  %v6263_v19 = vld [vmem:[#allocation109_spill] sm:$0xff] }
  0xda   :  { %1150 = vmatpush1.msra.mxu0 %v6253_v34  ;;  %v6264_v34 = vld [vmem:[#allocation172_spill] sm:$0xff] }
  0xdb   :  { %1151 = vmatprep.subr.mxu0 %v6254_v28  ;;  %v6265_v28 = vld [vmem:[#allocation171_spill] sm:$0xff] }
  0xdc   :  { %1152 = vmatpush1.msra.mxu0 %v6255_v15  ;;  %v6266_v15 = vld [vmem:[#allocation170_spill] sm:$0xff] }
  0xdd   :  { %1153 = vmatprep.subr.mxu0 %v6256_v13  ;;  %v6267_v13 = vld [vmem:[#allocation169_spill] sm:$0xff] }
  0xde   :  { %1154 = vmatpush1.msra.mxu0 %v6257_v20  ;;  %v6268_v20 = vld [vmem:[#allocation168_spill] sm:$0xff] }
  0xdf   :  { %1155 = vmatprep.subr.mxu0 %v6258_v29  ;;  %v6269_v29 = vld [vmem:[#allocation167_spill] sm:$0xff] }
  0xe0   :  { %1156 = vmatpush1.msra.mxu0 %v6259_v26  ;;  %v6270_v26 = vld [vmem:[#allocation166_spill] sm:$0xff] }
  0xe1   :  { %1157 = vmatprep.subr.mxu0 %v6260_v27  ;;  %v6271_v27 = vld [vmem:[#allocation165_spill] sm:$0xff] }
  0xe2   :  { %1158 = vmatpush1.msra.mxu0 %v6261_v18  ;;  %v6272_v18 = vld [vmem:[#allocation164_spill] sm:$0xff] }
  0xe3   :  { %1159 = vmatprep.subr.mxu0 %v6262_v0  ;;  %v6273_v0 = vld [vmem:[#allocation163_spill] sm:$0xff] }
  0xe4   :  { %1160 = vmatpush1.msra.mxu0 %v6263_v19  ;;  %v6274_v19 = vld [vmem:[#allocation162_spill] sm:$0xff] }
  0xe5   :  { %1161 = vmatprep.subr.mxu0 %v6264_v34  ;;  %v6275_v34 = vld [vmem:[#allocation161_spill] sm:$0xff] }
  0xe6   :  { %1162 = vmatpush2.msra.mxu0 %v6265_v28  ;;  %v6276_v28 = vld [vmem:[#allocation160_spill] sm:$0xff] }
  0xe7   :  { %1163 = vmatprep.subr.mxu0 %v6266_v15  ;;  %v6277_v15 = vld [vmem:[#allocation159_spill] sm:$0xff] }
  0xe8   :  { %1164 = vmatpush2.msra.mxu0 %v6267_v13  ;;  %v6278_v13 = vld [vmem:[#allocation158_spill] sm:$0xff] }
  0xe9   :  { %1165 = vmatprep.subr.mxu0 %v6268_v20  ;;  %v6279_v20 = vld [vmem:[#allocation157_spill] sm:$0xff] }
  0xea   :  { %1166 = vmatpush2.msra.mxu0 %v6269_v29  ;;  %v6280_v29 = vld [vmem:[#allocation156_spill] sm:$0xff] }
  0xeb   :  { %1167 = vmatprep.subr.mxu0 %v6270_v26  ;;  %v6281_v26 = vld [vmem:[#allocation155_spill] sm:$0xff] }
  0xec   :  { %1168 = vmatpush2.msra.mxu0 %v6271_v27  ;;  %v6282_v27 = vld [vmem:[#allocation154_spill] sm:$0xff] }
  0xed   :  { %1169 = vmatprep.subr.mxu0 %v6272_v18  ;;  %v6283_v18 = vld [vmem:[#allocation153_spill] sm:$0xff] }
  0xee   :  { %1170 = vmatpush2.msra.mxu0 %v6273_v0  ;;  %v6284_v0 = vld [vmem:[#allocation152_spill] sm:$0xff] }
  0xef   :  { %1171 = vmatprep.subr.mxu0 %v6274_v19  ;;  %v6285_v19 = vld [vmem:[#allocation151_spill] sm:$0xff] }
  0xf0   :  { %1172 = vmatpush2.msra.mxu0 %v6275_v34  ;;  %v6286_v34 = vld [vmem:[#allocation150_spill] sm:$0xff] }
  0xf1   :  { %1173 = vmatprep.subr.mxu0 %v6276_v28  ;;  %v710_v28 = vld [vmem:[#allocation4 + $0x10] sm:$0xfe] }
  0xf2   :  { %1174 = vmatpush2.msra.mxu0 %v6277_v15  ;;  %v6287_v15 = vld [vmem:[#allocation149_spill] sm:$0xff] }
  0xf3   :  { %1175 = vmatprep.subr.mxu0 %v6278_v13  ;;  %v713_v13 = vld [vmem:[#allocation4 + $0x38] sm:$0x1] }
  0xf4   :  { %1176 = vmatpush2.msra.mxu0 %v6279_v20  ;;  %v6289_v20 = vld [vmem:[#allocation147_spill] sm:$0xff] }
  0xf5   :  { %1177 = vmatprep.subr.mxu0 %v6280_v29  ;;  %v732_v29 = vrot.slane %v4536_v1, 1  ;;  %v6294_v1 = vld [vmem:[#allocation142_spill] sm:$0xff] }
  0xf6   :  { %1178 = vmatpush2.msra.mxu0 %v6281_v26  ;;  %v731_v26 = vrot.slane %v710_v28, 1  ;;  %v6295_v28 = vrot.slane %v4528_v33, 1 }
  0xf7   :  { %1179 = vmatprep.subr.mxu0 %v6282_v27  ;;  %v6290_v27 = vld [vmem:[#allocation146_spill] sm:$0xff]  ;;  %v738_v24 = vsel %vm730_vm2, %v732_v29, %v737_v16 }
  0xf8   :  { %1180 = vmatpush2.msra.mxu0 %v6283_v18  ;;  %v739_v18 = vrot.slane %v713_v13, 1  ;;  %v1286_v16 = vld [vmem:[%s5764_s3 + $0xc0] sm:$0xff] }
  0xf9   :  { %1181 = vmatprep.subr.mxu0 %v6284_v0  ;;  %v6291_v0 = vld [vmem:[#allocation145_spill] sm:$0xff] }
  0xfa   :  { %1182 = vmatpush2.msra.mxu0 %v6285_v19  ;;  %v715_v19 = vld [vmem:[#allocation4 + $0x58] sm:$0xfe] }
  0xfb   :  { %1183 = vmatprep.subr.mxu0 %v6286_v34  ;;  %v6293_v34 = vld [vmem:[#allocation143_spill] sm:$0xff]  ;;  %v744_v13 = vrot.slane %v715_v19, 1 }
  0xfc   :  { %1184 = vmatpush2.msra.mxu0 %v6287_v15  ;;  %v733_v15 = vsel %vm730_vm2, %v731_v26, %v732_v29  ;;  %v1268_v29 = vld [vmem:[%s5764_s3 + $0x30] sm:$0xff] }
  0xfd   :  { %1185 = vmatprep.subr.mxu0 %v6288_v22  ;;  %v745_v22 = vrot.slane %v4558_v21, 1 }
  0xfe   :  { %1186 = vmatpush2.msra.mxu0 %v6289_v20  ;;  %v714_v20 = vld [vmem:[#allocation4 + $0x50] sm:$0xfe] }
  0xff   :  { %1187 = vmatprep.subr.mxu0 %v6290_v27  ;;  %v740_v27 = vsel %vm730_vm2, %v6295_v28, %v739_v18  ;;  %v741_v21 = vrot.slane %v714_v20, 1  ;;  %v746_v33 = vsel %vm730_vm2, %v744_v13, %v745_v22  ;;  %v716_v18 = vld [vmem:[#allocation4 + $0x70] sm:$0x1]  ;;  %v1282_v28 = vld [vmem:[%s5764_s3 + $0xa0] sm:$0xff] }
 0x100   :  { %1188 = vmatpush2.msra.mxu0 %v6291_v0  ;;  %v717_v0 = vld [vmem:[#allocation4 + $0x78] sm:$0x1]  ;;  %v1284_v20 = vld [vmem:[%s5764_s3 + $0xb0] sm:$0xff]  ;;  %v1266_v13 = vld [vmem:[%s5764_s3 + $0x20] sm:$0xff] }
 0x101   :  { %1189 = vmatprep.subr.mxu0 %v6292_v32  ;;  %v749_v26 = vrot.slane %v717_v0, 1  ;;  %v1267_v0 = vld [vmem:[%s5764_s3 + $0x28] sm:$0xff] }
 0x102   :  { %1190 = vmatpush2.msra.mxu0 %v6293_v34  ;;  %v742_v34 = vrot.slane %v4563_v23, 1 }
 0x103   :  { %1191 = vmatprep.subr.mxu0 %v6294_v1  ;;  %v750_v19 = vsel %vm730_vm2, %v745_v22, %v749_v26  ;;  %v1285_v22 = vld [vmem:[%s5764_s3 + $0xb8] sm:$0xff]  ;;  %v1264_v26 = vld [vmem:[%s5764_s3 + $0x10] sm:$0xff] }
 0x104   :  { %1192 = vmatpush2.msra.mxu0 %v6296_v25  ;;  %v743_v23 = vsel %vm730_vm2, %v741_v21, %v742_v34  ;;  %v1265_v21 = vld [vmem:[%s5764_s3 + $0x18] sm:$0xff] }
 0x105   :  { %1194 = vmatmul.mubr.f32.vlgmr.msra.gmra.mxu0 %v733_v15  ;;  %2114 = vmatprep.subr.mxu0 %v3688_v63  ;;  %v747_v63 = vrot.slane %v716_v18, 1  ;;  %v1269_v15 = vld [vmem:[%s5764_s3 + $0x38] sm:$0xff]  ;;  %v1279_v18 = vld [vmem:[%s5764_s3 + $0x88] sm:$0xff] }
 0x106   :  { %1199 = vmatprep.mubr.f32.mxu0 %v740_v27  ;;  %2115 = vmatpush1.msra.mxu0 %v3683_v62  ;;  %v1271_v62 = vld [vmem:[%s5764_s3 + $0x48] sm:$0xff] }
 0x107   :  { %2116 = vmatprep.subr.mxu0 %v3678_v61  ;;  %v1287_v61 = vld [vmem:[%s5764_s3 + $0xc8] sm:$0xff] }
 0x108   :  { %2117 = vmatpush1.msra.mxu0 %v3673_v60  ;;  %v748_v60 = vsel %vm730_vm2, %v742_v34, %v747_v63  ;;  %v1270_v34 = vld [vmem:[%s5764_s3 + $0x40] sm:$0xff]  ;;  %v1283_v27 = vld [vmem:[%s5764_s3 + $0xa8] sm:$0xff] }
 0x109   :  { %1200 = vmatmul.mubr.f32.gmra.mxu0 %v738_v24  ;;  %2118 = vmatprep.subr.mxu0 %v3668_v59  ;;  %v1272_v59 = vld [vmem:[%s5764_s3 + $0x50] sm:$0xff]  ;;  %v1281_v24 = vld [vmem:[%s5764_s3 + $0x98] sm:$0xff]  ;;  %v1278_v63 = vld [vmem:[%s5764_s3 + $0x80] sm:$0xff] }
 0x10a   :  { %1205 = vmatprep.mubr.f32.mxu0 %v746_v33  ;;  %2119 = vmatpush1.msra.mxu0 %v3663_v58  ;;  %v1288_v58 = vld [vmem:[%s5764_s3 + $0xd0] sm:$0xff] }
 0x10b   :  { %2120 = vmatprep.subr.mxu0 %v3658_v57  ;;  %v1273_v57 = vld [vmem:[%s5764_s3 + $0x58] sm:$0xff]  ;;  %v1280_v33 = vld [vmem:[%s5764_s3 + $0x90] sm:$0xff] }
 0x10c   :  { %2121 = vmatpush1.msra.mxu0 %v3653_v56  ;;  %v1289_v56 = vld [vmem:[%s5764_s3 + $0xd8] sm:$0xff] }
 0x10d   :  { %1206 = vmatmul.mubr.f32.gmra.mxu0 %v743_v23  ;;  %2122 = vmatprep.subr.mxu0 %v3648_v55  ;;  %v1293_v55 = vld [vmem:[%s5764_s3 + $0xf8] sm:$0xff]  ;;  %v1263_v23 = vld [vmem:[%s5764_s3 + $0x8] sm:$0xff] }
 0x10e   :  { %1211 = vmatprep.mubr.f32.mxu0 %v750_v19  ;;  %2123 = vmatpush1.msra.mxu0 %v3643_v54  ;;  %v1274_v54 = vld [vmem:[%s5764_s3 + $0x60] sm:$0xff] }
 0x10f   :  { %2124 = vmatprep.subr.mxu0 %v3638_v53  ;;  %3014 = vmatprep.subr.mxu1 %v1293_v55  ;;  %v1290_v53 = vld [vmem:[%s5764_s3 + $0xe0] sm:$0xff] }
 0x110   :  { %2125 = vmatpush1.msra.mxu0 %v3633_v52  ;;  %v1291_v52 = vld [vmem:[%s5764_s3 + $0xe8] sm:$0xff]  ;;  %v1262_v19 = vld [vmem:[%s5764_s3] sm:$0xff] }
 0x111   :  { %1212 = vmatmul.mubr.f32.gmra.mxu0 %v748_v60  ;;  %2126 = vmatprep.subr.mxu0 %v3628_v51  ;;  %v1276_v51 = vld [vmem:[%s5764_s3 + $0x70] sm:$0xff]  ;;  %v1325_v60 = vld [vmem:[%s5764_s3 + $0x1f8] sm:$0xff] }
 0x112   :  { %2127 = vmatpush1.msra.mxu0 %v3623_v50  ;;  %v1292_v50 = vld [vmem:[%s5764_s3 + $0xf0] sm:$0xff] }
 0x113   :  { %2128 = vmatprep.subr.mxu0 %v3618_v49  ;;  %v1277_v49 = vld [vmem:[%s5764_s3 + $0x78] sm:$0xff] }
 0x114   :  { %2129 = vmatpush1.msra.mxu0 %v3613_v48  ;;  %v6320_v48 = vld [vmem:[#allocation78_spill] sm:$0xff]  ;;  %3015 = vmatpush3.msra.mxu1 %v1277_v49 }
 0x115   :  { %2130 = vmatprep.subr.mxu0 %v3608_v47  ;;  %v6319_v47 = vld [vmem:[#allocation79_spill] sm:$0xff]  ;;  %3016 = vmatprep.subr.mxu1 %v1292_v50 }
 0x116   :  { %2131 = vmatpush1.msra.mxu0 %v3603_v46  ;;  %v6318_v46 = vld [vmem:[#allocation80_spill] sm:$0xff]  ;;  %3017 = vmatpush3.msra.mxu1 %v1276_v51 }
 0x117   :  { %2132 = vmatprep.subr.mxu0 %v3598_v45  ;;  %v6317_v45 = vld [vmem:[#allocation81_spill] sm:$0xff]  ;;  %3018 = vmatprep.subr.mxu1 %v1291_v52 }
 0x118   :  { %2133 = vmatpush1.msra.mxu0 %v3593_v44  ;;  %v6316_v44 = vld [vmem:[#allocation82_spill] sm:$0xff] }
 0x119   :  { %2134 = vmatprep.subr.mxu0 %v3588_v43  ;;  %v6315_v43 = vld [vmem:[#allocation83_spill] sm:$0xff] }
 0x11a   :  { %2135 = vmatpush1.msra.mxu0 %v3583_v42  ;;  %v6314_v42 = vld [vmem:[#allocation84_spill] sm:$0xff] }
 0x11b   :  { %2136 = vmatprep.subr.mxu0 %v3578_v41  ;;  %v6313_v41 = vld [vmem:[#allocation85_spill] sm:$0xff] }
 0x11c   :  { %2137 = vmatpush1.msra.mxu0 %v3573_v40  ;;  %v6312_v40 = vld [vmem:[#allocation86_spill] sm:$0xff] }
 0x11d   :  { %2138 = vmatprep.subr.mxu0 %v3568_v39  ;;  %v6311_v39 = vld [vmem:[#allocation87_spill] sm:$0xff] }
 0x11e   :  { %2139 = vmatpush1.msra.mxu0 %v3563_v38  ;;  %v6310_v38 = vld [vmem:[#allocation88_spill] sm:$0xff] }
 0x11f   :  { %2140 = vmatprep.subr.mxu0 %v3558_v37  ;;  %v6309_v37 = vld [vmem:[#allocation89_spill] sm:$0xff] }
 0x120   :  { %2141 = vmatpush1.msra.mxu0 %v3553_v36  ;;  %v6308_v36 = vld [vmem:[#allocation90_spill] sm:$0xff] }
 0x121   :  { %2142 = vmatprep.subr.mxu0 %v3548_v35  ;;  %v6297_v35 = vld [vmem:[#allocation101_spill] sm:$0xff] }
 0x122   :  { %2143 = vmatpush1.msra.mxu0 %v6163_v7  ;;  %v6298_v7 = vld [vmem:[#allocation100_spill] sm:$0xff] }
 0x123   :  { %2144 = vmatprep.subr.mxu0 %v6165_v6  ;;  %v6299_v6 = vld [vmem:[#allocation99_spill] sm:$0xff] }
 0x124   :  { %2145 = vmatpush1.msra.mxu0 %v6167_v5  ;;  %v6300_v5 = vld [vmem:[#allocation98_spill] sm:$0xff] }
 0x125   :  { %2146 = vmatprep.subr.mxu0 %v6169_v4  ;;  %v6301_v4 = vld [vmem:[#allocation97_spill] sm:$0xff] }
 0x126   :  { %2147 = vmatpush2.msra.mxu0 %v6171_v3  ;;  %v6302_v3 = vld [vmem:[#allocation96_spill] sm:$0xff] }
 0x127   :  { %2148 = vmatprep.subr.mxu0 %v6173_v2  ;;  %v6303_v2 = vld [vmem:[#allocation95_spill] sm:$0xff] }
 0x128   :  { %2149 = vmatpush2.msra.mxu0 %v6175_v8  ;;  %v6304_v8 = vld [vmem:[#allocation94_spill] sm:$0xff] }
 0x129   :  { %2150 = vmatprep.subr.mxu0 %v6177_v9  ;;  %v6305_v9 = vld [vmem:[#allocation93_spill] sm:$0xff] }
 0x12a   :  { %2151 = vmatpush2.msra.mxu0 %v6179_v10  ;;  %v6306_v10 = vld [vmem:[#allocation92_spill] sm:$0xff] }
 0x12b   :  { %2152 = vmatprep.subr.mxu0 %v6181_v11  ;;  %v6307_v11 = vld [vmem:[#allocation91_spill] sm:$0xff] }
 0x12c   :  { %2153 = vmatpush2.msra.mxu0 %v6297_v35 }
 0x12d   :  { %2154 = vmatprep.subr.mxu0 %v6298_v7 }
 0x12e   :  { %2155 = vmatpush2.msra.mxu0 %v6299_v6 }
 0x12f   :  { %2156 = vmatprep.subr.mxu0 %v6300_v5 }
 0x130   :  { %2157 = vmatpush2.msra.mxu0 %v6301_v4 }
 0x131   :  { %2158 = vmatprep.subr.mxu0 %v6302_v3 }
 0x132   :  { %2159 = vmatpush2.msra.mxu0 %v6303_v2 }
 0x133   :  { %2160 = vmatprep.subr.mxu0 %v6304_v8 }
 0x134   :  { %2161 = vmatpush2.msra.mxu0 %v6305_v9 }
 0x135   :  { %2162 = vmatprep.subr.mxu0 %v6306_v10 }
 0x136   :  { %2163 = vmatpush2.msra.mxu0 %v6307_v11 }
 0x137   :  { %2164 = vmatprep.subr.mxu0 %v6308_v36 }
 0x138   :  { %2165 = vmatpush2.msra.mxu0 %v6309_v37 }
 0x139   :  { %2166 = vmatprep.subr.mxu0 %v6310_v38 }
 0x13a   :  { %2167 = vmatpush2.msra.mxu0 %v6311_v39 }
 0x13b   :  { %2168 = vmatprep.subr.mxu0 %v6312_v40 }
 0x13c   :  { %2169 = vmatpush2.msra.mxu0 %v6313_v41 }
 0x13d   :  { %2170 = vmatprep.subr.mxu0 %v6314_v42 }
 0x13e   :  { %2171 = vmatpush2.msra.mxu0 %v6315_v43 }
 0x13f   :  { %2172 = vmatprep.subr.mxu0 %v6316_v44 }
 0x140   :  { %2173 = vmatpush2.msra.mxu0 %v6317_v45 }
 0x141   :  { %2174 = vmatprep.subr.mxu0 %v6318_v46 }
 0x142   :  { %2175 = vmatpush2.msra.mxu0 %v6319_v47 }
 0x143   :  { %2176 = vmatprep.subr.mxu0 %v6320_v48 }
 0x144   :  { %2177 = vmatpush2.msra.mxu0 %v6231_v14  ;;  %v1275_v14 = vld [vmem:[%s5764_s3 + $0x68] sm:$0xff] }
 0x145   :  { %3019 = vmatpush3.msra.mxu1 %v1275_v14  ;;  %3119 = vmatprep.subr.mxu0 %v1325_v60 }
 0x146   :  { %3020 = vmatprep.subr.mxu1 %v1290_v53 }
 0x147   :  { %3021 = vmatpush3.msra.mxu1 %v1274_v54 }
 0x148   :  { %3022 = vmatprep.subr.mxu1 %v1289_v56 }
 0x149   :  { %3023 = vmatpush3.msra.mxu1 %v1273_v57 }
 0x14a   :  { %3024 = vmatprep.subr.mxu1 %v1288_v58 }
 0x14b   :  { %3025 = vmatpush3.msra.mxu1 %v1272_v59 }
 0x14c   :  { %3026 = vmatprep.subr.mxu1 %v1287_v61 }
 0x14d   :  { %3027 = vmatpush3.msra.mxu1 %v1271_v62 }
 0x14e   :  { %3028 = vmatprep.subr.mxu1 %v1286_v16 }
 0x14f   :  { %3029 = vmatpush3.msra.mxu1 %v1270_v34 }
 0x150   :  { %3030 = vmatprep.subr.mxu1 %v1285_v22 }
 0x151   :  { %3031 = vmatpush3.msra.mxu1 %v1269_v15 }
 0x152   :  { %3032 = vmatprep.subr.mxu1 %v1284_v20 }
 0x153   :  { %3033 = vmatpush3.msra.mxu1 %v1268_v29 }
 0x154   :  { %3034 = vmatprep.subr.mxu1 %v1283_v27 }
 0x155   :  { %3035 = vmatpush3.msra.mxu1 %v1267_v0 }
 0x156   :  { %3036 = vmatprep.subr.mxu1 %v1282_v28 }
 0x157   :  { %3037 = vmatpush3.msra.mxu1 %v1266_v13 }
 0x158   :  { %3038 = vmatprep.subr.mxu1 %v1281_v24 }
 0x159   :  { %3039 = vmatpush3.msra.mxu1 %v1265_v21 }
 0x15a   :  { %3040 = vmatprep.subr.mxu1 %v1280_v33 }
 0x15b   :  { %3041 = vmatpush3.msra.mxu1 %v1264_v26 }
 0x15c   :  { %3042 = vmatprep.subr.mxu1 %v1279_v18 }
 0x15d   :  { %3043 = vmatpush3.msra.mxu1 %v1263_v23 }
 0x15e   :  { %3044 = vmatprep.subr.mxu1 %v1278_v63 }
 0x15f   :  { %3045 = vmatpush3.msra.mxu1 %v1262_v19 }
 0x160   :  { %3049 = vmatprep.subr.mxu1 %v1325_v60 }
 0x184   :  { %v1017_v55 = vpop.f32.mrf.mxu0  ;;  %v1106_v5 = vpop.f32.mrf.mxu1 }
 0x185   :  { %v1107_v46 = vadd.f32 %v1106_v5, %v1017_v55 }
 0x186   :  { %v1019_v35 = vpop.f32.mrf.mxu0  ;;  %v1108_v3 = vpop.f32.mrf.mxu1 }
 0x187   :  { %v1109_v44 = vadd.f32 %v1108_v3, %v1019_v35 }
 0x188   :  { %v1112_v2 = vpop.f32.mrf.mxu1 }
 0x189   :  { %v1023_v7 = vpop.f32.mrf.mxu0 }
 0x18a   :  { %v1114_v9 = vpop.f32.mrf.mxu1  ;;  %v1113_v41 = vadd.f32 %v1112_v2, %v1023_v7 }
 0x18b   :  { %v1025_v6 = vpop.f32.mrf.mxu0 }
 0x18c   :  { %v1118_v11 = vpop.f32.mrf.mxu1  ;;  %v1115_v42 = vadd.f32 %v1114_v9, %v1025_v6 }
 0x18d   :  { %v1029_v4 = vpop.f32.mrf.mxu0 }
 0x18e   :  { %v1120_v38 = vpop.f32.mrf.mxu1  ;;  %v1119_v47 = vadd.f32 %v1118_v11, %v1029_v4 }
 0x18f   :  { %v1031_v8 = vpop.f32.mrf.mxu0 }
 0x190   :  { %v1124_v43 = vpop.f32.mrf.mxu1  ;;  %v1121_v52 = vadd.f32 %v1120_v38, %v1031_v8  ;;  %v4971_v38 = vld [vmem:[%s5764_s3 + $0x178] sm:$0xff] }
 0x191   :  { %v1035_v10 = vpop.f32.mrf.mxu0 }
 0x192   :  { %v1126_v14 = vpop.f32.mrf.mxu1  ;;  %v1125_v57 = vadd.f32 %v1124_v43, %v1035_v10  ;;  %v1308_v43 = vld [vmem:[%s5764_s3 + $0x170] sm:$0xff] }
 0x193   :  { %v1037_v36 = vpop.f32.mrf.mxu0 }
 0x194   :  { %v1127_v62 = vadd.f32 %v1126_v14, %v1037_v36  ;;  %v1306_v14 = vld [vmem:[%s5764_s3 + $0x160] sm:$0xff] }
 0x1c5   :  { %v1195_v37 = vpop.f32.mrf.mxu0 }
 0x1c6   :  { %v4940_v53 = vadd.f32 %v1195_v37, %v1107_v46 }
 0x1c7   :  { %v1197_v39 = vpop.f32.mrf.mxu0 }
 0x1c8   :  { %v4938_v50 = vadd.f32 %v1197_v39, %v1109_v44  ;;  %v1324_v39 = vld [vmem:[%s5764_s3 + $0x1f0] sm:$0xff]  ;;  %v1323_v44 = vld [vmem:[%s5764_s3 + $0x1e8] sm:$0xff] }
 0x1c9   :  { %v1201_v40 = vpop.f32.mrf.mxu0 }
 0x1ca   :  { %v4934_v48 = vadd.f32 %v1201_v40, %v1113_v41  ;;  %v1219_v16 = vmul.f32 %v4938_v50, %v4938_v50  ;;  %v1218_v41 = vmul.f32 %v4940_v53, %v4940_v53 }
 0x1cb   :  { %v1203_v45 = vpop.f32.mrf.mxu0 }
 0x1cc   :  { %v4936_v49 = vadd.f32 %v1203_v45, %v1115_v42  ;;  %v1226_v58 = vadd.f32 %v4934_v48, %v4940_v53  ;;  %v1220_v36 = vmul.f32 %v4934_v48, %v4934_v48 }
 0x1cd   :  { %v1207_v51 = vpop.f32.mrf.mxu0 }
 0x1ce   :  { %v4942_v54 = vadd.f32 %v1207_v51, %v1119_v47  ;;  %v1221_v59 = vmul.f32 %v4936_v49, %v4936_v49  ;;  %v1235_v22 = vadd.f32 %v4936_v49, %v4938_v50  ;;  %v1244_v45 = vadd.f32 %v1220_v36, %v1218_v41  ;;  %v1307_v47 = vld [vmem:[%s5764_s3 + $0x168] sm:$0xff]  ;;  %v1322_v51 = vld [vmem:[%s5764_s3 + $0x1e0] sm:$0xff] }
 0x1cf   :  { %v1209_v56 = vpop.f32.mrf.mxu0  ;;  %v1475_v36 = vld [vmem:[%s5765_s4 + $0x48] sm:$0xff] }
 0x1d0   :  { %v4948_v61 = vadd.f32 %v1209_v56, %v1121_v52  ;;  %v1227_v15 = vadd.f32 %v1226_v58, %v4942_v54  ;;  %v1253_v0 = vadd.f32 %v1221_v59, %v1219_v16  ;;  %v1222_v42 = vmul.f32 %v4942_v54, %v4942_v54  ;;  %v1321_v56 = vld [vmem:[%s5764_s3 + $0x1d8] sm:$0xff]  ;;  %v1320_v59 = vld [vmem:[%s5764_s3 + $0x1d0] sm:$0xff]  ;;  %v1319_v16 = vld [vmem:[%s5764_s3 + $0x1c8] sm:$0xff] }
 0x1d1   :  { %v1213_v34 = vpop.f32.mrf.mxu0  ;;  %v1305_v58 = vld [vmem:[%s5764_s3 + $0x158] sm:$0xff]  ;;  %v1467_v41 = vld [vmem:[%s5765_s4 + $0x8] sm:$0xff] }
 0x1d2   :  { %v1223_v20 = vmul.f32 %v4948_v61, %v4948_v61  ;;  %v4957_v29 = vadd.f32 %v1213_v34, %v1125_v57  ;;  %v1236_v28 = vadd.f32 %v1235_v22, %v4948_v61  ;;  %v1245_v52 = vadd.f32 %v1244_v45, %v1222_v42  ;;  %v1303_v22 = vld [vmem:[%s5764_s3 + $0x148] sm:$0xff]  ;;  %v1466_v42 = vld [vmem:[%s5765_s4] sm:$0xff] }
 0x1d3   :  { %v1215_v27 = vpop.f32.mrf.mxu0 }
 0x1d4   :  { %v1228_v13 = vadd.f32 %v1227_v15, %v4957_v29  ;;  %v4961_v24 = vadd.f32 %v1215_v27, %v1127_v62  ;;  %v1254_v21 = vadd.f32 %v1253_v0, %v1223_v20  ;;  %v1224_v46 = vmul.f32 %v4957_v29, %v4957_v29  ;;  %v1304_v62 = vld [vmem:[%s5764_s3 + $0x150] sm:$0xff]  ;;  %v1318_v15 = vld [vmem:[%s5764_s3 + $0x1c0] sm:$0xff]  ;;  %v1317_v27 = vld [vmem:[%s5764_s3 + $0x1b8] sm:$0xff] }
 0x1d5   :  { %v1302_v20 = vld [vmem:[%s5764_s3 + $0x140] sm:$0xff] }
 0x1d6   :  { %v1229_v33 = vrot.slane %v1228_v13, 4  ;;  %v1225_v26 = vmul.f32 %v4961_v24, %v4961_v24  ;;  %v1237_v18 = vadd.f32 %v1236_v28, %v4961_v24  ;;  %v1246_v57 = vadd.f32 %v1245_v52, %v1224_v46  ;;  %v1301_v28 = vld [vmem:[%s5764_s3 + $0x138] sm:$0xff] }
 0x1d8   :  { %v1230_v23 = vadd.f32 %v1229_v33, %v1228_v13  ;;  %v1238_v63 = vrot.slane %v1237_v18, 4  ;;  %v1255_v19 = vadd.f32 %v1254_v21, %v1225_v26  ;;  %v1247_v34 = vrot.slane %v1246_v57, 4  ;;  %v1316_v13 = vld [vmem:[%s5764_s3 + $0x1b0] sm:$0xff]  ;;  %v1315_v33 = vld [vmem:[%s5764_s3 + $0x1a8] sm:$0xff] }
 0x1d9   :  { %v1300_v21 = vld [vmem:[%s5764_s3 + $0x130] sm:$0xff] }
 0x1da   :  { %v1231_v60 = vrot.slane %v1230_v23, 2  ;;  %v1239_v55 = vadd.f32 %v1238_v63, %v1237_v18  ;;  %v1256_v35 = vrot.slane %v1255_v19, 4  ;;  %v1248_v0 = vadd.f32 %v1247_v34, %v1246_v57  ;;  %v1299_v18 = vld [vmem:[%s5764_s3 + $0x128] sm:$0xff]  ;;  %v1298_v63 = vld [vmem:[%s5764_s3 + $0x120] sm:$0xff]  ;;  %v1477_v57 = vld [vmem:[%s5765_s4 + $0x58] sm:$0xff] }
 0x1db   :  { %v1468_v34 = vld [vmem:[%s5765_s4 + $0x10] sm:$0xff] }
 0x1dc   :  { %v1232_v7 = vadd.f32 %v1231_v60, %v1230_v23  ;;  %v1240_v6 = vrot.slane %v1239_v55, 2  ;;  %v1257_v5 = vadd.f32 %v1256_v35, %v1255_v19  ;;  %v1249_v26 = vrot.slane %v1248_v0, 2  ;;  %v1314_v23 = vld [vmem:[%s5764_s3 + $0x1a0] sm:$0xff]  ;;  %v1313_v19 = vld [vmem:[%s5764_s3 + $0x198] sm:$0xff]  ;;  %v1312_v35 = vld [vmem:[%s5764_s3 + $0x190] sm:$0xff] }
 0x1dd   :  { %v1297_v60 = vld [vmem:[%s5764_s3 + $0x118] sm:$0xff] }
 0x1de   :  { %v1241_v4 = vadd.f32 %v1240_v6, %v1239_v55  ;;  %v1258_v3 = vrot.slane %v1257_v5, 2  ;;  %v1233_v2 = vrot.slane %v1232_v7, 1  ;;  %v1250_v55 = vadd.f32 %v1249_v26, %v1248_v0  ;;  %v1311_v6 = vld [vmem:[%s5764_s3 + $0x188] sm:$0xff]  ;;  %v6326_v0 = vld [vmem:[#allocation37_spill] sm:$0xff]  ;;  %v6331_v26 = vld [vmem:[#allocation32_spill] sm:$0xff] }
 0x1e0   :  { %v1242_v8 = vrot.slane %v1241_v4, 1  ;;  %v1259_v9 = vadd.f32 %v1258_v3, %v1257_v5  ;;  %v1234_v37 = vadd.f32 %v1233_v2, %v1232_v7  ;;  %v1296_v7 = vld [vmem:[%s5764_s3 + $0x110] sm:$0xff]  ;;  %v1295_v5 = vld [vmem:[%s5764_s3 + $0x108] sm:$0xff]  ;;  %v1310_v3 = vld [vmem:[%s5764_s3 + $0x180] sm:$0xff] }
 0x1e1   :  { %v1294_v2 = vld [vmem:[%s5764_s3 + $0x100] sm:$0xff] }
 0x1e2   :  { %v1243_v10 = vadd.f32 %v1242_v8, %v1241_v4  ;;  %v1260_v11 = vrot.slane %v1259_v9, 1  ;;  %v1251_v4 = vrot.slane %v1250_v55, 1 }
 0x1e4   :  { %1390 = vmatprep.mubr.f32.mxu1 %v1243_v10  ;;  %v1261_v40 = vadd.f32 %v1260_v11, %v1259_v9  ;;  %v1252_v8 = vadd.f32 %v1251_v4, %v1250_v55  ;;  %v6321_v9 = vmov 0.0   ;;  %v1479_v10 = vld [vmem:[%s5765_s4 + $0x68] sm:$0xff]  ;;  %v1478_v11 = vld [vmem:[%s5765_s4 + $0x60] sm:$0xff]  ;;  %v6342_v4 = vld [vmem:[#allocation21_spill] sm:$0xff] }
 0x1e5   :  { %1391 = vmatmul.mubr.f32.vlgmr.msra.gmra.mxu1 %v1234_v37  ;;  %v1474_v37 = vld [vmem:[%s5765_s4 + $0x40] sm:$0xff] }
 0x1e6   :  { %3050 = vmatpush3.msra.mxu1 %v4971_v38  ;;  %1460 = vmatprep.mubr.f32.mxu1 %v1261_v40  ;;  %v1470_v40 = vld [vmem:[%s5765_s4 + $0x20] sm:$0xff] }
 0x1e7   :  { %3051 = vmatprep.subr.mxu1 %v1324_v39  ;;  %v1471_v39 = vld [vmem:[%s5765_s4 + $0x28] sm:$0xff]  ;;  %v6337_v55 = vld [vmem:[#allocation26_spill] sm:$0xff] }
 0x1e8   :  { %3052 = vmatpush3.msra.mxu1 %v1308_v43  ;;  %v1481_v43 = vld [vmem:[%s5765_s4 + $0x78] sm:$0xff] }
 0x1e9   :  { %3053 = vmatprep.subr.mxu1 %v1323_v44 }
 0x1ea   :  { %3054 = vmatpush3.msra.mxu1 %v1307_v47 }
 0x1eb   :  { %3055 = vmatprep.subr.mxu1 %v1322_v51 }
 0x1ec   :  { %3056 = vmatpush3.msra.mxu1 %v1306_v14 }
 0x1ed   :  { %3057 = vmatprep.subr.mxu1 %v1321_v56  ;;  %v1480_v56 = vld [vmem:[%s5765_s4 + $0x70] sm:$0xff] }
 0x1ee   :  { %3058 = vmatpush3.msra.mxu1 %v1305_v58  ;;  %v1476_v58 = vld [vmem:[%s5765_s4 + $0x50] sm:$0xff] }
 0x1ef   :  { %3059 = vmatprep.subr.mxu1 %v1320_v59  ;;  %v1473_v59 = vld [vmem:[%s5765_s4 + $0x38] sm:$0xff] }
 0x1f0   :  { %3060 = vmatpush3.msra.mxu1 %v1304_v62  ;;  %v1472_v62 = vld [vmem:[%s5765_s4 + $0x30] sm:$0xff] }
 0x1f1   :  { %3061 = vmatprep.subr.mxu1 %v1319_v16  ;;  %v1469_v16 = vld [vmem:[%s5765_s4 + $0x18] sm:$0xff] }
 0x1f2   :  { %3062 = vmatpush3.msra.mxu1 %v1303_v22  ;;  %v6322_v22 = vld [vmem:[#allocation41_spill] sm:$0xff] }
 0x1f3   :  { %3063 = vmatprep.subr.mxu1 %v1318_v15  ;;  %v6323_v15 = vld [vmem:[#allocation40_spill] sm:$0xff] }
 0x1f4   :  { %3064 = vmatpush3.msra.mxu1 %v1302_v20  ;;  %v6324_v20 = vld [vmem:[#allocation39_spill] sm:$0xff] }
 0x1f5   :  { %3065 = vmatprep.subr.mxu1 %v1317_v27  ;;  %v6325_v27 = vld [vmem:[#allocation38_spill] sm:$0xff] }
 0x1f6   :  { %3066 = vmatpush3.msra.mxu1 %v1301_v28  ;;  %v6327_v28 = vld [vmem:[#allocation36_spill] sm:$0xff] }
 0x1f7   :  { %3067 = vmatprep.subr.mxu1 %v1316_v13  ;;  %v6328_v13 = vld [vmem:[#allocation35_spill] sm:$0xff] }
 0x1f8   :  { %3068 = vmatpush3.msra.mxu1 %v1300_v21  ;;  %v6329_v21 = vld [vmem:[#allocation34_spill] sm:$0xff] }
 0x1f9   :  { %3069 = vmatprep.subr.mxu1 %v1315_v33  ;;  %v6330_v33 = vld [vmem:[#allocation33_spill] sm:$0xff] }
 0x1fa   :  { %3070 = vmatpush3.msra.mxu1 %v1299_v18  ;;  %v6332_v18 = vld [vmem:[#allocation31_spill] sm:$0xff] }
 0x1fb   :  { %3071 = vmatprep.subr.mxu1 %v1314_v23  ;;  %v6333_v23 = vld [vmem:[#allocation30_spill] sm:$0xff] }
 0x1fc   :  { %3072 = vmatpush3.msra.mxu1 %v1298_v63  ;;  %v6334_v63 = vld [vmem:[#allocation29_spill] sm:$0xff] }
 0x1fd   :  { %3073 = vmatprep.subr.mxu1 %v1313_v19  ;;  %v6335_v19 = vld [vmem:[#allocation28_spill] sm:$0xff] }
 0x1fe   :  { %3074 = vmatpush3.msra.mxu1 %v1297_v60  ;;  %v6336_v60 = vld [vmem:[#allocation27_spill] sm:$0xff] }
 0x1ff   :  { %3075 = vmatprep.subr.mxu1 %v1312_v35  ;;  %v6338_v35 = vld [vmem:[#allocation25_spill] sm:$0xff] }
 0x200   :  { %3076 = vmatpush3.msra.mxu1 %v1296_v7  ;;  %v6339_v7 = vld [vmem:[#allocation24_spill] sm:$0xff] }
 0x201   :  { %3077 = vmatprep.subr.mxu1 %v1311_v6  ;;  %v6340_v6 = vld [vmem:[#allocation23_spill] sm:$0xff] }
 0x202   :  { %3078 = vmatpush3.msra.mxu1 %v1295_v5  ;;  %v6341_v5 = vld [vmem:[#allocation22_spill] sm:$0xff] }
 0x203   :  { %3079 = vmatprep.subr.mxu1 %v1310_v3  ;;  %v6343_v3 = vld [vmem:[#allocation20_spill] sm:$0xff] }
 0x204   :  { %3080 = vmatpush3.msra.mxu1 %v1294_v2  ;;  %v6344_v2 = vld [vmem:[#allocation19_spill] sm:$0xff] }
 0x205   :  { %1461 = vmatmul.mubr.f32.vlgmr.msra.gmra.mxu1 %v1252_v8  ;;  %1510 = vmatprep.subr.mxu1 %v1479_v10  ;;  %v6345_v8 = vld [vmem:[#allocation18_spill] sm:$0xff]  ;;  %v6346_v10 = vld [vmem:[#allocation17_spill] sm:$0xff] }
 0x206   :  { %1550 = vmatprep.mubr.f32.mxu1 %v6321_v9  ;;  %1511 = vmatpush1.msra.mxu1 %v1478_v11  ;;  %v6347_v11 = vld [vmem:[#allocation16_spill] sm:$0xff] }
 0x207   :  { %1512 = vmatprep.subr.mxu1 %v1475_v36  ;;  %v6348_v36 = vld [vmem:[#allocation15_spill] sm:$0xff] }
 0x208   :  { %1513 = vmatpush1.msra.mxu1 %v1474_v37  ;;  %v6349_v37 = vld [vmem:[#allocation14_spill] sm:$0xff] }
 0x209   :  { %1514 = vmatprep.subr.mxu1 %v1471_v39  ;;  %v6350_v39 = vld [vmem:[#allocation13_spill] sm:$0xff] }
 0x20a   :  { %1515 = vmatpush1.msra.mxu1 %v1470_v40  ;;  %v6351_v40 = vld [vmem:[#allocation12_spill] sm:$0xff] }
 0x20b   :  { %1516 = vmatprep.subr.mxu1 %v1467_v41  ;;  %v6352_v41 = vld [vmem:[#allocation11_spill] sm:$0xff] }
 0x20c   :  { %1517 = vmatpush1.msra.mxu1 %v1466_v42  ;;  %v6353_v42 = vld [vmem:[#allocation10_spill] sm:$0xff] }
 0x20d   :  { %1581 = vmatprep.subr.mxu1 %v1481_v43  ;;  %v6354_v43 = vld [vmem:[#allocation73_spill] sm:$0xff] }
 0x2a5   :  { %v3046_v44 = vpop.f32.mrf.mxu1 }
 0x2a7   :  { %v3047_v45 = vpop.f32.mrf.mxu1 }
 0x2a8   :  { %v3048_v51 = vadd.f32 %v3047_v45, %v3046_v44  ;;  %v6355_v44 = vld [vmem:[#allocation72_spill] sm:$0xff]  ;;  %v6356_v45 = vld [vmem:[#allocation71_spill] sm:$0xff] }
 0x2c5   :  { %v3081_v46 = vpop.f32.mrf.mxu1 }
 0x2c7   :  { %v3082_v47 = vpop.f32.mrf.mxu1 }
 0x2c8   :  { %v3083_v52 = vadd.f32 %v3082_v47, %v3081_v46  ;;  %v6357_v46 = vld [vmem:[#allocation70_spill] sm:$0xff]  ;;  %v6358_v47 = vld [vmem:[#allocation69_spill] sm:$0xff] }
 0x2ca   :  { %v1463_v14 = vadd.f32 %v3083_v52, %v3048_v51  ;;  %v6359_v51 = vld [vmem:[#allocation68_spill] sm:$0xff]  ;;  %v6360_v52 = vld [vmem:[#allocation67_spill] sm:$0xff] }
 0x2cc   :  { %3008 = vmatmul.mubr.msk.f32.vlgmr.msra.gmra.mxu1 %vm1482_vm3, %v1463_v14 }
 0x2cd   :  { %1582 = vmatpush1.msra.mxu1 %v1480_v56  ;;  %1621 = vmatprep.mubr.f32.mxu1 %v6321_v9  ;;  %v6362_v56 = vld [vmem:[#allocation65_spill] sm:$0xff] }
 0x2ce   :  { %1583 = vmatprep.subr.mxu1 %v1477_v57  ;;  %v6363_v57 = vld [vmem:[#allocation64_spill] sm:$0xff] }
 0x2cf   :  { %1584 = vmatpush1.msra.mxu1 %v1476_v58  ;;  %v6364_v58 = vld [vmem:[#allocation63_spill] sm:$0xff] }
 0x2d0   :  { %1585 = vmatprep.subr.mxu1 %v1473_v59  ;;  %v6365_v59 = vld [vmem:[#allocation62_spill] sm:$0xff] }
 0x2d1   :  { %1586 = vmatpush1.msra.mxu1 %v1472_v62  ;;  %v6366_v62 = vld [vmem:[#allocation61_spill] sm:$0xff] }
 0x2d2   :  { %1587 = vmatprep.subr.mxu1 %v1469_v16  ;;  %v6367_v16 = vld [vmem:[#allocation60_spill] sm:$0xff] }
 0x2d3   :  { %1588 = vmatpush1.msra.mxu1 %v1468_v34  ;;  %v6368_v34 = vld [vmem:[#allocation59_spill] sm:$0xff] }
 0x2d4   :  { %3009 = vmatmul.mubr.msk.f32.vlgmr.msra.gmra.mxu1 %vm1482_vm3, %v1463_v14  ;;  %2025 = vmatprep.subr.mxu1 %v6322_v22  ;;  %v6361_v14 = vld [vmem:[#allocation66_spill] sm:$0xff] }
 0x2d5   :  { %2026 = vmatpush1.msra.mxu1 %v6323_v15  ;;  %v6369_v22 = vld [vmem:[#allocation58_spill] sm:$0xff]  ;;  %v6370_v15 = vld [vmem:[#allocation57_spill] sm:$0xff] }
 0x2d6   :  { %2027 = vmatprep.subr.mxu1 %v6324_v20  ;;  %v6371_v20 = vld [vmem:[#allocation56_spill] sm:$0xff] }
 0x2d7   :  { %2028 = vmatpush1.msra.mxu1 %v6325_v27  ;;  %v6372_v27 = vld [vmem:[#allocation55_spill] sm:$0xff] }
 0x2d8   :  { %2029 = vmatprep.subr.mxu1 %v6326_v0  ;;  %v6373_v0 = vld [vmem:[#allocation54_spill] sm:$0xff] }
 0x2d9   :  { %2030 = vmatpush1.msra.mxu1 %v6327_v28  ;;  %v6374_v28 = vld [vmem:[#allocation53_spill] sm:$0xff] }
 0x2da   :  { %2031 = vmatprep.subr.mxu1 %v6328_v13  ;;  %v6375_v13 = vld [vmem:[#allocation52_spill] sm:$0xff] }
 0x2db   :  { %2032 = vmatpush1.msra.mxu1 %v6329_v21  ;;  %v6376_v21 = vld [vmem:[#allocation51_spill] sm:$0xff] }
 0x2dc   :  { %2033 = vmatprep.subr.mxu1 %v6330_v33  ;;  %v6377_v33 = vld [vmem:[#allocation50_spill] sm:$0xff] }
 0x2dd   :  { %2034 = vmatpush1.msra.mxu1 %v6331_v26  ;;  %v6378_v26 = vld [vmem:[#allocation49_spill] sm:$0xff] }
 0x2de   :  { %2035 = vmatprep.subr.mxu1 %v6332_v18  ;;  %v6379_v18 = vld [vmem:[#allocation48_spill] sm:$0xff] }
 0x2df   :  { %2036 = vmatpush1.msra.mxu1 %v6333_v23  ;;  %v6380_v23 = vld [vmem:[#allocation47_spill] sm:$0xff] }
 0x2e0   :  { %2037 = vmatprep.subr.mxu1 %v6334_v63  ;;  %v6381_v63 = vld [vmem:[#allocation46_spill] sm:$0xff] }
 0x2e1   :  { %2038 = vmatpush1.msra.mxu1 %v6335_v19  ;;  %v6382_v19 = vld [vmem:[#allocation45_spill] sm:$0xff] }
 0x2e2   :  { %2039 = vmatprep.subr.mxu1 %v6336_v60  ;;  %v6383_v60 = vld [vmem:[#allocation44_spill] sm:$0xff] }
 0x2e3   :  { %2040 = vmatpush1.msra.mxu1 %v6337_v55  ;;  %v6384_v55 = vld [vmem:[#allocation43_spill] sm:$0xff] }
 0x2e4   :  { %2041 = vmatprep.subr.mxu1 %v6338_v35  ;;  %v6385_v35 = vld [vmem:[#allocation140_spill] sm:$0xff] }
 0x2e5   :  { %2042 = vmatpush1.msra.mxu1 %v6339_v7 }
 0x2e6   :  { %2043 = vmatprep.subr.mxu1 %v6340_v6 }
 0x2e7   :  { %2044 = vmatpush1.msra.mxu1 %v6341_v5 }
 0x2e8   :  { %2045 = vmatprep.subr.mxu1 %v6342_v4 }
 0x2e9   :  { %2046 = vmatpush1.msra.mxu1 %v6343_v3 }
 0x2ea   :  { %2047 = vmatprep.subr.mxu1 %v6344_v2 }
 0x2eb   :  { %2048 = vmatpush1.msra.mxu1 %v6345_v8 }
 0x2ec   :  { %2049 = vmatprep.subr.mxu1 %v6346_v10 }
 0x2ed   :  { %2050 = vmatpush1.msra.mxu1 %v6347_v11 }
 0x2ee   :  { %2051 = vmatprep.subr.mxu1 %v6348_v36 }
 0x2ef   :  { %2052 = vmatpush1.msra.mxu1 %v6349_v37 }
 0x2f0   :  { %2053 = vmatprep.subr.mxu1 %v6350_v39 }
 0x2f1   :  { %2054 = vmatpush1.msra.mxu1 %v6351_v40  ;;  %v3169_v40 = vmov 1966171168  }
 0x2f2   :  { %2055 = vmatprep.subr.mxu1 %v6352_v41  ;;  %v1643_v41 = vunpack.c.l.s4 %v3169_v40 }
 0x2f3   :  { %2056 = vmatpush1.msra.mxu1 %v6353_v42 }
 0x2f4   :  { %2057 = vmatprep.subr.mxu1 %v6354_v43  ;;  %v1644_v42 = vunpack.c.0.s8 %v1643_v41 }
 0x2f5   :  { %2058 = vmatpush2.msra.mxu1 %v6355_v44 }
 0x2f6   :  { %2059 = vmatprep.subr.mxu1 %v6356_v45 }
 0x2f7   :  { %2060 = vmatpush2.msra.mxu1 %v6357_v46 }
 0x2f8   :  { %2061 = vmatprep.subr.mxu1 %v6358_v47 }
 0x2f9   :  { %2062 = vmatpush2.msra.mxu1 %v6359_v51 }
 0x2fa   :  { %2063 = vmatprep.subr.mxu1 %v6360_v52 }
 0x2fb   :  { %2064 = vmatpush2.msra.mxu1 %v6361_v14 }
 0x2fc   :  { %2065 = vmatprep.subr.mxu1 %v6362_v56  ;;  %v1634_v56 = vld [vmem:[%s5766_s5] sm:$0x3] }
 0x2fd   :  { %2066 = vmatpush2.msra.mxu1 %v6363_v57  ;;  %v1693_v57 = vld [vmem:[%s5767_s6] sm:$0x3] }
 0x2fe   :  { %2067 = vmatprep.subr.mxu1 %v6364_v58 }
 0x2ff   :  { %2068 = vmatpush2.msra.mxu1 %v6365_v59 }
 0x300   :  { %2069 = vmatprep.subr.mxu1 %v6366_v62 }
 0x301   :  { %2070 = vmatpush2.msra.mxu1 %v6367_v16  ;;  %v1730_v16 = vld [vmem:[#allocation4 + $0x8] sm:$0x80] }
 0x302   :  { %2071 = vmatprep.subr.mxu1 %v6368_v34  ;;  %v1729_v34 = vld [vmem:[#allocation4] sm:$0x80] }
 0x303   :  { %2072 = vmatpush2.msra.mxu1 %v6369_v22 }
 0x304   :  { %2073 = vmatprep.subr.mxu1 %v6370_v15 }
 0x305   :  { %2074 = vmatpush2.msra.mxu1 %v6371_v20 }
 0x306   :  { %2075 = vmatprep.subr.mxu1 %v6372_v27 }
 0x307   :  { %2076 = vmatpush2.msra.mxu1 %v6373_v0 }
 0x308   :  { %2077 = vmatprep.subr.mxu1 %v6374_v28  ;;  %v1756_v28 = vrot.slane %v1730_v16, 7 }
 0x309   :  { %2078 = vmatpush2.msra.mxu1 %v6375_v13  ;;  %v1753_v13 = vrot.slane %v1729_v34, 7 }
 0x30a   :  { %2079 = vmatprep.subr.mxu1 %v6376_v21 }
 0x30b   :  { %2080 = vmatpush2.msra.mxu1 %v6377_v33 }
 0x30c   :  { %2081 = vmatprep.subr.mxu1 %v6378_v26 }
 0x30d   :  { %2082 = vmatpush2.msra.mxu1 %v6379_v18 }
 0x30e   :  { %2083 = vmatprep.subr.mxu1 %v6380_v23 }
 0x30f   :  { %2084 = vmatpush2.msra.mxu1 %v6381_v63 }
 0x310   :  { %2085 = vmatprep.subr.mxu1 %v6382_v19 }
 0x311   :  { %2086 = vmatpush2.msra.mxu1 %v6383_v60 }
 0x312   :  { %2087 = vmatprep.subr.mxu1 %v6384_v55 }
 0x313   :  { %2088 = vmatpush2.msra.mxu1 %v6230_v17  ;;  %v6386_v17 = vlaneseq }
 0x314   :  { %2203 = vmatprep.subr.mxu1 %v6385_v35 }
 0x315   :  { %v1646_v43 = vshrl.u32 %v6386_v17, 7 }
 0x317   :  { %v5188_v45 = vsub.s32 %v1644_v42, %v1646_v43  ;;  %v5190_v47 = vsub.s32 0, %v1646_v43  ;;  %v5202_v62 = vsub.s32 1, %v1646_v43 }
 0x319   :  { %v1698_v15 = vrot.slane %v1693_v57, %v5190_v47  ;;  %v1702_v20 = vrot.slane %v1693_v57, %v5202_v62 }
 0x38c   :  { %v1552_v7 = vpop.f32.mrf.mxu1 }
 0x38d   :  { %v1628_v5 = vmul.f32 %v1552_v7, %v1552_v7  ;;  %v1661_v14 = vrot.slane %v1552_v7, %v5190_v47 }
 0x38e   :  { %v1554_v6 = vpop.f32.mrf.mxu1 }
 0x38f   :  { %v1629_v3 = vmul.f32 %v1554_v6, %v1554_v6  ;;  %v1665_v58 = vrot.slane %v1554_v6, %v5190_v47  ;;  %v1666_v27 = vsub.f32 %v4940_v53, %v1661_v14  ;;  %v1668_v0 = vsub.f32 %v4934_v48, %v1661_v14 }
 0x390   :  { %v1670_v23 = vsub.f32 %v4942_v54, %v1661_v14  ;;  %v1672_v63 = vsub.f32 %v4957_v29, %v1661_v14 }
 0x391   :  { %v1667_v21 = vsub.f32 %v4938_v50, %v1665_v58  ;;  %v1669_v33 = vsub.f32 %v4936_v49, %v1665_v58  ;;  %v1671_v19 = vsub.f32 %v4948_v61, %v1665_v58  ;;  %v1673_v53 = vsub.f32 %v4961_v24, %v1665_v58 }
 0x394   :  { %v1623_v4 = vpop.f32.mrf.mxu1 }
 0x395   :  { %v1630_v2 = vsub.f32 %v1623_v4, %v1628_v5 }
 0x396   :  { %v1625_v8 = vpop.f32.mrf.mxu1 }
 0x397   :  { %v1632_v10 = vmax.f32 %v1630_v2, 0.0  ;;  %v1631_v11 = vsub.f32 %v1625_v8, %v1629_v3 }
 0x399   :  { %v1635_v36 = vadd.f32 1e-05, %v1632_v10  ;;  %v1633_v37 = vmax.f32 %v1631_v11, 0.0 }
 0x39b   :  { %v1636_v39 = vadd.f32 1e-05, %v1633_v37  ;;  %3156 = vrsqrt.f32 %v1635_v36 }
 0x39d   :  { %3158 = vrsqrt.f32 %v1636_v39 }
 0x3a8   :  { %v3157_v44 = vpop.eup %3156 }
 0x3aa   :  { %v3159_v46 = vpop.eup %3158 }
 0x3ab   :  { %v1641_v51 = vcombine.low %v3157_v44, %v3159_v46  ;;  %v6387_v46 = vld [vmem:[#allocation139_spill] sm:$0xff] }
 0x3ad   :  { %v1648_v52 = vrot.slane %v1641_v51, %v5188_v45  ;;  %v1736_v51 = vld [vmem:[#allocation4 + $0x48] sm:$0x80] }
 0x3ae   :  { %v1766_v34 = vrot.slane %v1736_v51, 7  ;;  %v6417_v51 = vld [vmem:[#allocation170_spill] sm:$0xff] }
 0x3af   :  { %v1655_v59 = vrot.slane %v1648_v52, %v5188_v45  ;;  %v6388_v52 = vld [vmem:[#allocation138_spill] sm:$0xff] }
 0x3b1   :  { %v1657_v22 = vmul.f32 %v1655_v59, %v1634_v56  ;;  %v6389_v56 = vld [vmem:[#allocation137_spill] sm:$0xff] }
 0x3b3   :  { %v1678_v26 = vrot.slane %v1657_v22, %v5190_v47  ;;  %v1682_v18 = vrot.slane %v1657_v22, %v5202_v62  ;;  %v1735_v22 = vld [vmem:[#allocation4 + $0x40] sm:$0x80] }
 0x3b5   :  { %v1685_v60 = vmul.f32 %v1678_v26, %v1666_v27  ;;  %v1686_v48 = vmul.f32 %v1682_v18, %v1667_v21  ;;  %v1687_v55 = vmul.f32 %v1678_v26, %v1668_v0  ;;  %v1688_v35 = vmul.f32 %v1682_v18, %v1669_v33  ;;  %v6392_v33 = vld [vmem:[#allocation131_spill] sm:$0xff] }
 0x3b6   :  { %v1689_v7 = vmul.f32 %v1678_v26, %v1670_v23  ;;  %v1690_v50 = vmul.f32 %v1682_v18, %v1671_v19  ;;  %v1691_v6 = vmul.f32 %v1678_v26, %v1672_v63  ;;  %v1692_v49 = vmul.f32 %v1682_v18, %v1673_v53  ;;  %v6394_v23 = vld [vmem:[#allocation129_spill] sm:$0xff]  ;;  %v6395_v53 = vld [vmem:[#allocation128_spill] sm:$0xff] }
 0x3b7   :  { %v1705_v5 = vadd.f32 %v1698_v15, %v1685_v60  ;;  %v1706_v4 = vadd.f32 %v1702_v20, %v1686_v48  ;;  %v1707_v3 = vadd.f32 %v1698_v15, %v1687_v55  ;;  %v1708_v2 = vadd.f32 %v1702_v20, %v1688_v35  ;;  %v6396_v48 = vld [vmem:[#allocation127_spill] sm:$0xff]  ;;  %v6397_v35 = vld [vmem:[#allocation126_spill] sm:$0xff] }
 0x3b8   :  { %v1709_v8 = vadd.f32 %v1698_v15, %v1689_v7  ;;  %v1710_v54 = vadd.f32 %v1702_v20, %v1690_v50  ;;  %v1711_v10 = vadd.f32 %v1698_v15, %v1691_v6  ;;  %v1712_v29 = vadd.f32 %v1702_v20, %v1692_v49  ;;  %v6398_v50 = vld [vmem:[#allocation125_spill] sm:$0xff]  ;;  %v6399_v49 = vld [vmem:[#allocation124_spill] sm:$0xff] }
 0x3b9   :  { %v1713_v11 = vmax.f32 %v1705_v5, 0.0  ;;  %v1714_v61 = vmax.f32 %v1706_v4, 0.0  ;;  %v5216_v36 = vmax.f32 %v1707_v3, 0.0  ;;  %v5218_v24 = vmax.f32 %v1708_v2, 0.0  ;;  %v6400_v5 = vld [vmem:[#allocation123_spill] sm:$0xff]  ;;  %v6401_v4 = vld [vmem:[#allocation122_spill] sm:$0xff] }
 0x3ba   :  { %v5220_v37 = vmax.f32 %v1709_v8, 0.0  ;;  %v1718_v39 = vmax.f32 %v1710_v54, 0.0  ;;  %v5222_v40 = vmax.f32 %v1711_v10, 0.0  ;;  %v5224_v41 = vmax.f32 %v1712_v29, 0.0  ;;  %v6402_v3 = vld [vmem:[#allocation121_spill] sm:$0xff]  ;;  %v6403_v2 = vld [vmem:[#allocation120_spill] sm:$0xff] }
 0x3bb   :  { %1721 = vst [vmem:[#allocation4 + $0x10] sm:$0xff] %v1713_v11  ;;  %1722 = vst [vmem:[#allocation4 + $0x18] sm:$0xff] %v1714_v61  ;;  %v1757_v42 = vrot.slane %v1714_v61, 7  ;;  %2178 = vmatprep.mubr.f32.mxu0 %v1714_v61  ;;  %v1754_v17 = vrot.slane %v1713_v11, 7  ;;  %v1763_v0 = vrot.slane %v1735_v22, 7  ;;  %v1809_v55 = vrot.slane %v5218_v24, 1 }
 0x3bc   :  { %1723 = vst [vmem:[#allocation4 + $0x20] sm:$0xff] %v5216_v36  ;;  %1724 = vst [vmem:[#allocation4 + $0x28] sm:$0xff] %v5218_v24  ;;  %2179 = vmatmul.mubr.f32.vlgmr.msra.gmra.mxu0 %v1713_v11  ;;  %v1767_v59 = vrot.slane %v1718_v39, 7  ;;  %v1764_v27 = vrot.slane %v5220_v37, 7  ;;  %v6404_v8 = vld [vmem:[#allocation119_spill] sm:$0xff]  ;;  %v6405_v54 = vld [vmem:[#allocation118_spill] sm:$0xff] }
 0x3bd   :  { %1725 = vst [vmem:[#allocation4 + $0x50] sm:$0xff] %v5220_v37  ;;  %1726 = vst [vmem:[#allocation4 + $0x58] sm:$0xff] %v1718_v39  ;;  %2184 = vmatprep.mubr.f32.mxu0 %v5218_v24  ;;  %v1758_v43 = vsel %vm677_vm1, %v1756_v28, %v1757_v42  ;;  %v1755_v44 = vsel %vm677_vm1, %v1753_v13, %v1754_v17  ;;  %3120 = vmatpush3.msra.mxu0 %v4971_v38  ;;  %v6391_v28 = vld [vmem:[#allocation132_spill] sm:$0xff]  ;;  %v6406_v10 = vld [vmem:[#allocation117_spill] sm:$0xff] }
 0x3be   :  { %1727 = vst [vmem:[#allocation4 + $0x60] sm:$0xff] %v5222_v40  ;;  %1728 = vst [vmem:[#allocation4 + $0x68] sm:$0xff] %v5224_v41  ;;  %2089 = vmatprep.mubr.f32.mxu1 %v1758_v43  ;;  %v1765_v18 = vsel %vm677_vm1, %v1763_v0, %v1764_v27  ;;  %v6407_v29 = vld [vmem:[#allocation116_spill] sm:$0xff]  ;;  %v6408_v11 = vld [vmem:[#allocation115_spill] sm:$0xff] }
 0x3bf   :  { %2090 = vmatmul.mubr.f32.vlgmr.msra.gmra.mxu1 %v1755_v44  ;;  %v6409_v61 = vld [vmem:[#allocation114_spill] sm:$0xff]  ;;  %v6414_v43 = vld [vmem:[#allocation109_spill] sm:$0xff]  ;;  %v6415_v44 = vld [vmem:[#allocation172_spill] sm:$0xff] }
 0x3c0   :  { %2204 = vmatpush1.msra.mxu1 %v6387_v46  ;;  %2185 = vmatmul.mubr.f32.gmra.mxu0 %v5216_v36  ;;  %v6416_v46 = vld [vmem:[#allocation171_spill] sm:$0xff]  ;;  %v6426_v22 = vld [vmem:[#allocation161_spill] sm:$0xff] }
 0x3c1   :  { %2205 = vmatprep.subr.mxu1 %v6388_v52  ;;  %2190 = vmatprep.mubr.f32.mxu0 %v1718_v39  ;;  %v6411_v39 = vld [vmem:[#allocation112_spill] sm:$0xff]  ;;  %v6418_v52 = vld [vmem:[#allocation169_spill] sm:$0xff]  ;;  %v6432_v0 = vld [vmem:[#allocation155_spill] sm:$0xff] }
 0x3c2   :  { %2206 = vmatpush1.msra.mxu1 %v6389_v56  ;;  %v1786_v26 = vld [vmem:[#allocation4 + $0x18] sm:$0xfe]  ;;  %v6420_v56 = vld [vmem:[#allocation167_spill] sm:$0xff] }
 0x3c3   :  { %v1734_v14 = vld [vmem:[#allocation4 + $0x28] sm:$0x7f]  ;;  %v1733_v57 = vld [vmem:[#allocation4 + $0x20] sm:$0x7f]  ;;  %2207 = vmatprep.subr.mxu1 %v6236_v12  ;;  %v6390_v12 = vld [vmem:[#allocation133_spill] sm:$0xff]  ;;  %v1808_v60 = vrot.slane %v1786_v26, 1 }
 0x3c4   :  { %v1761_v58 = vrot.slane %v1734_v14, 7  ;;  %v1759_v16 = vrot.slane %v1733_v57, 7  ;;  %2208 = vmatpush1.msra.mxu1 %v6237_v31  ;;  %2191 = vmatmul.mubr.f32.gmra.mxu0 %v5220_v37  ;;  %v1768_v31 = vsel %vm677_vm1, %v1766_v34, %v1767_v59  ;;  %v6410_v37 = vld [vmem:[#allocation113_spill] sm:$0xff]  ;;  %v6419_v14 = vld [vmem:[#allocation168_spill] sm:$0xff]  ;;  %v6421_v57 = vld [vmem:[#allocation166_spill] sm:$0xff] }
 0x3c5   :  { %v1740_v38 = vld [vmem:[#allocation4 + $0x68] sm:$0x7f]  ;;  %2209 = vmatprep.subr.mxu1 %v6238_v30  ;;  %2196 = vmatprep.mubr.f32.mxu0 %v5224_v41  ;;  %v1739_v21 = vld [vmem:[#allocation4 + $0x60] sm:$0x7f]  ;;  %v1810_v6 = vsel %vm730_vm2, %v1808_v60, %v1809_v55  ;;  %v6438_v26 = vld [vmem:[#allocation149_spill] sm:$0xff] }
 0x3c6   :  { %v1762_v15 = vsel %vm677_vm1, %v1757_v42, %v1761_v58  ;;  %v1760_v20 = vsel %vm677_vm1, %v1754_v17, %v1759_v16  ;;  %2210 = vmatpush1.msra.mxu1 %v6390_v12  ;;  %v1771_v13 = vrot.slane %v1740_v38, 7  ;;  %v6393_v30 = vld [vmem:[#allocation130_spill] sm:$0xff]  ;;  %v1769_v63 = vrot.slane %v1739_v21, 7  ;;  %v6412_v42 = vld [vmem:[#allocation111_spill] sm:$0xff]  ;;  %v6422_v58 = vld [vmem:[#allocation165_spill] sm:$0xff] }
 0x3c7   :  { %2095 = vmatprep.mubr.f32.mxu1 %v1762_v15  ;;  %2211 = vmatprep.subr.mxu1 %v6391_v28  ;;  %v6413_v17 = vld [vmem:[#allocation110_spill] sm:$0xff]  ;;  %v6424_v16 = vld [vmem:[#allocation163_spill] sm:$0xff]  ;;  %v6427_v38 = vld [vmem:[#allocation160_spill] sm:$0xff] }
 0x3c8   :  { %2096 = vmatmul.mubr.f32.gmra.mxu1 %v1760_v20  ;;  %2197 = vmatmul.mubr.f32.gmra.mxu0 %v5222_v40  ;;  %v1772_v19 = vsel %vm677_vm1, %v1767_v59, %v1771_v13  ;;  %v1770_v7 = vsel %vm677_vm1, %v1764_v27, %v1769_v63  ;;  %v6423_v59 = vld [vmem:[#allocation164_spill] sm:$0xff]  ;;  %v6425_v34 = vld [vmem:[#allocation162_spill] sm:$0xff]  ;;  %v6428_v15 = vld [vmem:[#allocation159_spill] sm:$0xff] }
 0x3c9   :  { %2101 = vmatprep.mubr.f32.mxu1 %v1768_v31  ;;  %2212 = vmatpush1.msra.mxu1 %v6392_v33  ;;  %v6429_v20 = vld [vmem:[#allocation158_spill] sm:$0xff]  ;;  %v6430_v27 = vld [vmem:[#allocation157_spill] sm:$0xff]  ;;  %v6431_v12 = vld [vmem:[#allocation156_spill] sm:$0xff] }
 0x3ca   :  { %2213 = vmatprep.subr.mxu1 %v6393_v30  ;;  %v6433_v31 = vld [vmem:[#allocation154_spill] sm:$0xff]  ;;  %v6434_v28 = vld [vmem:[#allocation153_spill] sm:$0xff]  ;;  %v6435_v13 = vld [vmem:[#allocation152_spill] sm:$0xff] }
 0x3cb   :  { %2214 = vmatpush1.msra.mxu1 %v6394_v23  ;;  %v6436_v21 = vld [vmem:[#allocation151_spill] sm:$0xff]  ;;  %v6437_v33 = vld [vmem:[#allocation150_spill] sm:$0xff]  ;;  %v6439_v30 = vld [vmem:[#allocation148_spill] sm:$0xff] }
 0x3cc   :  { %2102 = vmatmul.mubr.f32.gmra.mxu1 %v1765_v18  ;;  %2215 = vmatprep.subr.mxu1 %v6395_v53  ;;  %v1785_v18 = vld [vmem:[#allocation4 + $0x10] sm:$0xfe]  ;;  %v6440_v23 = vld [vmem:[#allocation147_spill] sm:$0xff]  ;;  %v1788_v63 = vld [vmem:[#allocation4 + $0x38] sm:$0x1] }
 0x3cd   :  { %2107 = vmatprep.mubr.f32.mxu1 %v1772_v19  ;;  %2216 = vmatpush1.msra.mxu1 %v6396_v48  ;;  %v6441_v19 = vld [vmem:[#allocation146_spill] sm:$0xff]  ;;  %v6442_v53 = vld [vmem:[#allocation145_spill] sm:$0xff]  ;;  %v1805_v60 = vrot.slane %v1785_v18, 1  ;;  %v1813_v48 = vrot.slane %v1788_v63, 1  ;;  %v2358_v18 = vld [vmem:[%s5764_s3 + $0xb0] sm:$0xff] }
 0x3ce   :  { %2217 = vmatprep.subr.mxu1 %v6397_v35  ;;  %v1787_v35 = vld [vmem:[#allocation4 + $0x30] sm:$0x1] }
 0x3cf   :  { %2218 = vmatpush1.msra.mxu1 %v6398_v50  ;;  %v6443_v50 = vld [vmem:[#allocation143_spill] sm:$0xff]  ;;  %v2342_v63 = vld [vmem:[%s5764_s3 + $0x30] sm:$0xff] }
 0x3d0   :  { %2108 = vmatmul.mubr.f32.gmra.mxu1 %v1770_v7  ;;  %2219 = vmatprep.subr.mxu1 %v6399_v49  ;;  %v1806_v7 = vrot.slane %v5216_v36, 1  ;;  %v1819_v36 = vrot.slane %v5224_v41, 1 }
 0x3d1   :  { %2267 = vmatprep.mubr.f32.mxu1 %v1810_v6  ;;  %2220 = vmatpush1.msra.mxu1 %v6400_v5  ;;  %v1790_v6 = vld [vmem:[#allocation4 + $0x58] sm:$0xfe]  ;;  %v1811_v5 = vrot.slane %v1787_v35, 1  ;;  %v2374_v35 = vld [vmem:[%s5764_s3 + $0x130] sm:$0xff] }
 0x3d2   :  { %2221 = vmatprep.subr.mxu1 %v6401_v4  ;;  %v1807_v49 = vsel %vm730_vm2, %v1805_v60, %v1806_v7  ;;  %v1814_v4 = vsel %vm730_vm2, %v1809_v55, %v1813_v48  ;;  %v2390_v60 = vld [vmem:[%s5764_s3 + $0x1b0] sm:$0xff]  ;;  %v2341_v48 = vld [vmem:[%s5764_s3 + $0x28] sm:$0xff] }
 0x3d3   :  { %2222 = vmatpush1.msra.mxu1 %v6402_v3  ;;  %v1789_v3 = vld [vmem:[#allocation4 + $0x50] sm:$0xfe] }
 0x3d4   :  { %2223 = vmatprep.subr.mxu1 %v6403_v2  ;;  %v1792_v2 = vld [vmem:[#allocation4 + $0x78] sm:$0x1] }
 0x3d5   :  { %2224 = vmatpush1.msra.mxu1 %v6404_v8  ;;  %v1812_v8 = vsel %vm730_vm2, %v1806_v7, %v1811_v5  ;;  %v2356_v7 = vld [vmem:[%s5764_s3 + $0xa0] sm:$0xff]  ;;  %v2355_v5 = vld [vmem:[%s5764_s3 + $0x98] sm:$0xff] }
 0x3d6   :  { %2225 = vmatprep.subr.mxu1 %v6405_v54  ;;  %v1815_v54 = vrot.slane %v1789_v3, 1  ;;  %v2372_v3 = vld [vmem:[%s5764_s3 + $0x120] sm:$0xff] }
 0x3d7   :  { %2226 = vmatpush1.msra.mxu1 %v6406_v10  ;;  %v1791_v10 = vld [vmem:[#allocation4 + $0x70] sm:$0x1] }
 0x3d8   :  { %2227 = vmatprep.subr.mxu1 %v6407_v29  ;;  %v1816_v29 = vrot.slane %v5222_v40, 1  ;;  %v1821_v55 = vrot.slane %v1791_v10, 1  ;;  %v2351_v40 = vld [vmem:[%s5764_s3 + $0x78] sm:$0xff]  ;;  %v2337_v10 = vld [vmem:[%s5764_s3 + $0x8] sm:$0xff] }
 0x3d9   :  { %2228 = vmatpush1.msra.mxu1 %v6408_v11 }
 0x3da   :  { %2229 = vmatprep.subr.mxu1 %v6409_v61  ;;  %v1817_v24 = vsel %vm730_vm2, %v1815_v54, %v1816_v29  ;;  %v1822_v41 = vsel %vm730_vm2, %v1816_v29, %v1821_v55  ;;  %v2367_v61 = vld [vmem:[%s5764_s3 + $0xf8] sm:$0xff]  ;;  %v2370_v29 = vld [vmem:[%s5764_s3 + $0x110] sm:$0xff]  ;;  %v2385_v55 = vld [vmem:[%s5764_s3 + $0x188] sm:$0xff] }
 0x3db   :  { %2230 = vmatpush1.msra.mxu1 %v6410_v37  ;;  %v2366_v37 = vld [vmem:[%s5764_s3 + $0xf0] sm:$0xff]  ;;  %v2371_v54 = vld [vmem:[%s5764_s3 + $0x118] sm:$0xff] }
 0x3dc   :  { %2231 = vmatprep.subr.mxu1 %v6411_v39  ;;  %v2350_v39 = vld [vmem:[%s5764_s3 + $0x70] sm:$0xff] }
 0x3dd   :  { %2232 = vmatpush1.msra.mxu1 %v6412_v42  ;;  %v2365_v42 = vld [vmem:[%s5764_s3 + $0xe8] sm:$0xff] }
 0x3de   :  { %2233 = vmatprep.subr.mxu1 %v6413_v17  ;;  %v2398_v17 = vld [vmem:[%s5764_s3 + $0x1f0] sm:$0xff] }
 0x3df   :  { %2234 = vmatpush1.msra.mxu1 %v6414_v43  ;;  %3121 = vmatprep.subr.mxu0 %v2398_v17  ;;  %v2349_v43 = vld [vmem:[%s5764_s3 + $0x68] sm:$0xff] }
 0x3e0   :  { %2235 = vmatprep.subr.mxu1 %v6415_v44  ;;  %v2382_v44 = vld [vmem:[%s5764_s3 + $0x170] sm:$0xff] }
 0x3e1   :  { %2236 = vmatpush2.msra.mxu1 %v6416_v46  ;;  %3122 = vmatpush3.msra.mxu0 %v2382_v44  ;;  %v2364_v46 = vld [vmem:[%s5764_s3 + $0xe0] sm:$0xff] }
 0x3e2   :  { %2237 = vmatprep.subr.mxu1 %v6417_v51  ;;  %v2397_v51 = vld [vmem:[%s5764_s3 + $0x1e8] sm:$0xff] }
 0x3e3   :  { %2238 = vmatpush2.msra.mxu1 %v6418_v52  ;;  %3123 = vmatprep.subr.mxu0 %v2397_v51  ;;  %v2348_v52 = vld [vmem:[%s5764_s3 + $0x60] sm:$0xff] }
 0x3e4   :  { %2239 = vmatprep.subr.mxu1 %v6419_v14  ;;  %v2381_v14 = vld [vmem:[%s5764_s3 + $0x168] sm:$0xff] }
 0x3e5   :  { %2240 = vmatpush2.msra.mxu1 %v6420_v56  ;;  %3124 = vmatpush3.msra.mxu0 %v2381_v14  ;;  %v2363_v56 = vld [vmem:[%s5764_s3 + $0xd8] sm:$0xff] }
 0x3e6   :  { %2241 = vmatprep.subr.mxu1 %v6421_v57  ;;  %v2396_v57 = vld [vmem:[%s5764_s3 + $0x1e0] sm:$0xff] }
 0x3e7   :  { %2242 = vmatpush2.msra.mxu1 %v6422_v58  ;;  %3125 = vmatprep.subr.mxu0 %v2396_v57  ;;  %v2347_v58 = vld [vmem:[%s5764_s3 + $0x58] sm:$0xff] }
 0x3e8   :  { %2243 = vmatprep.subr.mxu1 %v6423_v59  ;;  %v2380_v59 = vld [vmem:[%s5764_s3 + $0x160] sm:$0xff] }
 0x3e9   :  { %2244 = vmatpush2.msra.mxu1 %v6424_v16  ;;  %3126 = vmatpush3.msra.mxu0 %v2380_v59  ;;  %v2362_v16 = vld [vmem:[%s5764_s3 + $0xd0] sm:$0xff] }
 0x3ea   :  { %2245 = vmatprep.subr.mxu1 %v6425_v34  ;;  %v2395_v34 = vld [vmem:[%s5764_s3 + $0x1d8] sm:$0xff] }
 0x3eb   :  { %2246 = vmatpush2.msra.mxu1 %v6426_v22  ;;  %3127 = vmatprep.subr.mxu0 %v2395_v34  ;;  %v2346_v22 = vld [vmem:[%s5764_s3 + $0x50] sm:$0xff] }
 0x3ec   :  { %2247 = vmatprep.subr.mxu1 %v6427_v38  ;;  %v2379_v38 = vld [vmem:[%s5764_s3 + $0x158] sm:$0xff] }
 0x3ed   :  { %2248 = vmatpush2.msra.mxu1 %v6428_v15  ;;  %3128 = vmatpush3.msra.mxu0 %v2379_v38  ;;  %v2361_v15 = vld [vmem:[%s5764_s3 + $0xc8] sm:$0xff] }
 0x3ee   :  { %2249 = vmatprep.subr.mxu1 %v6429_v20  ;;  %v2394_v20 = vld [vmem:[%s5764_s3 + $0x1d0] sm:$0xff] }
 0x3ef   :  { %2250 = vmatpush2.msra.mxu1 %v6430_v27  ;;  %3129 = vmatprep.subr.mxu0 %v2394_v20  ;;  %v2345_v27 = vld [vmem:[%s5764_s3 + $0x48] sm:$0xff] }
 0x3f0   :  { %2251 = vmatprep.subr.mxu1 %v6431_v12  ;;  %v2378_v12 = vld [vmem:[%s5764_s3 + $0x150] sm:$0xff] }
 0x3f1   :  { %2252 = vmatpush2.msra.mxu1 %v6432_v0  ;;  %3130 = vmatpush3.msra.mxu0 %v2378_v12  ;;  %v2360_v0 = vld [vmem:[%s5764_s3 + $0xc0] sm:$0xff] }
 0x3f2   :  { %2253 = vmatprep.subr.mxu1 %v6433_v31  ;;  %v2393_v31 = vld [vmem:[%s5764_s3 + $0x1c8] sm:$0xff] }
 0x3f3   :  { %2254 = vmatpush2.msra.mxu1 %v6434_v28  ;;  %3131 = vmatprep.subr.mxu0 %v2393_v31  ;;  %v2344_v28 = vld [vmem:[%s5764_s3 + $0x40] sm:$0xff] }
 0x3f4   :  { %2255 = vmatprep.subr.mxu1 %v6435_v13  ;;  %v2377_v13 = vld [vmem:[%s5764_s3 + $0x148] sm:$0xff] }
 0x3f5   :  { %2256 = vmatpush2.msra.mxu1 %v6436_v21  ;;  %3132 = vmatpush3.msra.mxu0 %v2377_v13  ;;  %v2359_v21 = vld [vmem:[%s5764_s3 + $0xb8] sm:$0xff] }
 0x3f6   :  { %2257 = vmatprep.subr.mxu1 %v6437_v33  ;;  %v2392_v33 = vld [vmem:[%s5764_s3 + $0x1c0] sm:$0xff] }
 0x3f7   :  { %2258 = vmatpush2.msra.mxu1 %v6438_v26  ;;  %3133 = vmatprep.subr.mxu0 %v2392_v33  ;;  %v2343_v26 = vld [vmem:[%s5764_s3 + $0x38] sm:$0xff] }
 0x3f8   :  { %2259 = vmatprep.subr.mxu1 %v6439_v30  ;;  %v2376_v30 = vld [vmem:[%s5764_s3 + $0x140] sm:$0xff] }
 0x3f9   :  { %2260 = vmatpush2.msra.mxu1 %v6440_v23  ;;  %3134 = vmatpush3.msra.mxu0 %v2376_v30  ;;  %v2391_v23 = vld [vmem:[%s5764_s3 + $0x1b8] sm:$0xff] }
 0x3fa   :  { %2261 = vmatprep.subr.mxu1 %v6441_v19  ;;  %3135 = vmatprep.subr.mxu0 %v2391_v23  ;;  %v2375_v19 = vld [vmem:[%s5764_s3 + $0x138] sm:$0xff] }
 0x3fb   :  { %2262 = vmatpush2.msra.mxu1 %v6442_v53  ;;  %3136 = vmatpush3.msra.mxu0 %v2375_v19  ;;  %v2357_v53 = vld [vmem:[%s5764_s3 + $0xa8] sm:$0xff] }
 0x3fc   :  { %2263 = vmatprep.subr.mxu1 %v6292_v32  ;;  %v1818_v32 = vrot.slane %v1790_v6, 1  ;;  %3137 = vmatprep.subr.mxu0 %v2390_v60  ;;  %v2340_v6 = vld [vmem:[%s5764_s3 + $0x20] sm:$0xff] }
 0x3fd   :  { %2264 = vmatpush2.msra.mxu1 %v6443_v50  ;;  %3138 = vmatpush3.msra.mxu0 %v2374_v35  ;;  %v2389_v50 = vld [vmem:[%s5764_s3 + $0x1a8] sm:$0xff] }
 0x3fe   :  { %2265 = vmatprep.subr.mxu1 %v6294_v1  ;;  %v1823_v1 = vrot.slane %v1792_v2, 1  ;;  %3139 = vmatprep.subr.mxu0 %v2389_v50  ;;  %v2354_v2 = vld [vmem:[%s5764_s3 + $0x90] sm:$0xff] }
 0x3ff   :  { %2266 = vmatpush2.msra.mxu1 %v6296_v25  ;;  %v1820_v25 = vsel %vm730_vm2, %v1818_v32, %v1819_v36  ;;  %v2339_v32 = vld [vmem:[%s5764_s3 + $0x18] sm:$0xff] }
 0x400   :  { %2268 = vmatmul.mubr.f32.vlgmr.msra.gmra.mxu1 %v1807_v49  ;;  %v1824_v11 = vsel %vm730_vm2, %v1819_v36, %v1823_v1  ;;  %3084 = vmatprep.subr.mxu1 %v2367_v61  ;;  %v2373_v49 = vld [vmem:[%s5764_s3 + $0x128] sm:$0xff]  ;;  %v2387_v36 = vld [vmem:[%s5764_s3 + $0x198] sm:$0xff]  ;;  %v2386_v1 = vld [vmem:[%s5764_s3 + $0x190] sm:$0xff] }
 0x401   :  { %2273 = vmatprep.mubr.f32.mxu1 %v1814_v4  ;;  %3085 = vmatpush3.msra.mxu1 %v2351_v40  ;;  %v2388_v4 = vld [vmem:[%s5764_s3 + $0x1a0] sm:$0xff] }
 0x402   :  { %3086 = vmatprep.subr.mxu1 %v2366_v37  ;;  %3140 = vmatpush3.msra.mxu0 %v2373_v49  ;;  %v2384_v61 = vld [vmem:[%s5764_s3 + $0x180] sm:$0xff] }
 0x403   :  { %3087 = vmatpush3.msra.mxu1 %v2350_v39  ;;  %3141 = vmatprep.subr.mxu0 %v2388_v4  ;;  %v2368_v40 = vld [vmem:[%s5764_s3 + $0x100] sm:$0xff] }
 0x404   :  { %2274 = vmatmul.mubr.f32.gmra.mxu1 %v1812_v8  ;;  %3088 = vmatprep.subr.mxu1 %v2365_v42  ;;  %v2338_v8 = vld [vmem:[%s5764_s3 + $0x10] sm:$0xff] }
 0x405   :  { %2279 = vmatprep.mubr.f32.mxu1 %v1820_v25  ;;  %3089 = vmatpush3.msra.mxu1 %v2349_v43  ;;  %v2353_v25 = vld [vmem:[%s5764_s3 + $0x88] sm:$0xff] }
 0x406   :  { %3090 = vmatprep.subr.mxu1 %v2364_v46  ;;  %3142 = vmatpush3.msra.mxu0 %v2372_v3 }
 0x407   :  { %3091 = vmatpush3.msra.mxu1 %v2348_v52  ;;  %3143 = vmatprep.subr.mxu0 %v2387_v36 }
 0x408   :  { %2280 = vmatmul.mubr.f32.gmra.mxu1 %v1817_v24  ;;  %3092 = vmatprep.subr.mxu1 %v2363_v56  ;;  %v2352_v24 = vld [vmem:[%s5764_s3 + $0x80] sm:$0xff] }
 0x409   :  { %2285 = vmatprep.mubr.f32.mxu1 %v1824_v11  ;;  %3093 = vmatpush3.msra.mxu1 %v2347_v58  ;;  %v2336_v11 = vld [vmem:[%s5764_s3] sm:$0xff] }
 0x40a   :  { %3094 = vmatprep.subr.mxu1 %v2362_v16  ;;  %3144 = vmatpush3.msra.mxu0 %v2371_v54 }
 0x40b   :  { %3095 = vmatpush3.msra.mxu1 %v2346_v22  ;;  %3145 = vmatprep.subr.mxu0 %v2386_v1 }
 0x40c   :  { %2286 = vmatmul.mubr.f32.gmra.mxu1 %v1822_v41  ;;  %3096 = vmatprep.subr.mxu1 %v2361_v15  ;;  %v2369_v41 = vld [vmem:[%s5764_s3 + $0x108] sm:$0xff] }
 0x40d   :  { %3097 = vmatpush3.msra.mxu1 %v2345_v27  ;;  %3146 = vmatpush3.msra.mxu0 %v2370_v29 }
 0x40e   :  { %3098 = vmatprep.subr.mxu1 %v2360_v0  ;;  %3147 = vmatprep.subr.mxu0 %v2385_v55 }
 0x40f   :  { %3099 = vmatpush3.msra.mxu1 %v2344_v28  ;;  %3148 = vmatpush3.msra.mxu0 %v2369_v41 }
 0x410   :  { %3100 = vmatprep.subr.mxu1 %v2359_v21  ;;  %3149 = vmatprep.subr.mxu0 %v2384_v61 }
 0x411   :  { %3101 = vmatpush3.msra.mxu1 %v2343_v26  ;;  %3150 = vmatpush3.msra.mxu0 %v2368_v40 }
 0x412   :  { %3102 = vmatprep.subr.mxu1 %v2358_v18 }
 0x413   :  { %3103 = vmatpush3.msra.mxu1 %v2342_v63 }
 0x414   :  { %3104 = vmatprep.subr.mxu1 %v2357_v53 }
 0x415   :  { %3105 = vmatpush3.msra.mxu1 %v2341_v48 }
 0x416   :  { %3106 = vmatprep.subr.mxu1 %v2356_v7 }
 0x417   :  { %3107 = vmatpush3.msra.mxu1 %v2340_v6 }
 0x418   :  { %3108 = vmatprep.subr.mxu1 %v2355_v5 }
 0x419   :  { %3109 = vmatpush3.msra.mxu1 %v2339_v32 }
 0x41a   :  { %3110 = vmatprep.subr.mxu1 %v2354_v2 }
 0x41b   :  { %3111 = vmatpush3.msra.mxu1 %v2338_v8 }
 0x41c   :  { %3112 = vmatprep.subr.mxu1 %v2353_v25 }
 0x41d   :  { %3113 = vmatpush3.msra.mxu1 %v2337_v10 }
 0x41e   :  { %3114 = vmatprep.subr.mxu1 %v2352_v24 }
 0x41f   :  { %3115 = vmatpush3.msra.mxu1 %v2336_v11 }
 0x47c   :  { %v2180_v43 = vpop.f32.mrf.mxu0 }
 0x47e   :  { %v2182_v46 = vpop.f32.mrf.mxu0 }
 0x47f   :  { %v2091_v37 = vpop.f32.mrf.mxu1 }
 0x480   :  { %v2186_v52 = vpop.f32.mrf.mxu0  ;;  %v2181_v38 = vadd.f32 %v2180_v43, %v2091_v37 }
 0x481   :  { %v2093_v39 = vpop.f32.mrf.mxu1 }
 0x482   :  { %v2188_v56 = vpop.f32.mrf.mxu0  ;;  %v2183_v12 = vadd.f32 %v2182_v46, %v2093_v39 }
 0x484   :  { %v2192_v58 = vpop.f32.mrf.mxu0 }
 0x486   :  { %v2194_v22 = vpop.f32.mrf.mxu0 }
 0x488   :  { %v2097_v42 = vpop.f32.mrf.mxu1  ;;  %v2198_v13 = vpop.f32.mrf.mxu0 }
 0x489   :  { %v2187_v34 = vadd.f32 %v2186_v52, %v2097_v42 }
 0x48a   :  { %v2099_v17 = vpop.f32.mrf.mxu1  ;;  %v2200_v60 = vpop.f32.mrf.mxu0 }
 0x48b   :  { %v2189_v20 = vadd.f32 %v2188_v56, %v2099_v17 }
 0x48c   :  { %v2103_v44 = vpop.f32.mrf.mxu1 }
 0x48d   :  { %v2193_v28 = vadd.f32 %v2192_v58, %v2103_v44 }
 0x48e   :  { %v2105_v51 = vpop.f32.mrf.mxu1 }
 0x48f   :  { %v2195_v18 = vadd.f32 %v2194_v22, %v2105_v51 }
 0x490   :  { %v2109_v14 = vpop.f32.mrf.mxu1 }
 0x491   :  { %v2199_v48 = vadd.f32 %v2198_v13, %v2109_v14 }
 0x492   :  { %v2111_v57 = vpop.f32.mrf.mxu1 }
 0x493   :  { %v2201_v6 = vadd.f32 %v2200_v60, %v2111_v57  ;;  %v2550_v60 = vld [vmem:[%s5765_s4 + $0x50] sm:$0xff] }
 0x4c0   :  { %v2269_v59 = vpop.f32.mrf.mxu1 }
 0x4c1   :  { %v5513_v0 = vadd.f32 %v2269_v59, %v2181_v38 }
 0x4c2   :  { %v2271_v16 = vpop.f32.mrf.mxu1 }
 0x4c3   :  { %v5517_v33 = vadd.f32 %v2271_v16, %v2183_v12  ;;  %v2292_v63 = vmul.f32 %v5513_v0, %v5513_v0 }
 0x4c4   :  { %v2275_v15 = vpop.f32.mrf.mxu1 }
 0x4c5   :  { %v5511_v27 = vadd.f32 %v2275_v15, %v2187_v34  ;;  %v2293_v49 = vmul.f32 %v5517_v33, %v5517_v33 }
 0x4c6   :  { %v2277_v31 = vpop.f32.mrf.mxu1 }
 0x4c7   :  { %v5515_v21 = vadd.f32 %v2277_v31, %v2189_v20  ;;  %v2294_v26 = vmul.f32 %v5511_v27, %v5511_v27  ;;  %v2300_v35 = vadd.f32 %v5511_v27, %v5513_v0 }
 0x4c8   :  { %v2281_v30 = vpop.f32.mrf.mxu1 }
 0x4c9   :  { %v5521_v23 = vadd.f32 %v2281_v30, %v2193_v28  ;;  %v2295_v19 = vmul.f32 %v5515_v21, %v5515_v21  ;;  %v2318_v5 = vadd.f32 %v2294_v26, %v2292_v63  ;;  %v2309_v32 = vadd.f32 %v5515_v21, %v5517_v33  ;;  %v2553_v26 = vld [vmem:[%s5765_s4 + $0x68] sm:$0xff]  ;;  %v2555_v30 = vld [vmem:[%s5765_s4 + $0x78] sm:$0xff]  ;;  %v2554_v63 = vld [vmem:[%s5765_s4 + $0x70] sm:$0xff] }
 0x4ca   :  { %v2283_v53 = vpop.f32.mrf.mxu1  ;;  %2583 = vmatprep.subr.mxu0 %v2553_v26  ;;  %2654 = vmatprep.subr.mxu1 %v2555_v30 }
 0x4cb   :  { %v2296_v7 = vmul.f32 %v5521_v23, %v5521_v23  ;;  %v5531_v50 = vadd.f32 %v2283_v53, %v2195_v18  ;;  %v2301_v3 = vadd.f32 %v2300_v35, %v5521_v23  ;;  %v2327_v8 = vadd.f32 %v2295_v19, %v2293_v49  ;;  %v2552_v18 = vld [vmem:[%s5765_s4 + $0x60] sm:$0xff]  ;;  %v2551_v19 = vld [vmem:[%s5765_s4 + $0x58] sm:$0xff]  ;;  %v2541_v49 = vld [vmem:[%s5765_s4 + $0x8] sm:$0xff] }
 0x4cc   :  { %v2287_v4 = vpop.f32.mrf.mxu1  ;;  %v2548_v53 = vld [vmem:[%s5765_s4 + $0x40] sm:$0xff]  ;;  %v2547_v35 = vld [vmem:[%s5765_s4 + $0x38] sm:$0xff] }
 0x4cd   :  { %v2297_v2 = vmul.f32 %v5531_v50, %v5531_v50  ;;  %v5540_v36 = vadd.f32 %v2287_v4, %v2199_v48  ;;  %v2319_v54 = vadd.f32 %v2318_v5, %v2296_v7  ;;  %v2310_v1 = vadd.f32 %v2309_v32, %v5531_v50  ;;  %v2545_v48 = vld [vmem:[%s5765_s4 + $0x28] sm:$0xff]  ;;  %v2544_v7 = vld [vmem:[%s5765_s4 + $0x20] sm:$0xff]  ;;  %v2543_v5 = vld [vmem:[%s5765_s4 + $0x18] sm:$0xff] }
 0x4ce   :  { %v2289_v25 = vpop.f32.mrf.mxu1  ;;  %v2540_v4 = vld [vmem:[%s5765_s4] sm:$0xff]  ;;  %v2542_v32 = vld [vmem:[%s5765_s4 + $0x10] sm:$0xff] }
 0x4cf   :  { %v2298_v10 = vmul.f32 %v5540_v36, %v5540_v36  ;;  %v2302_v29 = vadd.f32 %v2301_v3, %v5540_v36  ;;  %v5546_v24 = vadd.f32 %v2289_v25, %v2201_v6  ;;  %v2328_v55 = vadd.f32 %v2327_v8, %v2297_v2  ;;  %v2546_v6 = vld [vmem:[%s5765_s4 + $0x30] sm:$0xff] }
 0x4d1   :  { %v2303_v11 = vrot.slane %v2302_v29, 4  ;;  %v2320_v41 = vadd.f32 %v2319_v54, %v2298_v10  ;;  %v2299_v61 = vmul.f32 %v5546_v24, %v5546_v24  ;;  %v2311_v40 = vadd.f32 %v2310_v1, %v5546_v24 }
 0x4d3   :  { %v2304_v37 = vadd.f32 %v2303_v11, %v2302_v29  ;;  %v2321_v39 = vrot.slane %v2320_v41, 4  ;;  %v2312_v42 = vrot.slane %v2311_v40, 4  ;;  %v2329_v17 = vadd.f32 %v2328_v55, %v2299_v61 }
 0x4d5   :  { %v2305_v43 = vrot.slane %v2304_v37, 2  ;;  %v2322_v44 = vadd.f32 %v2321_v39, %v2320_v41  ;;  %v2313_v46 = vadd.f32 %v2312_v42, %v2311_v40  ;;  %v2330_v51 = vrot.slane %v2329_v17, 4 }
 0x4d7   :  { %v2306_v52 = vadd.f32 %v2305_v43, %v2304_v37  ;;  %v2323_v14 = vrot.slane %v2322_v44, 2  ;;  %v2314_v56 = vrot.slane %v2313_v46, 2  ;;  %v2331_v57 = vadd.f32 %v2330_v51, %v2329_v17 }
 0x4d9   :  { %v2324_v58 = vadd.f32 %v2323_v14, %v2322_v44  ;;  %v2315_v59 = vadd.f32 %v2314_v56, %v2313_v46  ;;  %v2332_v16 = vrot.slane %v2331_v57, 2  ;;  %v2307_v34 = vrot.slane %v2306_v52, 1 }
 0x4db   :  { %v2316_v22 = vrot.slane %v2315_v59, 1  ;;  %v2333_v38 = vadd.f32 %v2332_v16, %v2331_v57  ;;  %v2325_v15 = vrot.slane %v2324_v58, 1  ;;  %v2308_v31 = vadd.f32 %v2307_v34, %v2306_v52  ;;  %v2707_v57 = vld [vmem:[%s5766_s5] sm:$0x3] }
 0x4dd   :  { %v2317_v20 = vadd.f32 %v2316_v22, %v2315_v59  ;;  %v2334_v12 = vrot.slane %v2333_v38, 1  ;;  %v2326_v13 = vadd.f32 %v2325_v15, %v2324_v58  ;;  %v2766_v58 = vld [vmem:[%s5767_s6] sm:$0x3] }
 0x4de   :  { %v2775_v22 = vrot.slane %v2766_v58, %v5202_v62 }
 0x4df   :  { %2464 = vmatprep.mubr.f32.mxu1 %v2317_v20  ;;  %v2335_v28 = vadd.f32 %v2334_v12, %v2333_v38  ;;  %v2771_v20 = vrot.slane %v2766_v58, %v5190_v47 }
 0x4e0   :  { %2465 = vmatmul.mubr.f32.vlgmr.msra.gmra.mxu1 %v2308_v31 }
 0x4e1   :  { %2534 = vmatprep.mubr.f32.mxu0 %v2335_v28  ;;  %2694 = vmatprep.mubr.f32.mxu1 %v6321_v9 }
 0x4e2   :  { %2535 = vmatmul.mubr.f32.vlgmr.msra.gmra.mxu0 %v2326_v13  ;;  %2655 = vmatpush1.msra.mxu1 %v2554_v63 }
 0x4e3   :  { %2623 = vmatprep.mubr.f32.mxu0 %v6321_v9  ;;  %v2549_v9 = vld [vmem:[%s5765_s4 + $0x48] sm:$0xff]  ;;  %2584 = vmatpush1.msra.mxu0 %v2552_v18 }
 0x4e4   :  { %2585 = vmatprep.subr.mxu0 %v2549_v9  ;;  %2656 = vmatprep.subr.mxu1 %v2551_v19 }
 0x4e5   :  { %2586 = vmatpush1.msra.mxu0 %v2548_v53  ;;  %2657 = vmatpush1.msra.mxu1 %v2550_v60 }
 0x4e6   :  { %2587 = vmatprep.subr.mxu0 %v2545_v48  ;;  %2658 = vmatprep.subr.mxu1 %v2547_v35  ;;  %v6444_v35 = vld [vmem:[#allocation204_spill] sm:$0xff] }
 0x4e7   :  { %2588 = vmatpush1.msra.mxu0 %v2544_v7  ;;  %2659 = vmatpush1.msra.mxu1 %v2546_v6 }
 0x4e8   :  { %2589 = vmatprep.subr.mxu0 %v2541_v49  ;;  %2660 = vmatprep.subr.mxu1 %v2543_v5 }
 0x4e9   :  { %2590 = vmatpush1.msra.mxu0 %v2540_v4  ;;  %2661 = vmatpush1.msra.mxu1 %v2542_v32 }
 0x4ea   :  { %2862 = vmatprep.subr.mxu0 %v6444_v35 }
 0x5a0   :  { %v3116_v3 = vpop.f32.mrf.mxu1 }
 0x5a2   :  { %v3117_v2 = vpop.f32.mrf.mxu1  ;;  %v3151_v8 = vpop.f32.mrf.mxu0 }
 0x5a3   :  { %v3118_v25 = vadd.f32 %v3117_v2, %v3116_v3 }
 0x5a4   :  { %v3152_v54 = vpop.f32.mrf.mxu0 }
 0x5a5   :  { %v3153_v1 = vadd.f32 %v3152_v54, %v3151_v8 }
 0x5a7   :  { %v2537_v10 = vadd.f32 %v3153_v1, %v3118_v25 }
 0x5a9   :  { %3010 = vmatmul.mubr.msk.f32.vlgmr.msra.gmra.mxu0 %vm1482_vm3, %v2537_v10  ;;  %3011 = vmatmul.mubr.msk.f32.vlgmr.msra.gmra.mxu1 %vm1482_vm3, %v2537_v10 }
 0x669   :  { %v2625_v29 = vpop.f32.mrf.mxu0  ;;  %v2696_v11 = vpop.f32.mrf.mxu1 }
 0x66a   :  { %v2701_v55 = vmul.f32 %v2625_v29, %v2625_v29  ;;  %v2734_v56 = vrot.slane %v2625_v29, %v5190_v47 }
 0x66b   :  { %v2627_v41 = vpop.f32.mrf.mxu0  ;;  %v2698_v39 = vpop.f32.mrf.mxu1 }
 0x66c   :  { %v2703_v61 = vsub.f32 %v2696_v11, %v2701_v55  ;;  %v2702_v40 = vmul.f32 %v2627_v41, %v2627_v41  ;;  %v2738_v59 = vrot.slane %v2627_v41, %v5190_v47  ;;  %v2739_v38 = vsub.f32 %v5513_v0, %v2734_v56 }
 0x66d   :  { %v2741_v15 = vsub.f32 %v5511_v27, %v2734_v56  ;;  %v2743_v26 = vsub.f32 %v5521_v23, %v2734_v56 }
 0x66e   :  { %v2705_v37 = vmax.f32 %v2703_v61, 0.0  ;;  %v2704_v42 = vsub.f32 %v2698_v39, %v2702_v40  ;;  %v2740_v12 = vsub.f32 %v5517_v33, %v2738_v59  ;;  %v2742_v31 = vsub.f32 %v5515_v21, %v2738_v59 }
 0x66f   :  { %v2744_v30 = vsub.f32 %v5531_v50, %v2738_v59  ;;  %v2746_v0 = vsub.f32 %v5546_v24, %v2738_v59 }
 0x670   :  { %v2708_v17 = vadd.f32 1e-05, %v2705_v37  ;;  %v2706_v43 = vmax.f32 %v2704_v42, 0.0 }
 0x672   :  { %v2709_v44 = vadd.f32 1e-05, %v2706_v43  ;;  %3160 = vrsqrt.f32 %v2708_v17 }
 0x674   :  { %3162 = vrsqrt.f32 %v2709_v44 }
 0x67f   :  { %v3161_v46 = vpop.eup %3160 }
 0x681   :  { %v3163_v51 = vpop.eup %3162 }
 0x682   :  { %v2714_v52 = vcombine.low %v3161_v46, %v3163_v51 }
 0x684   :  { %v2721_v14 = vrot.slane %v2714_v52, %v5188_v45 }
 0x686   :  { %v2728_v16 = vrot.slane %v2721_v14, %v5188_v45  ;;  %v2745_v45 = vsub.f32 %v5540_v36, %v2734_v56 }
 0x688   :  { %v2730_v34 = vmul.f32 %v2728_v16, %v2707_v57 }
 0x68a   :  { %v2751_v28 = vrot.slane %v2730_v34, %v5190_v47  ;;  %v2755_v13 = vrot.slane %v2730_v34, %v5202_v62 }
 0x68c   :  { %v2758_v18 = vmul.f32 %v2751_v28, %v2739_v38  ;;  %v2759_v27 = vmul.f32 %v2755_v13, %v2740_v12  ;;  %v2760_v63 = vmul.f32 %v2751_v28, %v2741_v15  ;;  %v2761_v9 = vmul.f32 %v2755_v13, %v2742_v31 }
 0x68d   :  { %v2762_v19 = vmul.f32 %v2751_v28, %v2743_v26  ;;  %v2763_v33 = vmul.f32 %v2755_v13, %v2744_v30  ;;  %v2764_v53 = vmul.f32 %v2751_v28, %v2745_v45  ;;  %v2765_v21 = vmul.f32 %v2755_v13, %v2746_v0 }
 0x68e   :  { %v5625_v60 = vadd.f32 %v2771_v20, %v2758_v18  ;;  %v5627_v47 = vadd.f32 %v2775_v22, %v2759_v27  ;;  %v5629_v62 = vadd.f32 %v2771_v20, %v2760_v63  ;;  %v5631_v23 = vadd.f32 %v2775_v22, %v2761_v9 }
 0x68f   :  { %v5633_v36 = vadd.f32 %v2771_v20, %v2762_v19  ;;  %v5635_v50 = vadd.f32 %v2775_v22, %v2763_v33  ;;  %v5637_v24 = vadd.f32 %v2771_v20, %v2764_v53  ;;  %v5639_v48 = vadd.f32 %v2775_v22, %v2765_v21 }
 0x690   :  { %3166 = dma.done.wait [#allocation5 + $0x1], 8192 }
 0x691   :  { %3167 = vsyncadd [#allocation5 + $0x1], 4294959104  ;;  %v6445_v7 = vld [vmem:[#allocation203_spill] sm:$0xff]  ;;  %v6446_v6 = vld [vmem:[#allocation202_spill] sm:$0xff] }
 0x692   :  { %2863 = vmatpush1.msra.mxu0 %v6445_v7  ;;  %v6447_v49 = vld [vmem:[#allocation201_spill] sm:$0xff]  ;;  %v6448_v5 = vld [vmem:[#allocation200_spill] sm:$0xff]  ;;  %v6449_v4 = vld [vmem:[#allocation199_spill] sm:$0xff] }
 0x693   :  { %2864 = vmatprep.subr.mxu0 %v6446_v6  ;;  %v6450_v32 = vld [vmem:[#allocation198_spill] sm:$0xff]  ;;  %v6451_v3 = vld [vmem:[#allocation197_spill] sm:$0xff]  ;;  %v2791_v2 = vld [vmem:[%s5761_s0 + $0x8] sm:$0xff] }
 0x694   :  { %2865 = vmatpush1.msra.mxu0 %v6447_v49  ;;  %v6452_v8 = vld [vmem:[#allocation196_spill] sm:$0xff]  ;;  %2926 = vmatprep.mubr.f32.mxu0 %v2791_v2  ;;  %v6453_v54 = vld [vmem:[#allocation195_spill] sm:$0xff]  ;;  %v6454_v25 = vld [vmem:[#allocation194_spill] sm:$0xff] }
 0x695   :  { %2866 = vmatprep.subr.mxu0 %v6448_v5  ;;  %v6455_v1 = vld [vmem:[#allocation193_spill] sm:$0xff]  ;;  %v6456_v10 = vld [vmem:[#allocation192_spill] sm:$0xff]  ;;  %v6457_v29 = vld [vmem:[#allocation191_spill] sm:$0xff] }
 0x696   :  { %2867 = vmatpush1.msra.mxu0 %v6449_v4  ;;  %v6458_v55 = vld [vmem:[#allocation190_spill] sm:$0xff]  ;;  %v6459_v11 = vld [vmem:[#allocation189_spill] sm:$0xff]  ;;  %v6460_v41 = vld [vmem:[#allocation188_spill] sm:$0xff] }
 0x697   :  { %2868 = vmatprep.subr.mxu0 %v6450_v32  ;;  %v6461_v61 = vld [vmem:[#allocation187_spill] sm:$0xff]  ;;  %v6462_v40 = vld [vmem:[#allocation186_spill] sm:$0xff]  ;;  %v6463_v37 = vld [vmem:[#allocation185_spill] sm:$0xff] }
 0x698   :  { %2869 = vmatpush1.msra.mxu0 %v6451_v3  ;;  %v6464_v39 = vld [vmem:[#allocation184_spill] sm:$0xff]  ;;  %v6465_v42 = vld [vmem:[#allocation183_spill] sm:$0xff]  ;;  %v6466_v17 = vld [vmem:[#allocation182_spill] sm:$0xff] }
 0x699   :  { %2870 = vmatprep.subr.mxu0 %v6452_v8  ;;  %v6467_v43 = vld [vmem:[#allocation181_spill] sm:$0xff]  ;;  %v6468_v44 = vld [vmem:[#allocation180_spill] sm:$0xff]  ;;  %v6469_v46 = vld [vmem:[#allocation179_spill] sm:$0xff] }
 0x69a   :  { %2871 = vmatpush1.msra.mxu0 %v6453_v54  ;;  %v6470_v51 = vld [vmem:[#allocation178_spill] sm:$0xff]  ;;  %v6471_v52 = vld [vmem:[#allocation177_spill] sm:$0xff]  ;;  %v6472_v14 = vld [vmem:[#allocation176_spill] sm:$0xff] }
 0x69b   :  { %2872 = vmatprep.subr.mxu0 %v6454_v25  ;;  %v6473_v56 = vld [vmem:[#allocation175_spill] sm:$0xff]  ;;  %v6474_v57 = vld [vmem:[#allocation174_spill] sm:$0xff]  ;;  %v6475_v58 = vld [vmem:[#allocation173_spill] sm:$0xff] }
 0x69c   :  { %2873 = vmatpush1.msra.mxu0 %v6455_v1  ;;  %v6476_v59 = vld [vmem:[#allocation236_spill] sm:$0xff]  ;;  %v6477_v16 = vld [vmem:[#allocation235_spill] sm:$0xff]  ;;  %v6478_v34 = vld [vmem:[#allocation234_spill] sm:$0xff] }
 0x69d   :  { %2874 = vmatprep.subr.mxu0 %v6456_v10  ;;  %v6479_v22 = vld [vmem:[#allocation233_spill] sm:$0xff]  ;;  %v6480_v38 = vld [vmem:[#allocation232_spill] sm:$0xff]  ;;  %v6481_v15 = vld [vmem:[#allocation231_spill] sm:$0xff] }
 0x69e   :  { %2875 = vmatpush1.msra.mxu0 %v6457_v29  ;;  %v6482_v20 = vld [vmem:[#allocation230_spill] sm:$0xff]  ;;  %v6483_v12 = vld [vmem:[#allocation229_spill] sm:$0xff]  ;;  %v6484_v31 = vld [vmem:[#allocation228_spill] sm:$0xff] }
 0x69f   :  { %2876 = vmatprep.subr.mxu0 %v6458_v55  ;;  %v6485_v28 = vld [vmem:[#allocation227_spill] sm:$0xff]  ;;  %v6486_v13 = vld [vmem:[#allocation226_spill] sm:$0xff]  ;;  %v6487_v26 = vld [vmem:[#allocation225_spill] sm:$0xff] }
 0x6a0   :  { %2877 = vmatpush1.msra.mxu0 %v6459_v11  ;;  %v6488_v45 = vld [vmem:[#allocation224_spill] sm:$0xff]  ;;  %v6489_v30 = vld [vmem:[#allocation223_spill] sm:$0xff]  ;;  %v6490_v0 = vld [vmem:[#allocation222_spill] sm:$0xff] }
 0x6a1   :  { %2878 = vmatprep.subr.mxu0 %v6460_v41  ;;  %v6491_v18 = vld [vmem:[#allocation221_spill] sm:$0xff]  ;;  %v6492_v27 = vld [vmem:[#allocation220_spill] sm:$0xff]  ;;  %v6493_v63 = vld [vmem:[#allocation219_spill] sm:$0xff] }
 0x6a2   :  { %2879 = vmatpush1.msra.mxu0 %v6461_v61  ;;  %v6494_v9 = vld [vmem:[#allocation218_spill] sm:$0xff]  ;;  %v6495_v19 = vld [vmem:[#allocation217_spill] sm:$0xff]  ;;  %v6496_v33 = vld [vmem:[#allocation216_spill] sm:$0xff] }
 0x6a3   :  { %2880 = vmatprep.subr.mxu0 %v6462_v40  ;;  %v6497_v53 = vld [vmem:[#allocation215_spill] sm:$0xff]  ;;  %v6498_v21 = vld [vmem:[#allocation214_spill] sm:$0xff]  ;;  %v6499_v35 = vld [vmem:[#allocation213_spill] sm:$0xff] }
 0x6a4   :  { %2881 = vmatpush1.msra.mxu0 %v6463_v37  ;;  %v6500_v7 = vld [vmem:[#allocation212_spill] sm:$0xff]  ;;  %v6501_v6 = vld [vmem:[#allocation211_spill] sm:$0xff]  ;;  %v6502_v49 = vld [vmem:[#allocation210_spill] sm:$0xff] }
 0x6a5   :  { %2882 = vmatprep.subr.mxu0 %v6464_v39  ;;  %v6503_v5 = vld [vmem:[#allocation209_spill] sm:$0xff]  ;;  %v6504_v4 = vld [vmem:[#allocation208_spill] sm:$0xff]  ;;  %v6505_v32 = vld [vmem:[#allocation207_spill] sm:$0xff] }
 0x6a6   :  { %2883 = vmatpush1.msra.mxu0 %v6465_v42  ;;  %v2790_v3 = vld [vmem:[%s5761_s0] sm:$0xff]  ;;  %v2793_v8 = vld [vmem:[%s5761_s0 + $0x18] sm:$0xff]  ;;  %v2792_v25 = vld [vmem:[%s5761_s0 + $0x10] sm:$0xff] }
 0x6a7   :  { %2884 = vmatprep.subr.mxu0 %v6466_v17  ;;  %v6506_v2 = vld [vmem:[#allocation206_spill] sm:$0xff]  ;;  %v6507_v54 = vld [vmem:[#allocation205_spill] sm:$0xff]  ;;  %v2795_v1 = vld [vmem:[%s5761_s0 + $0x28] sm:$0xff] }
 0x6a8   :  { %2885 = vmatpush1.msra.mxu0 %v6467_v43  ;;  %v2794_v10 = vld [vmem:[%s5761_s0 + $0x20] sm:$0xff]  ;;  %v2797_v29 = vld [vmem:[%s5761_s0 + $0x38] sm:$0xff]  ;;  %v2796_v55 = vld [vmem:[%s5761_s0 + $0x30] sm:$0xff] }
 0x6a9   :  { %2886 = vmatprep.subr.mxu0 %v6468_v44 }
 0x6aa   :  { %2887 = vmatpush1.msra.mxu0 %v6469_v46 }
 0x6ab   :  { %2888 = vmatprep.subr.mxu0 %v6470_v51 }
 0x6ac   :  { %2889 = vmatpush1.msra.mxu0 %v6471_v52 }
 0x6ad   :  { %2890 = vmatprep.subr.mxu0 %v6472_v14 }
 0x6ae   :  { %2891 = vmatpush1.msra.mxu0 %v6473_v56 }
 0x6af   :  { %2892 = vmatprep.subr.mxu0 %v6474_v57 }
 0x6b0   :  { %2893 = vmatpush1.msra.mxu0 %v6475_v58 }
 0x6b1   :  { %2894 = vmatprep.subr.mxu0 %v6476_v59 }
 0x6b2   :  { %2895 = vmatpush2.msra.mxu0 %v6477_v16 }
 0x6b3   :  { %2896 = vmatprep.subr.mxu0 %v6478_v34 }
 0x6b4   :  { %2897 = vmatpush2.msra.mxu0 %v6479_v22 }
 0x6b5   :  { %2898 = vmatprep.subr.mxu0 %v6480_v38 }
 0x6b6   :  { %2899 = vmatpush2.msra.mxu0 %v6481_v15 }
 0x6b7   :  { %2900 = vmatprep.subr.mxu0 %v6482_v20 }
 0x6b8   :  { %2901 = vmatpush2.msra.mxu0 %v6483_v12 }
 0x6b9   :  { %2902 = vmatprep.subr.mxu0 %v6484_v31 }
 0x6ba   :  { %2903 = vmatpush2.msra.mxu0 %v6485_v28 }
 0x6bb   :  { %2904 = vmatprep.subr.mxu0 %v6486_v13 }
 0x6bc   :  { %2905 = vmatpush2.msra.mxu0 %v6487_v26 }
 0x6bd   :  { %2906 = vmatprep.subr.mxu0 %v6488_v45 }
 0x6be   :  { %2907 = vmatpush2.msra.mxu0 %v6489_v30 }
 0x6bf   :  { %2908 = vmatprep.subr.mxu0 %v6490_v0 }
 0x6c0   :  { %2909 = vmatpush2.msra.mxu0 %v6491_v18 }
 0x6c1   :  { %2910 = vmatprep.subr.mxu0 %v6492_v27 }
 0x6c2   :  { %2911 = vmatpush2.msra.mxu0 %v6493_v63 }
 0x6c3   :  { %2912 = vmatprep.subr.mxu0 %v6494_v9 }
 0x6c4   :  { %2913 = vmatpush2.msra.mxu0 %v6495_v19 }
 0x6c5   :  { %2914 = vmatprep.subr.mxu0 %v6496_v33 }
 0x6c6   :  { %2915 = vmatpush2.msra.mxu0 %v6497_v53 }
 0x6c7   :  { %2916 = vmatprep.subr.mxu0 %v6498_v21 }
 0x6c8   :  { %2917 = vmatpush2.msra.mxu0 %v6499_v35 }
 0x6c9   :  { %2918 = vmatprep.subr.mxu0 %v6500_v7 }
 0x6ca   :  { %2919 = vmatpush2.msra.mxu0 %v6501_v6 }
 0x6cb   :  { %2920 = vmatprep.subr.mxu0 %v6502_v49 }
 0x6cc   :  { %2921 = vmatpush2.msra.mxu0 %v6503_v5 }
 0x6cd   :  { %2922 = vmatprep.subr.mxu0 %v6504_v4 }
 0x6ce   :  { %2923 = vmatpush2.msra.mxu0 %v6505_v32 }
 0x6cf   :  { %2924 = vmatprep.subr.mxu0 %v6506_v2 }
 0x6d0   :  { %2925 = vmatpush2.msra.mxu0 %v6507_v54 }
 0x6d1   :  { %2927 = vmatmul.mubr.f32.vlgmr.msra.gmra.mxu0 %v2790_v3 }
 0x6d2   :  { %2932 = vmatprep.mubr.f32.mxu0 %v2793_v8 }
 0x6d5   :  { %2933 = vmatmul.mubr.f32.gmra.mxu0 %v2792_v25 }
 0x6d6   :  { %2938 = vmatprep.mubr.f32.mxu0 %v2795_v1 }
 0x6d9   :  { %2939 = vmatmul.mubr.f32.gmra.mxu0 %v2794_v10 }
 0x6da   :  { %2944 = vmatprep.mubr.f32.mxu0 %v2797_v29 }
 0x6dd   :  { %2945 = vmatmul.mubr.f32.gmra.mxu0 %v2796_v55 }
 0x791   :  { %v2928_v11 = vpop.f32.mrf.mxu0 }
 0x792   :  { %v2951_v41 = vadd.f32 %v2928_v11, %v5625_v60 }
 0x793   :  { %v2930_v61 = vpop.f32.mrf.mxu0 }
 0x794   :  { %v2959_v40 = vmax.f32 %v2951_v41, 0.0  ;;  %v2952_v37 = vadd.f32 %v2930_v61, %v5627_v47 }
 0x795   :  { %v2934_v39 = vpop.f32.mrf.mxu0 }
 0x796   :  { %2967 = vst [vmem:[%s5768_s7] sm:$0xff] %v2959_v40  ;;  %v2960_v42 = vmax.f32 %v2952_v37, 0.0  ;;  %v2953_v17 = vadd.f32 %v2934_v39, %v5629_v62 }
 0x797   :  { %v2936_v43 = vpop.f32.mrf.mxu0 }
 0x798   :  { %2968 = vst [vmem:[%s5768_s7 + $0x8] sm:$0xff] %v2960_v42  ;;  %v2961_v44 = vmax.f32 %v2953_v17, 0.0  ;;  %v2954_v60 = vadd.f32 %v2936_v43, %v5631_v23 }
 0x799   :  { %v2940_v46 = vpop.f32.mrf.mxu0 }
 0x79a   :  { %2969 = vst [vmem:[%s5768_s7 + $0x10] sm:$0xff] %v2961_v44  ;;  %v2962_v47 = vmax.f32 %v2954_v60, 0.0  ;;  %v2955_v51 = vadd.f32 %v2940_v46, %v5633_v36 }
 0x79b   :  { %v2942_v52 = vpop.f32.mrf.mxu0 }
 0x79c   :  { %2970 = vst [vmem:[%s5768_s7 + $0x18] sm:$0xff] %v2962_v47  ;;  %v2963_v62 = vmax.f32 %v2955_v51, 0.0  ;;  %v2956_v14 = vadd.f32 %v2942_v52, %v5635_v50 }
 0x79d   :  { %v2946_v56 = vpop.f32.mrf.mxu0 }
 0x79e   :  { %2971 = vst [vmem:[%s5768_s7 + $0x20] sm:$0xff] %v2963_v62  ;;  %v2964_v23 = vmax.f32 %v2956_v14, 0.0  ;;  %v2957_v57 = vadd.f32 %v2946_v56, %v5637_v24 }
 0x79f   :  { %v2948_v58 = vpop.f32.mrf.mxu0 }
 0x7a0   :  { %2972 = vst [vmem:[%s5768_s7 + $0x28] sm:$0xff] %v2964_v23  ;;  %v2965_v36 = vmax.f32 %v2957_v57, 0.0  ;;  %v2958_v59 = vadd.f32 %v2948_v58, %v5639_v48 }
 0x7a2   :  { %2973 = vst [vmem:[%s5768_s7 + $0x30] sm:$0xff] %v2965_v36  ;;  %v2966_v50 = vmax.f32 %v2958_v59, 0.0 }
 0x7a4   :  { %2974 = vst [vmem:[%s5768_s7 + $0x38] sm:$0xff] %v2966_v50 }
 0x7a5   :  { %2979 = vsyncmov [#allocation5] }
 0x7a8   :  { %s2980_s12 = vpop.sfrf %2979 }
 0x7a9   :  { %p3012_p0 = scmp.ne.s32.totalorder %s2980_s12, 0 }
 0x7ab   :  { %2984 = shalt.err (%p3012_p0)  }
 0x7ac   :  { %2986 = vsyncmov [#allocation5 + $0x1] }
 0x7af   :  { %s2987_s13 = vpop.sfrf %2986 }
 0x7b0   :  { %p3013_p1 = scmp.ne.s32.totalorder %s2987_s13, 0 }
 0x7b2   :  { %2991 = shalt.err (%p3013_p1)  }

</bundles_post_ra>
